<compile_context>
chip_gen: v5e
topology: v5e:2x2
jax: 0.10.0
libtpu: 0.0.40
codegen_flags: <defaults>
</compile_context>

<pallas_src>
import functools

import jax
import jax.numpy as jnp
from jax import lax
from jax.experimental import pallas as pl
from jax.experimental.pallas import tpu as pltpu

BN_EPS = 1e-3    # BatchNorm2d eps inside BaseConv
BN2_EPS = 1e-5   # nn.BatchNorm2d default eps (LRAM.bn2)
SN_EPS = 1e-5    # SwitchNorm eps

_MM_DTYPE = jnp.bfloat16   # single-pass MXU operands, f32 accumulation


def _round_up(x, m):
    return (x + m - 1) // m * m


def _sigmoid(v):
    # EUP-friendly sigmoid for SiLU: exp + approximate reciprocal (EUP slot).
    return pl.reciprocal(1.0 + jnp.exp(-v), approx=True)


def _fold_bn(gamma, beta, mean, var, eps):
    scale = gamma / jnp.sqrt(var + eps)
    bias = beta - mean * scale
    return scale.astype(jnp.float32), bias.astype(jnp.float32)


def _vmem_info():
    """(capacity, scoped-limit) bytes; conservative v7x fallback if unknown."""
    try:
        cap = int(getattr(pltpu.get_tpu_info(), "vmem_capacity_bytes", 0))
    except Exception:
        cap = 0
    if cap <= 0:
        cap = 64 * 1024 * 1024
    limit = max(32 * 1024 * 1024, min(cap * 3 // 4, cap - 8 * 1024 * 1024))
    return cap, int(limit)


# ---------------------------------------------------------------------------
# Kernel 1: fused 1x1-depthwise + BN + SiLU + pointwise 1x1 (MXU) + BN + SiLU,
# over flattened pixels (TM, C).  Used for DWconv1.
# ---------------------------------------------------------------------------
def _dwsep_1x1_kernel(x_ref, dws_ref, dwb_ref, pww_ref, pws_ref, pwb_ref, o_ref):
    x = x_ref[...].astype(jnp.float32)                       # (TM, C)
    y = x * dws_ref[...] + dwb_ref[...]                      # dw 1x1 conv + BN folded
    y = y * _sigmoid(y)                                      # SiLU
    z = jnp.dot(y.astype(pww_ref.dtype), pww_ref[...],       # bf16 x bf16 -> f32 MXU
                preferred_element_type=jnp.float32)
    z = z * pws_ref[...] + pwb_ref[...]                      # BN folded
    o_ref[...] = (z * _sigmoid(z)).astype(o_ref.dtype)       # SiLU


def _dwsep_1x1(x2d, dw_scale, dw_bias, pw_w, pw_scale, pw_bias, out_dtype):
    M, C = x2d.shape
    Cout = pw_w.shape[1]
    pw_w = pw_w.astype(_MM_DTYPE)

    # No wrapper jnp.pad: Pallas masks the ragged last block's stores, and the
    # garbage rows it reads only feed garbage (masked) output rows.
    TM = min(4096, _round_up(M, 8))
    _, vlimit = _vmem_info()

    const = lambda i: (0, 0)
    out = pl.pallas_call(
        _dwsep_1x1_kernel,
        out_shape=jax.ShapeDtypeStruct((M, Cout), out_dtype),
        grid=(pl.cdiv(M, TM),),
        in_specs=[
            pl.BlockSpec((TM, C), lambda i: (i, 0)),
            pl.BlockSpec((1, C), const),
            pl.BlockSpec((1, C), const),
            pl.BlockSpec((C, Cout), const),
            pl.BlockSpec((1, Cout), const),
            pl.BlockSpec((1, Cout), const),
        ],
        out_specs=pl.BlockSpec((TM, Cout), lambda i: (i, 0)),
        compiler_params=pltpu.CompilerParams(
            dimension_semantics=("parallel",),
            vmem_limit_bytes=vlimit),
    )(x2d, dw_scale.reshape(1, C), dw_bias.reshape(1, C),
      pw_w, pw_scale.reshape(1, Cout), pw_bias.reshape(1, Cout))
    return out


# ---------------------------------------------------------------------------
# Kernel 2: DWconv_h and DWconv_w merged into one pallas_call.  Per-image block
# of the (H+W, Cm) tensor; per-row depthwise scale/bias tables select the h/w
# conv, and the pointwise weights are stacked to (Cm, 2*Co) for one MXU matmul.
# ---------------------------------------------------------------------------
def _dwsep_hw_kernel(y_ref, dws_ref, dwb_ref, pww_ref, pws_ref, pwb_ref, o_ref,
                     *, H, Co):
    y = y_ref[...].astype(jnp.float32)                        # (H+W, Cm)
    t = y * dws_ref[...] + dwb_ref[...]                       # per-row dw + BN
    t = t * _sigmoid(t)
    z = jnp.dot(t.astype(pww_ref.dtype), pww_ref[...],        # (H+W, 2*Co)
                preferred_element_type=jnp.float32)
    z = z * pws_ref[...] + pwb_ref[...]
    row = lax.broadcasted_iota(jnp.int32, (z.shape[0], 1), 0)
    zz = jnp.where(row < H, z[:, :Co], z[:, Co:])             # rows<H -> h conv
    o_ref[...] = (zz * _sigmoid(zz)).astype(o_ref.dtype)


def _dwsep_hw(y, ch, cw, H, W, out_dtype):
    # ch / cw: (dw_scale, dw_bias, pw_w (Cm,Co), pw_scale, pw_bias)
    N, L, Cm = y.shape
    Co = ch[2].shape[1]
    dws = jnp.concatenate([jnp.broadcast_to(ch[0][None, :], (H, Cm)),
                           jnp.broadcast_to(cw[0][None, :], (W, Cm))], axis=0)
    dwb = jnp.concatenate([jnp.broadcast_to(ch[1][None, :], (H, Cm)),
                           jnp.broadcast_to(cw[1][None, :], (W, Cm))], axis=0)
    pww = jnp.concatenate([ch[2], cw[2]], axis=1).astype(_MM_DTYPE)   # (Cm, 2Co)
    pws = jnp.concatenate([ch[3], cw[3]])[None, :]
    pwb = jnp.concatenate([ch[4], cw[4]])[None, :]
    _, vlimit = _vmem_info()

    kern = functools.partial(_dwsep_hw_kernel, H=H, Co=Co)
    const = lambda n: (0, 0)
    return pl.pallas_call(
        kern,
        out_shape=jax.ShapeDtypeStruct((N, L, Co), out_dtype),
        grid=(N,),
        in_specs=[
            pl.BlockSpec((None, L, Cm), lambda n: (n, 0, 0)),
            pl.BlockSpec((L, Cm), const),
            pl.BlockSpec((L, Cm), const),
            pl.BlockSpec((Cm, 2 * Co), const),
            pl.BlockSpec((1, 2 * Co), const),
            pl.BlockSpec((1, 2 * Co), const),
        ],
        out_specs=pl.BlockSpec((None, L, Co), lambda n: (n, 0, 0)),
        compiler_params=pltpu.CompilerParams(
            dimension_semantics=("parallel",),
            vmem_limit_bytes=vlimit),
    )(y, dws, dwb, pww, pws, pwb)


# ---------------------------------------------------------------------------
# Kernel 3: the fused LRAM tail.  Per row tile:
#     p      = a_h (x) a_w                                    (in-VMEM, no HBM)
#     gate   = sigmoid(bn2( pw_bn_silu( dw3x3_bn_silu(p) ) )) (DWconv_end + bn2)
#     short  = pw_bn_silu( dw3x3_bn_silu(x) )                 (DWconv_short)
#     out    = short * gate
# Row-tiled with in-kernel halo carries for both 3x3 convs.  Output buffer rows
# are shifted down by `pad` (true row r lives at buffer row r+pad).
# ---------------------------------------------------------------------------
def _lram_tail_kernel(x_ref, ah_ref, aw_ref,
                      dwws_ref, dwbs_ref, pwws_ref, pwss_ref, pwbs_ref,
                      dwwe_ref, dwbe_ref, pwwe_ref, pwse_ref, pwbe_ref,
                      g2s_ref, g2b_ref,
                      o_ref, xpad_ref, ppad_ref,
                      *, K, TH, H, W, C, Co):
    pad = (K - 1) // 2
    halo = 2 * pad
    t = pl.program_id(1)

    # Zero both carry scratches at the start of each image: establishes the
    # top halo and the side zero columns (never written afterwards).
    @pl.when(t == 0)
    def _init():
        xpad_ref[...] = jnp.zeros(xpad_ref.shape, xpad_ref.dtype)
        ppad_ref[...] = jnp.zeros(ppad_ref.shape, ppad_ref.dtype)

    # ---- Prologue: current row block of x and of p = a_h (x) a_w -----------
    xb = x_ref[...].astype(jnp.float32)                       # (TH, W, C)
    row_ids = lax.broadcasted_iota(jnp.int32, (TH, 1), 0) + t * TH
    # a_h mask is tiny (TH, Co); it zeroes all p rows >= H for free.
    ah = jnp.where(row_ids < H, ah_ref[...].astype(jnp.float32), 0.0)
    aw = aw_ref[...].astype(jnp.float32)                      # (W, Co)
    pb = ah[:, None, :] * aw[None, :, :]                      # fused outer product

    xpad_ref[halo:halo + TH, pad:pad + W, :] = xb
    ppad_ref[halo:halo + TH, pad:pad + W, :] = pb

    # Rows with global index >= H are conv zero padding (also neutralizes the
    # ragged / clamped last blocks).  Guarded: interior tiles skip the select.
    @pl.when(t * TH + TH > H)
    def _mask_tail():
        m = lax.broadcasted_iota(jnp.int32, (TH, 1, 1), 0) + t * TH < H
        blk = xpad_ref[halo:halo + TH, pad:pad + W, :]
        xpad_ref[halo:halo + TH, pad:pad + W, :] = jnp.where(m, blk, 0.0)

    # ---- Depthwise KxK taps (VPU); BN scale pre-folded into the weights ----
    # TODO(synk): replace the kx-offset sublane slices with pltpu.roll-based taps.
    ws = dwws_ref[...]                                         # (K*K, C)  f32
    we = dwwe_ref[...]                                         # (K*K, Co) f32
    acc_s = jnp.zeros((TH, W, C), jnp.float32)
    acc_e = jnp.zeros((TH, W, Co), jnp.float32)
    for ky in range(K):
        for kx in range(K):
            acc_s = acc_s + xpad_ref[ky:ky + TH, kx:kx + W, :] * ws[ky * K + kx][None, None, :]
            acc_e = acc_e + ppad_ref[ky:ky + TH, kx:kx + W, :] * we[ky * K + kx][None, None, :]

    # Carry: last `halo` rows of the (masked) current block become the next
    # tile's top halo.
    xpad_ref[0:halo, pad:pad + W, :] = xpad_ref[TH:TH + halo, pad:pad + W, :]
    ppad_ref[0:halo, pad:pad + W, :] = ppad_ref[TH:TH + halo, pad:pad + W, :]

    # ---- DWconv_short epilogue: BN bias + SiLU, pointwise MXU + BN + SiLU --
    y = acc_s + dwbs_ref[...].reshape(1, 1, C)
    y = y * _sigmoid(y)
    zs = jnp.dot(y.reshape(TH * W, C).astype(pwws_ref.dtype), pwws_ref[...],
                 preferred_element_type=jnp.float32)
    zs = zs * pwss_ref[...] + pwbs_ref[...]
    zs = zs * _sigmoid(zs)

    # ---- DWconv_end epilogue + bn2 + (exact) sigmoid gate -------------------
    g = acc_e + dwbe_ref[...].reshape(1, 1, Co)
    g = g * _sigmoid(g)
    zg = jnp.dot(g.reshape(TH * W, Co).astype(pwwe_ref.dtype), pwwe_ref[...],
                 preferred_element_type=jnp.float32)
    zg = zg * pwse_ref[...] + pwbe_ref[...]
    zg = zg * _sigmoid(zg)
    zg = zg * g2s_ref[...] + g2b_ref[...]
    gate = 1.0 / (1.0 + jnp.exp(-zg))           # exact reciprocal for the gate

    o_ref[...] = (zs * gate).reshape(TH, W, Co).astype(o_ref.dtype)


def _pick_row_tile(H, W, C, Co, itemsize, pad=1):
    # Budget the FULL per-step working set: double-buffered x / out blocks,
    # both f32 halo scratches, and in-flight f32 temporaries, against the
    # chip's real VMEM (128 MiB on v5e/v6e, 64 MiB on v7x).
    _, limit = _vmem_info()
    budget = limit // 2
    per_row = W * (2 * (C + 2 * Co) * itemsize     # dbl-buffered in/out blocks
                   + (C + Co) * 4                  # f32 halo scratches
                   + 6 * max(C, Co) * 4)           # acc / y / z f32 temporaries
    th = budget // max(1, per_row)
    th = int(max(8, min(th, 512)))
    th = min(th, _round_up(H + pad, 8))
    return max(8, _round_up(th, 8))


def _lram_tail(x_nhwc, a_h, a_w, short_p, end_p, g2s, g2b, *,
               ksize=3, row_tile=None):
    N, H, W, C = x_nhwc.shape
    assert ksize % 2 == 1 and ksize >= 3, "stride-1 odd kernels only (LRAM uses k=3)"
    pad = (ksize - 1) // 2
    dww_s, dwb_s, pww_s, pws_s, pwb_s = short_p
    dww_e, dwb_e, pww_e, pws_e, pwb_e = end_p
    Co = pww_s.shape[1]
    assert a_h.shape == (N, H, Co) and a_w.shape == (N, W, Co)

    TH = row_tile if row_tile is not None else _pick_row_tile(
        H, W, C, Co, x_nhwc.dtype.itemsize, pad)
    TH = max(8, _round_up(TH, 8))
    nTi = pl.cdiv(H, TH)            # input blocks that actually cover the image
    nT = pl.cdiv(H + pad, TH)       # output tiles (rows shifted down by `pad`)
    out_rows = nT * TH
    _, vlimit = _vmem_info()

    pww_s = pww_s.astype(_MM_DTYPE)
    pww_e = pww_e.astype(_MM_DTYPE)

    kern = functools.partial(_lram_tail_kernel, K=ksize, TH=TH, H=H, W=W,
                             C=C, Co=Co)
    const = lambda n, t: (0, 0)
    # NOTE: W should be a multiple of 8 for the in-kernel (TH,W,C)->(TH*W,C)
    # reshape to be a free view (it is correct either way).
    out = pl.pallas_call(
        kern,
        out_shape=jax.ShapeDtypeStruct((N, out_rows, W, Co), x_nhwc.dtype),
        grid=(N, nT),
        in_specs=[
            pl.BlockSpec((None, TH, W, C), lambda n, t: (n, jnp.minimum(t, nTi - 1), 0, 0)),
            pl.BlockSpec((None, TH, Co), lambda n, t: (n, jnp.minimum(t, nTi - 1), 0)),
            pl.BlockSpec((None, W, Co), lambda n, t: (n, 0, 0)),
            pl.BlockSpec((ksize * ksize, C), const),
            pl.BlockSpec((1, C), const),
            pl.BlockSpec((C, Co), const),
            pl.BlockSpec((1, Co), const),
            pl.BlockSpec((1, Co), const),
            pl.BlockSpec((ksize * ksize, Co), const),
            pl.BlockSpec((1, Co), const),
            pl.BlockSpec((Co, Co), const),
            pl.BlockSpec((1, Co), const),
            pl.BlockSpec((1, Co), const),
            pl.BlockSpec((1, Co), const),
            pl.BlockSpec((1, Co), const),
        ],
        out_specs=pl.BlockSpec((None, TH, W, Co), lambda n, t: (n, t, 0, 0)),
        scratch_shapes=[
            pltpu.VMEM((TH + 2 * pad, W + 2 * pad, C), jnp.float32),
            pltpu.VMEM((TH + 2 * pad, W + 2 * pad, Co), jnp.float32),
        ],
        compiler_params=pltpu.CompilerParams(
            dimension_semantics=("parallel", "arbitrary"),
            vmem_limit_bytes=vlimit),
    )(x_nhwc, a_h, a_w,
      dww_s, dwb_s.reshape(1, C), pww_s, pws_s.reshape(1, Co), pwb_s.reshape(1, Co),
      dww_e, dwb_e.reshape(1, Co), pww_e, pws_e.reshape(1, Co), pwb_e.reshape(1, Co),
      g2s.reshape(1, Co), g2b.reshape(1, Co))

    # Row de-shift; this slice fuses with the downstream NCHW transpose in XLA.
    return out[:, pad:pad + H, :, :]


# ---------------------------------------------------------------------------
# Parameter folding helpers (BaseConv = Conv2d -> BatchNorm2d(eps=1e-3) -> SiLU).
# ---------------------------------------------------------------------------
def _fold_dwconv_kxk(dp):
    dw_scale, dw_bias = _fold_bn(dp["dw_gamma"], dp["dw_beta"], dp["dw_mean"],
                                 dp["dw_var"], BN_EPS)
    pw_scale, pw_bias = _fold_bn(dp["pw_gamma"], dp["pw_beta"], dp["pw_mean"],
                                 dp["pw_var"], BN_EPS)
    c = dp["dw_w"].shape[0]
    k = dp["dw_w"].shape[-1]
    # (C,1,K,K) -> (K*K, C) with channels on lanes; fold the dw BN scale in.
    dww = jnp.transpose(dp["dw_w"][:, 0, :, :], (1, 2, 0)).reshape(k * k, c)
    dww = (dww * dw_scale[None, :]).astype(jnp.float32)
    pw_w_cc = jnp.transpose(dp["pw_w"][:, :, 0, 0], (1, 0)).astype(jnp.float32)
    return dww, dw_bias, pw_w_cc, pw_scale, pw_bias


def _fold_dwconv_1x1(dp):
    s, b = _fold_bn(dp["dw_gamma"], dp["dw_beta"], dp["dw_mean"], dp["dw_var"], BN_EPS)
    dw_scale = dp["dw_w"][:, 0, 0, 0].astype(jnp.float32) * s   # fold 1x1 dw weight
    pw_scale, pw_bias = _fold_bn(dp["pw_gamma"], dp["pw_beta"], dp["pw_mean"],
                                 dp["pw_var"], BN_EPS)
    pw_w_cc = jnp.transpose(dp["pw_w"][:, :, 0, 0], (1, 0)).astype(jnp.float32)
    return dw_scale, b, pw_w_cc, pw_scale, pw_bias


# ---------------------------------------------------------------------------
# Tiny XLA glue: SwitchNorm (eval) on channels-last (N, L, C).
# ---------------------------------------------------------------------------
def _switchnorm_eval(x, sn):
    mean_in = jnp.mean(x, axis=1, keepdims=True)                 # (N,1,C)
    var_in = jnp.var(x, axis=1, keepdims=True, ddof=1)           # torch .var() unbiased
    mean_ln = jnp.mean(mean_in, axis=2, keepdims=True)           # (N,1,1)
    temp = var_in + mean_in ** 2
    var_ln = jnp.mean(temp, axis=2, keepdims=True) - mean_ln ** 2
    mean_bn = sn["running_mean"].reshape(1, 1, -1)
    var_bn = sn["running_var"].reshape(1, 1, -1)
    mw = jax.nn.softmax(sn["mean_weight"])
    vw = jax.nn.softmax(sn["var_weight"])
    mean = mw[0] * mean_in + mw[1] * mean_ln + mw[2] * mean_bn
    var = vw[0] * var_in + vw[1] * var_ln + vw[2] * var_bn
    xn = (x - mean) / jnp.sqrt(var + SN_EPS)
    return xn * sn["weight"].reshape(1, 1, -1) + sn["bias"].reshape(1, 1, -1)


# ---------------------------------------------------------------------------
# LRAM forward (eval mode).  x: (N, inp, H, W) NCHW  ->  (N, oup, H, W).
# ---------------------------------------------------------------------------
def lram_forward(x_nchw, params, row_tile=None):
    N, C, H, W = x_nchw.shape
    p = params
    x = jnp.transpose(x_nchw, (0, 2, 3, 1))                    # NHWC, channels on lanes

    # TODO(synk): H/W average pooling and SwitchNorm/Serf act on tiny (N, H+W, C)
    # tensors and are left to XLA; the DWConv blocks run as Pallas kernels.
    x_h = jnp.mean(x, axis=2)                                  # (N, H, C) == AdaptiveAvgPool2d((H,1))
    x_w = jnp.mean(x, axis=1)                                  # (N, W, C) == AdaptiveAvgPool2d((1,W)).permute
    y0 = jnp.concatenate([x_h, x_w], axis=1)                   # (N, H+W, C)

    c1 = _fold_dwconv_1x1(p["dwconv1"])
    y = _dwsep_1x1(y0.reshape(N * (H + W), C), *c1, out_dtype=x.dtype)
    mip = y.shape[-1]
    y = y.reshape(N, H + W, mip)

    y = _switchnorm_eval(y, p["sn1"])
    y = y * lax.erf(jnp.log1p(jnp.exp(y)))                     # Serf activation

    # DWconv_h / DWconv_w in one fused pallas_call over the (H+W, mip) slab.
    ch = _fold_dwconv_1x1(p["dwconv_h"])
    cw = _fold_dwconv_1x1(p["dwconv_w"])
    a = _dwsep_hw(y, ch, cw, H, W, out_dtype=x.dtype)          # (N, H+W, oup)
    a_h, a_w = a[:, :H, :], a[:, H:, :]

    # Fused tail: prod, DWconv_end, bn2+sigmoid gate, DWconv_short, multiply.
    gs, gb = _fold_bn(p["bn2_gamma"], p["bn2_beta"], p["bn2_mean"], p["bn2_var"], BN2_EPS)
    cs = _fold_dwconv_kxk(p["dwconv_short"])
    ce = _fold_dwconv_kxk(p["dwconv_end"])
    out = _lram_tail(x, a_h, a_w, cs, ce, gs, gb, ksize=3, row_tile=row_tile)

    return jnp.transpose(out, (0, 3, 1, 2))                    # back to NCHW


# ---------------------------------------------------------------------------
# Pure-JAX reference (matches the PyTorch LRAM forward in eval mode).
# ---------------------------------------------------------------------------
def _ref_baseconv(x, w, gamma, beta, mean, var, k, groups):
    pad = (k - 1) // 2
    y = lax.conv_general_dilated(
        x, w, window_strides=(1, 1), padding=[(pad, pad), (pad, pad)],
        dimension_numbers=("NCHW", "OIHW", "NCHW"),
        feature_group_count=groups, precision=lax.Precision.HIGHEST)
    s = gamma / jnp.sqrt(var + BN_EPS)
    y = y * s[None, :, None, None] + (beta - mean * s)[None, :, None, None]
    return y * jax.nn.sigmoid(y)


def _ref_dwconv(x, dp, k):
    y = _ref_baseconv(x, dp["dw_w"], dp["dw_gamma"], dp["dw_beta"], dp["dw_mean"],
                      dp["dw_var"], k, groups=x.shape[1])
    return _ref_baseconv(y, dp["pw_w"], dp["pw_gamma"], dp["pw_beta"], dp["pw_mean"],
                         dp["pw_var"], 1, groups=1)


def _ref_switchnorm(x, sn):
    N, C, H, W = x.shape
    xr = x.reshape(N, C, -1)
    mean_in = jnp.mean(xr, axis=-1, keepdims=True)
    var_in = jnp.var(xr, axis=-1, keepdims=True, ddof=1)
    mean_ln = jnp.mean(mean_in, axis=1, keepdims=True)
    temp = var_in + mean_in ** 2
    var_ln = jnp.mean(temp, axis=1, keepdims=True) - mean_ln ** 2
    mean_bn = sn["running_mean"].reshape(1, C, 1)
    var_bn = sn["running_var"].reshape(1, C, 1)
    mw = jax.nn.softmax(sn["mean_weight"])
    vw = jax.nn.softmax(sn["var_weight"])
    mean = mw[0] * mean_in + mw[1] * mean_ln + mw[2] * mean_bn
    var = vw[0] * var_in + vw[1] * var_ln + vw[2] * var_bn
    xr = (xr - mean) / jnp.sqrt(var + SN_EPS)
    x = xr.reshape(N, C, H, W)
    return x * sn["weight"].reshape(1, C, 1, 1) + sn["bias"].reshape(1, C, 1, 1)


def _ref_lram(x, p):
    N, C, H, W = x.shape
    x_h = jnp.mean(x, axis=3, keepdims=True)                                  # (N,C,H,1)
    x_w = jnp.transpose(jnp.mean(x, axis=2, keepdims=True), (0, 1, 3, 2))     # (N,C,W,1)
    y = jnp.concatenate([x_h, x_w], axis=2)
    y = _ref_dwconv(y, p["dwconv1"], 1)
    y = _ref_switchnorm(y, p["sn1"])
    y = y * lax.erf(jnp.log1p(jnp.exp(y)))                                    # Serf
    x_h2 = y[:, :, :H, :]
    x_w2 = jnp.transpose(y[:, :, H:, :], (0, 1, 3, 2))
    a_h = _ref_dwconv(x_h2, p["dwconv_h"], 1)
    a_w = _ref_dwconv(x_w2, p["dwconv_w"], 1)
    out = _ref_dwconv(a_h * a_w, p["dwconv_end"], 3)
    s2 = p["bn2_gamma"] / jnp.sqrt(p["bn2_var"] + BN2_EPS)
    out = out * s2[None, :, None, None] + \
        (p["bn2_beta"] - p["bn2_mean"] * s2)[None, :, None, None]
    out = jax.nn.sigmoid(out)
    out_short = _ref_dwconv(x, p["dwconv_short"], 3)
    return out_short * out


# ---------------------------------------------------------------------------
# Deterministic synthetic parameters.
# ---------------------------------------------------------------------------
def _make_dwconv_params(key, cin, cout, k):
    ks = jax.random.split(key, 10)
    return dict(
        dw_w=jax.random.normal(ks[0], (cin, 1, k, k), jnp.float32) * (0.5 / k),
        dw_gamma=1.0 + 0.1 * jax.random.normal(ks[1], (cin,), jnp.float32),
        dw_beta=0.1 * jax.random.normal(ks[2], (cin,), jnp.float32),
        dw_mean=0.1 * jax.random.normal(ks[3], (cin,), jnp.float32),
        dw_var=jax.random.uniform(ks[4], (cin,), jnp.float32, 0.5, 1.5),
        pw_w=jax.random.normal(ks[5], (cout, cin, 1, 1), jnp.float32) * 0.4,
        pw_gamma=1.0 + 0.1 * jax.random.normal(ks[6], (cout,), jnp.float32),
        pw_beta=0.1 * jax.random.normal(ks[7], (cout,), jnp.float32),
        pw_mean=0.1 * jax.random.normal(ks[8], (cout,), jnp.float32),
        pw_var=jax.random.uniform(ks[9], (cout,), jnp.float32, 0.5, 1.5),
    )


def _make_switchnorm_params(key, c):
    ks = jax.random.split(key, 6)
    return dict(
        weight=1.0 + 0.1 * jax.random.normal(ks[0], (c,), jnp.float32),
        bias=0.1 * jax.random.normal(ks[1], (c,), jnp.float32),
        mean_weight=1.0 + 0.3 * jax.random.normal(ks[2], (3,), jnp.float32),
        var_weight=1.0 + 0.3 * jax.random.normal(ks[3], (3,), jnp.float32),
        running_mean=0.1 * jax.random.normal(ks[4], (c,), jnp.float32),
        running_var=jax.random.uniform(ks[5], (c,), jnp.float32, 0.5, 1.5),
    )


if __name__ == "__main__":
    # Small shapes consistent with the module (LRAM requires oup == inp).
    N, inp, H, W = 2, 4, 16, 16
    oup = inp
    mip = max(8, inp // 32)

    key = jax.random.PRNGKey(0)
    kx, k1, k2, k3, k4, k5, k6, k7 = jax.random.split(key, 8)
    x = jax.random.normal(kx, (N, inp, H, W), jnp.float32)

    kb = jax.random.split(k7, 4)
    params = dict(
        dwconv1=_make_dwconv_params(k1, inp, mip, 1),
        dwconv_h=_make_dwconv_params(k2, mip, oup, 1),
        dwconv_w=_make_dwconv_params(k3, mip, oup, 1),
        dwconv_short=_make_dwconv_params(k4, inp, oup, 3),
        dwconv_end=_make_dwconv_params(k5, inp, oup, 3),
        sn1=_make_switchnorm_params(k6, mip),
        bn2_gamma=1.0 + 0.1 * jax.random.normal(kb[0], (inp,), jnp.float32),
        bn2_beta=0.1 * jax.random.normal(kb[1], (inp,), jnp.float32),
        bn2_mean=0.1 * jax.random.normal(kb[2], (inp,), jnp.float32),
        bn2_var=jax.random.uniform(kb[3], (inp,), jnp.float32, 0.5, 1.5),
    )

    # row_tile=8 deliberately exercises the multi-tile halo-carry / clamped-tile
    # path (H=16 -> 3 row tiles including the shifted tail tile).
    lram_fn = jax.jit(functools.partial(lram_forward, row_tile=8))
    out = jax.block_until_ready(lram_fn(x, params))

    ref = _ref_lram(x, params)
    assert out.shape == (N, oup, H, W), out.shape
    err = float(jnp.max(jnp.abs(out - ref)))
    # Tolerance reflects single-pass bf16 MXU operands (f32 accumulation) and the
    # EUP approximate-reciprocal SiLU; the gate sigmoid uses an exact reciprocal.
    assert jnp.allclose(out, ref, rtol=3e-2, atol=3e-2), err

    print("KERNEL_OK")
</pallas_src>

<mosaic_0001>
module attributes {stable_mosaic.version = 11 : i64} {
  func.func @_dwsep_1x1_kernel(%arg0: i32, %arg1: memref<64x4xf32, #tpu.memory_space<vmem>>, %arg2: memref<1x4xf32, #tpu.memory_space<vmem>>, %arg3: memref<1x4xf32, #tpu.memory_space<vmem>>, %arg4: memref<4x8xbf16, #tpu.memory_space<vmem>>, %arg5: memref<1x8xf32, #tpu.memory_space<vmem>>, %arg6: memref<1x8xf32, #tpu.memory_space<vmem>>, %arg7: memref<64x8xf32, #tpu.memory_space<vmem>>) attributes {dimension_semantics = [#tpu.dimension_semantics<parallel>], iteration_bounds = array<i64: 1>, scalar_prefetch = 0 : i64, scratch_operands = 0 : i64, tpu.core_type = #tpu.core_type<tc>, window_params = [{transform_indices = @transform_0, window_bounds = array<i64: 64, 4>}, {pipeline_mode = #tpu.pipeline_mode<synchronous>, transform_indices = @transform_1, window_bounds = array<i64: 1, 4>}, {pipeline_mode = #tpu.pipeline_mode<synchronous>, transform_indices = @transform_2, window_bounds = array<i64: 1, 4>}, {pipeline_mode = #tpu.pipeline_mode<synchronous>, transform_indices = @transform_3, window_bounds = array<i64: 4, 8>}, {pipeline_mode = #tpu.pipeline_mode<synchronous>, transform_indices = @transform_4, window_bounds = array<i64: 1, 8>}, {pipeline_mode = #tpu.pipeline_mode<synchronous>, transform_indices = @transform_5, window_bounds = array<i64: 1, 8>}, {transform_indices = @transform_6, window_bounds = array<i64: 64, 8>}]} {
    %c0 = arith.constant 0 : index
    %c0_0 = arith.constant 0 : index
    %0 = vector.load %arg1[%c0, %c0_0] : memref<64x4xf32, #tpu.memory_space<vmem>>, vector<64x4xf32>
    %c0_1 = arith.constant 0 : index
    %c0_2 = arith.constant 0 : index
    %1 = vector.load %arg2[%c0_1, %c0_2] : memref<1x4xf32, #tpu.memory_space<vmem>>, vector<1x4xf32>
    %2 = vector.broadcast %1 : vector<1x4xf32> to vector<64x4xf32>
    %3 = arith.mulf %0, %2 : vector<64x4xf32>
    %c0_3 = arith.constant 0 : index
    %c0_4 = arith.constant 0 : index
    %4 = vector.load %arg3[%c0_3, %c0_4] : memref<1x4xf32, #tpu.memory_space<vmem>>, vector<1x4xf32>
    %5 = vector.broadcast %4 : vector<1x4xf32> to vector<64x4xf32>
    %6 = arith.addf %3, %5 : vector<64x4xf32>
    %cst = arith.constant 0.000000e+00 : f32
    %7 = vector.broadcast %cst : f32 to vector<64x4xf32>
    %8 = arith.subf %7, %6 : vector<64x4xf32>
    %9 = math.exp %8 : vector<64x4xf32>
    %cst_5 = arith.constant 1.000000e+00 : f32
    %10 = vector.broadcast %cst_5 : f32 to vector<64x4xf32>
    %11 = arith.addf %10, %9 : vector<64x4xf32>
    %12 = tpu.reciprocal %11 {approx = true} : vector<64x4xf32> -> vector<64x4xf32>
    %13 = arith.mulf %6, %12 : vector<64x4xf32>
    %14 = arith.truncf %13 : vector<64x4xf32> to vector<64x4xbf16>
    %c0_6 = arith.constant 0 : index
    %c0_7 = arith.constant 0 : index
    %15 = vector.load %arg4[%c0_6, %c0_7] : memref<4x8xbf16, #tpu.memory_space<vmem>>, vector<4x8xbf16>
    %cst_8 = arith.constant dense<0.000000e+00> : vector<64x8xf32>
    %16 = tpu.matmul %14, %15, %cst_8 {dimension_numbers = #tpu.dot_dimension_numbers<[1], [0], [0], [1], [0, 0, 1, 1], [], []>} : vector<64x4xbf16>, vector<4x8xbf16>, vector<64x8xf32> -> vector<64x8xf32>
    %c0_9 = arith.constant 0 : index
    %c0_10 = arith.constant 0 : index
    %17 = vector.load %arg5[%c0_9, %c0_10] : memref<1x8xf32, #tpu.memory_space<vmem>>, vector<1x8xf32>
    %18 = vector.broadcast %17 : vector<1x8xf32> to vector<64x8xf32>
    %19 = arith.mulf %16, %18 : vector<64x8xf32>
    %c0_11 = arith.constant 0 : index
    %c0_12 = arith.constant 0 : index
    %20 = vector.load %arg6[%c0_11, %c0_12] : memref<1x8xf32, #tpu.memory_space<vmem>>, vector<1x8xf32>
    %21 = vector.broadcast %20 : vector<1x8xf32> to vector<64x8xf32>
    %22 = arith.addf %19, %21 : vector<64x8xf32>
    %cst_13 = arith.constant 0.000000e+00 : f32
    %23 = vector.broadcast %cst_13 : f32 to vector<64x8xf32>
    %24 = arith.subf %23, %22 : vector<64x8xf32>
    %25 = math.exp %24 : vector<64x8xf32>
    %cst_14 = arith.constant 1.000000e+00 : f32
    %26 = vector.broadcast %cst_14 : f32 to vector<64x8xf32>
    %27 = arith.addf %26, %25 : vector<64x8xf32>
    %28 = tpu.reciprocal %27 {approx = true} : vector<64x8xf32> -> vector<64x8xf32>
    %29 = arith.mulf %22, %28 : vector<64x8xf32>
    %c0_15 = arith.constant 0 : index
    %c0_16 = arith.constant 0 : index
    %30 = vector.load %arg7[%c0_15, %c0_16] : memref<64x8xf32, #tpu.memory_space<vmem>>, vector<64x8xf32>
    tpu.vector_store %arg7[%c0_15, %c0_16], %29 {strides = array<i32>} : memref<64x8xf32, #tpu.memory_space<vmem>>, vector<64x8xf32>,
    return
  }
  func.func @transform_0(%arg0: i32) -> (i32, i32) {
    %c0_i32 = arith.constant 0 : i32
    %c0_i32_0 = arith.constant 0 : i32
    return %arg0, %c0_i32 : i32, i32
  }
  func.func @transform_1(%arg0: i32) -> (i32, i32) {
    %c0_i32 = arith.constant 0 : i32
    %c0_i32_0 = arith.constant 0 : i32
    %c0_i32_1 = arith.constant 0 : i32
    return %c0_i32, %c0_i32_0 : i32, i32
  }
  func.func @transform_2(%arg0: i32) -> (i32, i32) {
    %c0_i32 = arith.constant 0 : i32
    %c0_i32_0 = arith.constant 0 : i32
    %c0_i32_1 = arith.constant 0 : i32
    return %c0_i32, %c0_i32_0 : i32, i32
  }
  func.func @transform_3(%arg0: i32) -> (i32, i32) {
    %c0_i32 = arith.constant 0 : i32
    %c0_i32_0 = arith.constant 0 : i32
    %c0_i32_1 = arith.constant 0 : i32
    return %c0_i32, %c0_i32_0 : i32, i32
  }
  func.func @transform_4(%arg0: i32) -> (i32, i32) {
    %c0_i32 = arith.constant 0 : i32
    %c0_i32_0 = arith.constant 0 : i32
    %c0_i32_1 = arith.constant 0 : i32
    return %c0_i32, %c0_i32_0 : i32, i32
  }
  func.func @transform_5(%arg0: i32) -> (i32, i32) {
    %c0_i32 = arith.constant 0 : i32
    %c0_i32_0 = arith.constant 0 : i32
    %c0_i32_1 = arith.constant 0 : i32
    return %c0_i32, %c0_i32_0 : i32, i32
  }
  func.func @transform_6(%arg0: i32) -> (i32, i32) {
    %c0_i32 = arith.constant 0 : i32
    %c0_i32_0 = arith.constant 0 : i32
    return %arg0, %c0_i32 : i32, i32
  }
}

module attributes {stable_mosaic.version = 11 : i64} {
  func.func @_dwsep_hw_kernel(%arg0: i32, %arg1: memref<1x32x8xf32, #tpu.memory_space<vmem>>, %arg2: memref<32x8xf32, #tpu.memory_space<vmem>>, %arg3: memref<32x8xf32, #tpu.memory_space<vmem>>, %arg4: memref<8x8xbf16, #tpu.memory_space<vmem>>, %arg5: memref<1x8xf32, #tpu.memory_space<vmem>>, %arg6: memref<1x8xf32, #tpu.memory_space<vmem>>, %arg7: memref<1x32x4xf32, #tpu.memory_space<vmem>>) attributes {dimension_semantics = [#tpu.dimension_semantics<parallel>], iteration_bounds = array<i64: 2>, scalar_prefetch = 0 : i64, scratch_operands = 0 : i64, tpu.core_type = #tpu.core_type<tc>, window_params = [{transform_indices = @transform_0, window_bounds = array<i64: 1, 32, 8>}, {pipeline_mode = #tpu.pipeline_mode<synchronous>, transform_indices = @transform_1, window_bounds = array<i64: 32, 8>}, {pipeline_mode = #tpu.pipeline_mode<synchronous>, transform_indices = @transform_2, window_bounds = array<i64: 32, 8>}, {pipeline_mode = #tpu.pipeline_mode<synchronous>, transform_indices = @transform_3, window_bounds = array<i64: 8, 8>}, {pipeline_mode = #tpu.pipeline_mode<synchronous>, transform_indices = @transform_4, window_bounds = array<i64: 1, 8>}, {pipeline_mode = #tpu.pipeline_mode<synchronous>, transform_indices = @transform_5, window_bounds = array<i64: 1, 8>}, {transform_indices = @transform_6, window_bounds = array<i64: 1, 32, 4>}]} {
    %c0 = arith.constant 0 : index
    %c0_0 = arith.constant 0 : index
    %c0_1 = arith.constant 0 : index
    %0 = vector.load %arg1[%c0, %c0_0, %c0_1] : memref<1x32x8xf32, #tpu.memory_space<vmem>>, vector<1x32x8xf32>
    %1 = vector.shape_cast %0 : vector<1x32x8xf32> to vector<32x8xf32>
    %c0_2 = arith.constant 0 : index
    %c0_3 = arith.constant 0 : index
    %2 = vector.load %arg2[%c0_2, %c0_3] : memref<32x8xf32, #tpu.memory_space<vmem>>, vector<32x8xf32>
    %3 = arith.mulf %1, %2 : vector<32x8xf32>
    %c0_4 = arith.constant 0 : index
    %c0_5 = arith.constant 0 : index
    %4 = vector.load %arg3[%c0_4, %c0_5] : memref<32x8xf32, #tpu.memory_space<vmem>>, vector<32x8xf32>
    %5 = arith.addf %3, %4 : vector<32x8xf32>
    %cst = arith.constant 0.000000e+00 : f32
    %6 = vector.broadcast %cst : f32 to vector<32x8xf32>
    %7 = arith.subf %6, %5 : vector<32x8xf32>
    %8 = math.exp %7 : vector<32x8xf32>
    %cst_6 = arith.constant 1.000000e+00 : f32
    %9 = vector.broadcast %cst_6 : f32 to vector<32x8xf32>
    %10 = arith.addf %9, %8 : vector<32x8xf32>
    %11 = tpu.reciprocal %10 {approx = true} : vector<32x8xf32> -> vector<32x8xf32>
    %12 = arith.mulf %5, %11 : vector<32x8xf32>
    %13 = arith.truncf %12 : vector<32x8xf32> to vector<32x8xbf16>
    %c0_7 = arith.constant 0 : index
    %c0_8 = arith.constant 0 : index
    %14 = vector.load %arg4[%c0_7, %c0_8] : memref<8x8xbf16, #tpu.memory_space<vmem>>, vector<8x8xbf16>
    %cst_9 = arith.constant dense<0.000000e+00> : vector<32x8xf32>
    %15 = tpu.matmul %13, %14, %cst_9 {dimension_numbers = #tpu.dot_dimension_numbers<[1], [0], [0], [1], [0, 0, 1, 1], [], []>} : vector<32x8xbf16>, vector<8x8xbf16>, vector<32x8xf32> -> vector<32x8xf32>
    %c0_10 = arith.constant 0 : index
    %c0_11 = arith.constant 0 : index
    %16 = vector.load %arg5[%c0_10, %c0_11] : memref<1x8xf32, #tpu.memory_space<vmem>>, vector<1x8xf32>
    %17 = vector.broadcast %16 : vector<1x8xf32> to vector<32x8xf32>
    %18 = arith.mulf %15, %17 : vector<32x8xf32>
    %c0_12 = arith.constant 0 : index
    %c0_13 = arith.constant 0 : index
    %19 = vector.load %arg6[%c0_12, %c0_13] : memref<1x8xf32, #tpu.memory_space<vmem>>, vector<1x8xf32>
    %20 = vector.broadcast %19 : vector<1x8xf32> to vector<32x8xf32>
    %21 = arith.addf %18, %20 : vector<32x8xf32>
    %22 = tpu.iota {dimensions = array<i32: 0>} : vector<32x1xi32>
    %c16_i32 = arith.constant 16 : i32
    %23 = vector.broadcast %c16_i32 : i32 to vector<32x1xi32>
    %24 = arith.cmpi slt, %22, %23 : vector<32x1xi32>
    %25 = vector.extract_strided_slice %21 {offsets = [0, 0], sizes = [32, 4], strides = [1, 1]} : vector<32x8xf32> to vector<32x4xf32>
    %26 = vector.extract_strided_slice %21 {offsets = [0, 4], sizes = [32, 4], strides = [1, 1]} : vector<32x8xf32> to vector<32x4xf32>
    %27 = vector.shape_cast %24 : vector<32x1xi1> to vector<32x1xi1>
    %28 = vector.broadcast %27 : vector<32x1xi1> to vector<32x4xi1>
    %29 = arith.select %28, %25, %26 : vector<32x4xi1>, vector<32x4xf32>
    %cst_14 = arith.constant 0.000000e+00 : f32
    %30 = vector.broadcast %cst_14 : f32 to vector<32x4xf32>
    %31 = arith.subf %30, %29 : vector<32x4xf32>
    %32 = math.exp %31 : vector<32x4xf32>
    %cst_15 = arith.constant 1.000000e+00 : f32
    %33 = vector.broadcast %cst_15 : f32 to vector<32x4xf32>
    %34 = arith.addf %33, %32 : vector<32x4xf32>
    %35 = tpu.reciprocal %34 {approx = true} : vector<32x4xf32> -> vector<32x4xf32>
    %36 = arith.mulf %29, %35 : vector<32x4xf32>
    %c0_16 = arith.constant 0 : index
    %c0_17 = arith.constant 0 : index
    %c0_18 = arith.constant 0 : index
    %37 = vector.load %arg7[%c0_16, %c0_17, %c0_18] : memref<1x32x4xf32, #tpu.memory_space<vmem>>, vector<1x32x4xf32>
    %38 = vector.shape_cast %37 : vector<1x32x4xf32> to vector<32x4xf32>
    %39 = vector.shape_cast %36 : vector<32x4xf32> to vector<1x32x4xf32>
    tpu.vector_store %arg7[%c0_16, %c0_17, %c0_18], %39 {strides = array<i32>} : memref<1x32x4xf32, #tpu.memory_space<vmem>>, vector<1x32x4xf32>,
    return
  }
  func.func @transform_0(%arg0: i32) -> (i32, i32, i32) {
    %c0_i32 = arith.constant 0 : i32
    %c0_i32_0 = arith.constant 0 : i32
    %c0_i32_1 = arith.constant 0 : i32
    return %arg0, %c0_i32, %c0_i32_0 : i32, i32, i32
  }
  func.func @transform_1(%arg0: i32) -> (i32, i32) {
    %c0_i32 = arith.constant 0 : i32
    %c0_i32_0 = arith.constant 0 : i32
    %c0_i32_1 = arith.constant 0 : i32
    return %c0_i32, %c0_i32_0 : i32, i32
  }
  func.func @transform_2(%arg0: i32) -> (i32, i32) {
    %c0_i32 = arith.constant 0 : i32
    %c0_i32_0 = arith.constant 0 : i32
    %c0_i32_1 = arith.constant 0 : i32
    return %c0_i32, %c0_i32_0 : i32, i32
  }
  func.func @transform_3(%arg0: i32) -> (i32, i32) {
    %c0_i32 = arith.constant 0 : i32
    %c0_i32_0 = arith.constant 0 : i32
    %c0_i32_1 = arith.constant 0 : i32
    return %c0_i32, %c0_i32_0 : i32, i32
  }
  func.func @transform_4(%arg0: i32) -> (i32, i32) {
    %c0_i32 = arith.constant 0 : i32
    %c0_i32_0 = arith.constant 0 : i32
    %c0_i32_1 = arith.constant 0 : i32
    return %c0_i32, %c0_i32_0 : i32, i32
  }
  func.func @transform_5(%arg0: i32) -> (i32, i32) {
    %c0_i32 = arith.constant 0 : i32
    %c0_i32_0 = arith.constant 0 : i32
    %c0_i32_1 = arith.constant 0 : i32
    return %c0_i32, %c0_i32_0 : i32, i32
  }
  func.func @transform_6(%arg0: i32) -> (i32, i32, i32) {
    %c0_i32 = arith.constant 0 : i32
    %c0_i32_0 = arith.constant 0 : i32
    %c0_i32_1 = arith.constant 0 : i32
    return %arg0, %c0_i32, %c0_i32_0 : i32, i32, i32
  }
}

module attributes {stable_mosaic.version = 11 : i64} {
  func.func @_lram_tail_kernel(%arg0: i32, %arg1: i32, %arg2: memref<1x8x16x4xf32, #tpu.memory_space<vmem>>, %arg3: memref<1x8x4xf32, #tpu.memory_space<vmem>>, %arg4: memref<1x16x4xf32, #tpu.memory_space<vmem>>, %arg5: memref<9x4xf32, #tpu.memory_space<vmem>>, %arg6: memref<1x4xf32, #tpu.memory_space<vmem>>, %arg7: memref<4x4xbf16, #tpu.memory_space<vmem>>, %arg8: memref<1x4xf32, #tpu.memory_space<vmem>>, %arg9: memref<1x4xf32, #tpu.memory_space<vmem>>, %arg10: memref<9x4xf32, #tpu.memory_space<vmem>>, %arg11: memref<1x4xf32, #tpu.memory_space<vmem>>, %arg12: memref<4x4xbf16, #tpu.memory_space<vmem>>, %arg13: memref<1x4xf32, #tpu.memory_space<vmem>>, %arg14: memref<1x4xf32, #tpu.memory_space<vmem>>, %arg15: memref<1x4xf32, #tpu.memory_space<vmem>>, %arg16: memref<1x4xf32, #tpu.memory_space<vmem>>, %arg17: memref<1x8x16x4xf32, #tpu.memory_space<vmem>>, %arg18: memref<10x18x4xf32, #tpu.memory_space<vmem>>, %arg19: memref<10x18x4xf32, #tpu.memory_space<vmem>>) attributes {dimension_semantics = [#tpu.dimension_semantics<parallel>, #tpu.dimension_semantics<arbitrary>], iteration_bounds = array<i64: 2, 3>, scalar_prefetch = 0 : i64, scratch_operands = 2 : i64, tpu.core_type = #tpu.core_type<tc>, window_params = [{transform_indices = @transform_0, window_bounds = array<i64: 1, 8, 16, 4>}, {transform_indices = @transform_1, window_bounds = array<i64: 1, 8, 4>}, {transform_indices = @transform_2, window_bounds = array<i64: 1, 16, 4>}, {pipeline_mode = #tpu.pipeline_mode<synchronous>, transform_indices = @transform_3, window_bounds = array<i64: 9, 4>}, {pipeline_mode = #tpu.pipeline_mode<synchronous>, transform_indices = @transform_4, window_bounds = array<i64: 1, 4>}, {pipeline_mode = #tpu.pipeline_mode<synchronous>, transform_indices = @transform_5, window_bounds = array<i64: 4, 4>}, {pipeline_mode = #tpu.pipeline_mode<synchronous>, transform_indices = @transform_6, window_bounds = array<i64: 1, 4>}, {pipeline_mode = #tpu.pipeline_mode<synchronous>, transform_indices = @transform_7, window_bounds = array<i64: 1, 4>}, {pipeline_mode = #tpu.pipeline_mode<synchronous>, transform_indices = @transform_8, window_bounds = array<i64: 9, 4>}, {pipeline_mode = #tpu.pipeline_mode<synchronous>, transform_indices = @transform_9, window_bounds = array<i64: 1, 4>}, {pipeline_mode = #tpu.pipeline_mode<synchronous>, transform_indices = @transform_10, window_bounds = array<i64: 4, 4>}, {pipeline_mode = #tpu.pipeline_mode<synchronous>, transform_indices = @transform_11, window_bounds = array<i64: 1, 4>}, {pipeline_mode = #tpu.pipeline_mode<synchronous>, transform_indices = @transform_12, window_bounds = array<i64: 1, 4>}, {pipeline_mode = #tpu.pipeline_mode<synchronous>, transform_indices = @transform_13, window_bounds = array<i64: 1, 4>}, {pipeline_mode = #tpu.pipeline_mode<synchronous>, transform_indices = @transform_14, window_bounds = array<i64: 1, 4>}, {transform_indices = @transform_15, window_bounds = array<i64: 1, 8, 16, 4>}]} {
    %c0_i32 = arith.constant 0 : i32
    %0 = arith.cmpi eq, %arg1, %c0_i32 : i32
    %1 = arith.extui %0 : i1 to i32
    %c0_i32_0 = arith.constant 0 : i32
    %2 = arith.cmpi ne, %1, %c0_i32_0 : i32
    scf.if %2 {
      %cst_126 = arith.constant 0.000000e+00 : f32
      %239 = vector.broadcast %cst_126 : f32 to vector<10x18x4xf32>
      %c0_127 = arith.constant 0 : index
      %c0_128 = arith.constant 0 : index
      %c0_129 = arith.constant 0 : index
      %240 = vector.load %arg18[%c0_127, %c0_128, %c0_129] : memref<10x18x4xf32, #tpu.memory_space<vmem>>, vector<10x18x4xf32>
      tpu.vector_store %arg18[%c0_127, %c0_128, %c0_129], %239 {strides = array<i32>} : memref<10x18x4xf32, #tpu.memory_space<vmem>>, vector<10x18x4xf32>,
      %cst_130 = arith.constant 0.000000e+00 : f32
      %241 = vector.broadcast %cst_130 : f32 to vector<10x18x4xf32>
      %c0_131 = arith.constant 0 : index
      %c0_132 = arith.constant 0 : index
      %c0_133 = arith.constant 0 : index
      %242 = vector.load %arg19[%c0_131, %c0_132, %c0_133] : memref<10x18x4xf32, #tpu.memory_space<vmem>>, vector<10x18x4xf32>
      tpu.vector_store %arg19[%c0_131, %c0_132, %c0_133], %241 {strides = array<i32>} : memref<10x18x4xf32, #tpu.memory_space<vmem>>, vector<10x18x4xf32>,
    } else {
    }
    %c0 = arith.constant 0 : index
    %c0_1 = arith.constant 0 : index
    %c0_2 = arith.constant 0 : index
    %c0_3 = arith.constant 0 : index
    %3 = vector.load %arg2[%c0, %c0_1, %c0_2, %c0_3] : memref<1x8x16x4xf32, #tpu.memory_space<vmem>>, vector<1x8x16x4xf32>
    %4 = vector.shape_cast %3 : vector<1x8x16x4xf32> to vector<8x16x4xf32>
    %5 = tpu.iota {dimensions = array<i32: 0>} : vector<8x1xi32>
    %c8_i32 = arith.constant 8 : i32
    %6 = arith.muli %arg1, %c8_i32 : i32
    %7 = vector.broadcast %6 : i32 to vector<8x1xi32>
    %8 = arith.addi %5, %7 : vector<8x1xi32>
    %c16_i32 = arith.constant 16 : i32
    %9 = vector.broadcast %c16_i32 : i32 to vector<8x1xi32>
    %10 = arith.cmpi slt, %8, %9 : vector<8x1xi32>
    %c0_4 = arith.constant 0 : index
    %c0_5 = arith.constant 0 : index
    %c0_6 = arith.constant 0 : index
    %11 = vector.load %arg3[%c0_4, %c0_5, %c0_6] : memref<1x8x4xf32, #tpu.memory_space<vmem>>, vector<1x8x4xf32>
    %12 = vector.shape_cast %11 : vector<1x8x4xf32> to vector<8x4xf32>
    %cst = arith.constant 0.000000e+00 : f32
    %13 = vector.shape_cast %10 : vector<8x1xi1> to vector<8x1xi1>
    %14 = vector.broadcast %13 : vector<8x1xi1> to vector<8x4xi1>
    %15 = vector.broadcast %cst : f32 to vector<8x4xf32>
    %16 = arith.select %14, %12, %15 : vector<8x4xi1>, vector<8x4xf32>
    %c0_7 = arith.constant 0 : index
    %c0_8 = arith.constant 0 : index
    %c0_9 = arith.constant 0 : index
    %17 = vector.load %arg4[%c0_7, %c0_8, %c0_9] : memref<1x16x4xf32, #tpu.memory_space<vmem>>, vector<1x16x4xf32>
    %18 = vector.shape_cast %17 : vector<1x16x4xf32> to vector<16x4xf32>
    %19 = vector.shape_cast %16 : vector<8x4xf32> to vector<8x1x4xf32>
    %20 = vector.shape_cast %18 : vector<16x4xf32> to vector<1x16x4xf32>
    %21 = vector.broadcast %19 : vector<8x1x4xf32> to vector<8x16x4xf32>
    %22 = vector.broadcast %20 : vector<1x16x4xf32> to vector<8x16x4xf32>
    %23 = arith.mulf %21, %22 : vector<8x16x4xf32>
    %c2 = arith.constant 2 : index
    %c1 = arith.constant 1 : index
    %c0_10 = arith.constant 0 : index
    %24 = vector.load %arg18[%c2, %c1, %c0_10] : memref<10x18x4xf32, #tpu.memory_space<vmem>>, vector<8x16x4xf32>
    tpu.vector_store %arg18[%c2, %c1, %c0_10], %4 {strides = array<i32>} : memref<10x18x4xf32, #tpu.memory_space<vmem>>, vector<8x16x4xf32>,
    %c2_11 = arith.constant 2 : index
    %c1_12 = arith.constant 1 : index
    %c0_13 = arith.constant 0 : index
    %25 = vector.load %arg19[%c2_11, %c1_12, %c0_13] : memref<10x18x4xf32, #tpu.memory_space<vmem>>, vector<8x16x4xf32>
    tpu.vector_store %arg19[%c2_11, %c1_12, %c0_13], %23 {strides = array<i32>} : memref<10x18x4xf32, #tpu.memory_space<vmem>>, vector<8x16x4xf32>,
    %c8_i32_14 = arith.constant 8 : i32
    %26 = arith.muli %arg1, %c8_i32_14 : i32
    %c8_i32_15 = arith.constant 8 : i32
    %27 = arith.addi %26, %c8_i32_15 : i32
    %c16_i32_16 = arith.constant 16 : i32
    %28 = arith.cmpi sgt, %27, %c16_i32_16 : i32
    %29 = arith.extui %28 : i1 to i32
    %c0_i32_17 = arith.constant 0 : i32
    %30 = arith.cmpi ne, %29, %c0_i32_17 : i32
    scf.if %30 {
      %239 = tpu.iota {dimensions = array<i32: 0>} : vector<8x1x1xi32>
      %c8_i32_126 = arith.constant 8 : i32
      %240 = arith.muli %arg1, %c8_i32_126 : i32
      %241 = vector.broadcast %240 : i32 to vector<8x1x1xi32>
      %242 = arith.addi %239, %241 : vector<8x1x1xi32>
      %c16_i32_127 = arith.constant 16 : i32
      %243 = vector.broadcast %c16_i32_127 : i32 to vector<8x1x1xi32>
      %244 = arith.cmpi slt, %242, %243 : vector<8x1x1xi32>
      %c2_128 = arith.constant 2 : index
      %c1_129 = arith.constant 1 : index
      %c0_130 = arith.constant 0 : index
      %245 = vector.load %arg18[%c2_128, %c1_129, %c0_130] : memref<10x18x4xf32, #tpu.memory_space<vmem>>, vector<8x16x4xf32>
      %cst_131 = arith.constant 0.000000e+00 : f32
      %246 = vector.shape_cast %244 : vector<8x1x1xi1> to vector<8x1x1xi1>
      %247 = vector.broadcast %246 : vector<8x1x1xi1> to vector<8x16x4xi1>
      %248 = vector.broadcast %cst_131 : f32 to vector<8x16x4xf32>
      %249 = arith.select %247, %245, %248 : vector<8x16x4xi1>, vector<8x16x4xf32>
      %c2_132 = arith.constant 2 : index
      %c1_133 = arith.constant 1 : index
      %c0_134 = arith.constant 0 : index
      %250 = vector.load %arg18[%c2_132, %c1_133, %c0_134] : memref<10x18x4xf32, #tpu.memory_space<vmem>>, vector<8x16x4xf32>
      tpu.vector_store %arg18[%c2_132, %c1_133, %c0_134], %249 {strides = array<i32>} : memref<10x18x4xf32, #tpu.memory_space<vmem>>, vector<8x16x4xf32>,
    } else {
    }
    %c0_18 = arith.constant 0 : index
    %c0_19 = arith.constant 0 : index
    %31 = vector.load %arg5[%c0_18, %c0_19] : memref<9x4xf32, #tpu.memory_space<vmem>>, vector<9x4xf32>
    %c0_20 = arith.constant 0 : index
    %c0_21 = arith.constant 0 : index
    %32 = vector.load %arg10[%c0_20, %c0_21] : memref<9x4xf32, #tpu.memory_space<vmem>>, vector<9x4xf32>
    %cst_22 = arith.constant 0.000000e+00 : f32
    %33 = vector.broadcast %cst_22 : f32 to vector<8x16x4xf32>
    %cst_23 = arith.constant 0.000000e+00 : f32
    %34 = vector.broadcast %cst_23 : f32 to vector<8x16x4xf32>
    %c0_24 = arith.constant 0 : index
    %c0_25 = arith.constant 0 : index
    %c0_26 = arith.constant 0 : index
    %35 = vector.load %arg18[%c0_24, %c0_25, %c0_26] : memref<10x18x4xf32, #tpu.memory_space<vmem>>, vector<8x16x4xf32>
    %36 = vector.extract_strided_slice %31 {offsets = [0, 0], sizes = [1, 4], strides = [1, 1]} : vector<9x4xf32> to vector<1x4xf32>
    %37 = vector.shape_cast %36 : vector<1x4xf32> to vector<4xf32>
    %38 = vector.shape_cast %37 : vector<4xf32> to vector<1x1x4xf32>
    %39 = vector.broadcast %38 : vector<1x1x4xf32> to vector<8x16x4xf32>
    %40 = arith.mulf %35, %39 : vector<8x16x4xf32>
    %41 = arith.addf %33, %40 : vector<8x16x4xf32>
    %c0_27 = arith.constant 0 : index
    %c0_28 = arith.constant 0 : index
    %c0_29 = arith.constant 0 : index
    %42 = vector.load %arg19[%c0_27, %c0_28, %c0_29] : memref<10x18x4xf32, #tpu.memory_space<vmem>>, vector<8x16x4xf32>
    %43 = vector.extract_strided_slice %32 {offsets = [0, 0], sizes = [1, 4], strides = [1, 1]} : vector<9x4xf32> to vector<1x4xf32>
    %44 = vector.shape_cast %43 : vector<1x4xf32> to vector<4xf32>
    %45 = vector.shape_cast %44 : vector<4xf32> to vector<1x1x4xf32>
    %46 = vector.broadcast %45 : vector<1x1x4xf32> to vector<8x16x4xf32>
    %47 = arith.mulf %42, %46 : vector<8x16x4xf32>
    %48 = arith.addf %34, %47 : vector<8x16x4xf32>
    %c0_30 = arith.constant 0 : index
    %c1_31 = arith.constant 1 : index
    %c0_32 = arith.constant 0 : index
    %49 = vector.load %arg18[%c0_30, %c1_31, %c0_32] : memref<10x18x4xf32, #tpu.memory_space<vmem>>, vector<8x16x4xf32>
    %50 = vector.extract_strided_slice %31 {offsets = [1, 0], sizes = [1, 4], strides = [1, 1]} : vector<9x4xf32> to vector<1x4xf32>
    %51 = vector.shape_cast %50 : vector<1x4xf32> to vector<4xf32>
    %52 = vector.shape_cast %51 : vector<4xf32> to vector<1x1x4xf32>
    %53 = vector.broadcast %52 : vector<1x1x4xf32> to vector<8x16x4xf32>
    %54 = arith.mulf %49, %53 : vector<8x16x4xf32>
    %55 = arith.addf %41, %54 : vector<8x16x4xf32>
    %c0_33 = arith.constant 0 : index
    %c1_34 = arith.constant 1 : index
    %c0_35 = arith.constant 0 : index
    %56 = vector.load %arg19[%c0_33, %c1_34, %c0_35] : memref<10x18x4xf32, #tpu.memory_space<vmem>>, vector<8x16x4xf32>
    %57 = vector.extract_strided_slice %32 {offsets = [1, 0], sizes = [1, 4], strides = [1, 1]} : vector<9x4xf32> to vector<1x4xf32>
    %58 = vector.shape_cast %57 : vector<1x4xf32> to vector<4xf32>
    %59 = vector.shape_cast %58 : vector<4xf32> to vector<1x1x4xf32>
    %60 = vector.broadcast %59 : vector<1x1x4xf32> to vector<8x16x4xf32>
    %61 = arith.mulf %56, %60 : vector<8x16x4xf32>
    %62 = arith.addf %48, %61 : vector<8x16x4xf32>
    %c0_36 = arith.constant 0 : index
    %c2_37 = arith.constant 2 : index
    %c0_38 = arith.constant 0 : index
    %63 = vector.load %arg18[%c0_36, %c2_37, %c0_38] : memref<10x18x4xf32, #tpu.memory_space<vmem>>, vector<8x16x4xf32>
    %64 = vector.extract_strided_slice %31 {offsets = [2, 0], sizes = [1, 4], strides = [1, 1]} : vector<9x4xf32> to vector<1x4xf32>
    %65 = vector.shape_cast %64 : vector<1x4xf32> to vector<4xf32>
    %66 = vector.shape_cast %65 : vector<4xf32> to vector<1x1x4xf32>
    %67 = vector.broadcast %66 : vector<1x1x4xf32> to vector<8x16x4xf32>
    %68 = arith.mulf %63, %67 : vector<8x16x4xf32>
    %69 = arith.addf %55, %68 : vector<8x16x4xf32>
    %c0_39 = arith.constant 0 : index
    %c2_40 = arith.constant 2 : index
    %c0_41 = arith.constant 0 : index
    %70 = vector.load %arg19[%c0_39, %c2_40, %c0_41] : memref<10x18x4xf32, #tpu.memory_space<vmem>>, vector<8x16x4xf32>
    %71 = vector.extract_strided_slice %32 {offsets = [2, 0], sizes = [1, 4], strides = [1, 1]} : vector<9x4xf32> to vector<1x4xf32>
    %72 = vector.shape_cast %71 : vector<1x4xf32> to vector<4xf32>
    %73 = vector.shape_cast %72 : vector<4xf32> to vector<1x1x4xf32>
    %74 = vector.broadcast %73 : vector<1x1x4xf32> to vector<8x16x4xf32>
    %75 = arith.mulf %70, %74 : vector<8x16x4xf32>
    %76 = arith.addf %62, %75 : vector<8x16x4xf32>
    %c1_42 = arith.constant 1 : index
    %c0_43 = arith.constant 0 : index
    %c0_44 = arith.constant 0 : index
    %77 = vector.load %arg18[%c1_42, %c0_43, %c0_44] : memref<10x18x4xf32, #tpu.memory_space<vmem>>, vector<8x16x4xf32>
    %78 = vector.extract_strided_slice %31 {offsets = [3, 0], sizes = [1, 4], strides = [1, 1]} : vector<9x4xf32> to vector<1x4xf32>
    %79 = vector.shape_cast %78 : vector<1x4xf32> to vector<4xf32>
    %80 = vector.shape_cast %79 : vector<4xf32> to vector<1x1x4xf32>
    %81 = vector.broadcast %80 : vector<1x1x4xf32> to vector<8x16x4xf32>
    %82 = arith.mulf %77, %81 : vector<8x16x4xf32>
    %83 = arith.addf %69, %82 : vector<8x16x4xf32>
    %c1_45 = arith.constant 1 : index
    %c0_46 = arith.constant 0 : index
    %c0_47 = arith.constant 0 : index
    %84 = vector.load %arg19[%c1_45, %c0_46, %c0_47] : memref<10x18x4xf32, #tpu.memory_space<vmem>>, vector<8x16x4xf32>
    %85 = vector.extract_strided_slice %32 {offsets = [3, 0], sizes = [1, 4], strides = [1, 1]} : vector<9x4xf32> to vector<1x4xf32>
    %86 = vector.shape_cast %85 : vector<1x4xf32> to vector<4xf32>
    %87 = vector.shape_cast %86 : vector<4xf32> to vector<1x1x4xf32>
    %88 = vector.broadcast %87 : vector<1x1x4xf32> to vector<8x16x4xf32>
    %89 = arith.mulf %84, %88 : vector<8x16x4xf32>
    %90 = arith.addf %76, %89 : vector<8x16x4xf32>
    %c1_48 = arith.constant 1 : index
    %c1_49 = arith.constant 1 : index
    %c0_50 = arith.constant 0 : index
    %91 = vector.load %arg18[%c1_48, %c1_49, %c0_50] : memref<10x18x4xf32, #tpu.memory_space<vmem>>, vector<8x16x4xf32>
    %92 = vector.extract_strided_slice %31 {offsets = [4, 0], sizes = [1, 4], strides = [1, 1]} : vector<9x4xf32> to vector<1x4xf32>
    %93 = vector.shape_cast %92 : vector<1x4xf32> to vector<4xf32>
    %94 = vector.shape_cast %93 : vector<4xf32> to vector<1x1x4xf32>
    %95 = vector.broadcast %94 : vector<1x1x4xf32> to vector<8x16x4xf32>
    %96 = arith.mulf %91, %95 : vector<8x16x4xf32>
    %97 = arith.addf %83, %96 : vector<8x16x4xf32>
    %c1_51 = arith.constant 1 : index
    %c1_52 = arith.constant 1 : index
    %c0_53 = arith.constant 0 : index
    %98 = vector.load %arg19[%c1_51, %c1_52, %c0_53] : memref<10x18x4xf32, #tpu.memory_space<vmem>>, vector<8x16x4xf32>
    %99 = vector.extract_strided_slice %32 {offsets = [4, 0], sizes = [1, 4], strides = [1, 1]} : vector<9x4xf32> to vector<1x4xf32>
    %100 = vector.shape_cast %99 : vector<1x4xf32> to vector<4xf32>
    %101 = vector.shape_cast %100 : vector<4xf32> to vector<1x1x4xf32>
    %102 = vector.broadcast %101 : vector<1x1x4xf32> to vector<8x16x4xf32>
    %103 = arith.mulf %98, %102 : vector<8x16x4xf32>
    %104 = arith.addf %90, %103 : vector<8x16x4xf32>
    %c1_54 = arith.constant 1 : index
    %c2_55 = arith.constant 2 : index
    %c0_56 = arith.constant 0 : index
    %105 = vector.load %arg18[%c1_54, %c2_55, %c0_56] : memref<10x18x4xf32, #tpu.memory_space<vmem>>, vector<8x16x4xf32>
    %106 = vector.extract_strided_slice %31 {offsets = [5, 0], sizes = [1, 4], strides = [1, 1]} : vector<9x4xf32> to vector<1x4xf32>
    %107 = vector.shape_cast %106 : vector<1x4xf32> to vector<4xf32>
    %108 = vector.shape_cast %107 : vector<4xf32> to vector<1x1x4xf32>
    %109 = vector.broadcast %108 : vector<1x1x4xf32> to vector<8x16x4xf32>
    %110 = arith.mulf %105, %109 : vector<8x16x4xf32>
    %111 = arith.addf %97, %110 : vector<8x16x4xf32>
    %c1_57 = arith.constant 1 : index
    %c2_58 = arith.constant 2 : index
    %c0_59 = arith.constant 0 : index
    %112 = vector.load %arg19[%c1_57, %c2_58, %c0_59] : memref<10x18x4xf32, #tpu.memory_space<vmem>>, vector<8x16x4xf32>
    %113 = vector.extract_strided_slice %32 {offsets = [5, 0], sizes = [1, 4], strides = [1, 1]} : vector<9x4xf32> to vector<1x4xf32>
    %114 = vector.shape_cast %113 : vector<1x4xf32> to vector<4xf32>
    %115 = vector.shape_cast %114 : vector<4xf32> to vector<1x1x4xf32>
    %116 = vector.broadcast %115 : vector<1x1x4xf32> to vector<8x16x4xf32>
    %117 = arith.mulf %112, %116 : vector<8x16x4xf32>
    %118 = arith.addf %104, %117 : vector<8x16x4xf32>
    %c2_60 = arith.constant 2 : index
    %c0_61 = arith.constant 0 : index
    %c0_62 = arith.constant 0 : index
    %119 = vector.load %arg18[%c2_60, %c0_61, %c0_62] : memref<10x18x4xf32, #tpu.memory_space<vmem>>, vector<8x16x4xf32>
    %120 = vector.extract_strided_slice %31 {offsets = [6, 0], sizes = [1, 4], strides = [1, 1]} : vector<9x4xf32> to vector<1x4xf32>
    %121 = vector.shape_cast %120 : vector<1x4xf32> to vector<4xf32>
    %122 = vector.shape_cast %121 : vector<4xf32> to vector<1x1x4xf32>
    %123 = vector.broadcast %122 : vector<1x1x4xf32> to vector<8x16x4xf32>
    %124 = arith.mulf %119, %123 : vector<8x16x4xf32>
    %125 = arith.addf %111, %124 : vector<8x16x4xf32>
    %c2_63 = arith.constant 2 : index
    %c0_64 = arith.constant 0 : index
    %c0_65 = arith.constant 0 : index
    %126 = vector.load %arg19[%c2_63, %c0_64, %c0_65] : memref<10x18x4xf32, #tpu.memory_space<vmem>>, vector<8x16x4xf32>
    %127 = vector.extract_strided_slice %32 {offsets = [6, 0], sizes = [1, 4], strides = [1, 1]} : vector<9x4xf32> to vector<1x4xf32>
    %128 = vector.shape_cast %127 : vector<1x4xf32> to vector<4xf32>
    %129 = vector.shape_cast %128 : vector<4xf32> to vector<1x1x4xf32>
    %130 = vector.broadcast %129 : vector<1x1x4xf32> to vector<8x16x4xf32>
    %131 = arith.mulf %126, %130 : vector<8x16x4xf32>
    %132 = arith.addf %118, %131 : vector<8x16x4xf32>
    %c2_66 = arith.constant 2 : index
    %c1_67 = arith.constant 1 : index
    %c0_68 = arith.constant 0 : index
    %133 = vector.load %arg18[%c2_66, %c1_67, %c0_68] : memref<10x18x4xf32, #tpu.memory_space<vmem>>, vector<8x16x4xf32>
    %134 = vector.extract_strided_slice %31 {offsets = [7, 0], sizes = [1, 4], strides = [1, 1]} : vector<9x4xf32> to vector<1x4xf32>
    %135 = vector.shape_cast %134 : vector<1x4xf32> to vector<4xf32>
    %136 = vector.shape_cast %135 : vector<4xf32> to vector<1x1x4xf32>
    %137 = vector.broadcast %136 : vector<1x1x4xf32> to vector<8x16x4xf32>
    %138 = arith.mulf %133, %137 : vector<8x16x4xf32>
    %139 = arith.addf %125, %138 : vector<8x16x4xf32>
    %c2_69 = arith.constant 2 : index
    %c1_70 = arith.constant 1 : index
    %c0_71 = arith.constant 0 : index
    %140 = vector.load %arg19[%c2_69, %c1_70, %c0_71] : memref<10x18x4xf32, #tpu.memory_space<vmem>>, vector<8x16x4xf32>
    %141 = vector.extract_strided_slice %32 {offsets = [7, 0], sizes = [1, 4], strides = [1, 1]} : vector<9x4xf32> to vector<1x4xf32>
    %142 = vector.shape_cast %141 : vector<1x4xf32> to vector<4xf32>
    %143 = vector.shape_cast %142 : vector<4xf32> to vector<1x1x4xf32>
    %144 = vector.broadcast %143 : vector<1x1x4xf32> to vector<8x16x4xf32>
    %145 = arith.mulf %140, %144 : vector<8x16x4xf32>
    %146 = arith.addf %132, %145 : vector<8x16x4xf32>
    %c2_72 = arith.constant 2 : index
    %c2_73 = arith.constant 2 : index
    %c0_74 = arith.constant 0 : index
    %147 = vector.load %arg18[%c2_72, %c2_73, %c0_74] : memref<10x18x4xf32, #tpu.memory_space<vmem>>, vector<8x16x4xf32>
    %148 = vector.extract_strided_slice %31 {offsets = [8, 0], sizes = [1, 4], strides = [1, 1]} : vector<9x4xf32> to vector<1x4xf32>
    %149 = vector.shape_cast %148 : vector<1x4xf32> to vector<4xf32>
    %150 = vector.shape_cast %149 : vector<4xf32> to vector<1x1x4xf32>
    %151 = vector.broadcast %150 : vector<1x1x4xf32> to vector<8x16x4xf32>
    %152 = arith.mulf %147, %151 : vector<8x16x4xf32>
    %153 = arith.addf %139, %152 : vector<8x16x4xf32>
    %c2_75 = arith.constant 2 : index
    %c2_76 = arith.constant 2 : index
    %c0_77 = arith.constant 0 : index
    %154 = vector.load %arg19[%c2_75, %c2_76, %c0_77] : memref<10x18x4xf32, #tpu.memory_space<vmem>>, vector<8x16x4xf32>
    %155 = vector.extract_strided_slice %32 {offsets = [8, 0], sizes = [1, 4], strides = [1, 1]} : vector<9x4xf32> to vector<1x4xf32>
    %156 = vector.shape_cast %155 : vector<1x4xf32> to vector<4xf32>
    %157 = vector.shape_cast %156 : vector<4xf32> to vector<1x1x4xf32>
    %158 = vector.broadcast %157 : vector<1x1x4xf32> to vector<8x16x4xf32>
    %159 = arith.mulf %154, %158 : vector<8x16x4xf32>
    %160 = arith.addf %146, %159 : vector<8x16x4xf32>
    %c8 = arith.constant 8 : index
    %c1_78 = arith.constant 1 : index
    %c0_79 = arith.constant 0 : index
    %161 = vector.load %arg18[%c8, %c1_78, %c0_79] : memref<10x18x4xf32, #tpu.memory_space<vmem>>, vector<2x16x4xf32>
    %c0_80 = arith.constant 0 : index
    %c1_81 = arith.constant 1 : index
    %c0_82 = arith.constant 0 : index
    %162 = vector.load %arg18[%c0_80, %c1_81, %c0_82] : memref<10x18x4xf32, #tpu.memory_space<vmem>>, vector<2x16x4xf32>
    tpu.vector_store %arg18[%c0_80, %c1_81, %c0_82], %161 {strides = array<i32>} : memref<10x18x4xf32, #tpu.memory_space<vmem>>, vector<2x16x4xf32>,
    %c8_83 = arith.constant 8 : index
    %c1_84 = arith.constant 1 : index
    %c0_85 = arith.constant 0 : index
    %163 = vector.load %arg19[%c8_83, %c1_84, %c0_85] : memref<10x18x4xf32, #tpu.memory_space<vmem>>, vector<2x16x4xf32>
    %c0_86 = arith.constant 0 : index
    %c1_87 = arith.constant 1 : index
    %c0_88 = arith.constant 0 : index
    %164 = vector.load %arg19[%c0_86, %c1_87, %c0_88] : memref<10x18x4xf32, #tpu.memory_space<vmem>>, vector<2x16x4xf32>
    tpu.vector_store %arg19[%c0_86, %c1_87, %c0_88], %163 {strides = array<i32>} : memref<10x18x4xf32, #tpu.memory_space<vmem>>, vector<2x16x4xf32>,
    %c0_89 = arith.constant 0 : index
    %c0_90 = arith.constant 0 : index
    %165 = vector.load %arg6[%c0_89, %c0_90] : memref<1x4xf32, #tpu.memory_space<vmem>>, vector<1x4xf32>
    %166 = vector.shape_cast %165 : vector<1x4xf32> to vector<1x1x4xf32>
    %167 = vector.broadcast %166 : vector<1x1x4xf32> to vector<8x16x4xf32>
    %168 = arith.addf %153, %167 : vector<8x16x4xf32>
    %cst_91 = arith.constant 0.000000e+00 : f32
    %169 = vector.broadcast %cst_91 : f32 to vector<8x16x4xf32>
    %170 = arith.subf %169, %168 : vector<8x16x4xf32>
    %171 = math.exp %170 : vector<8x16x4xf32>
    %cst_92 = arith.constant 1.000000e+00 : f32
    %172 = vector.broadcast %cst_92 : f32 to vector<8x16x4xf32>
    %173 = arith.addf %172, %171 : vector<8x16x4xf32>
    %174 = tpu.reciprocal %173 {approx = true} : vector<8x16x4xf32> -> vector<8x16x4xf32>
    %175 = arith.mulf %168, %174 : vector<8x16x4xf32>
    %176 = vector.shape_cast %175 : vector<8x16x4xf32> to vector<128x4xf32>
    %177 = arith.truncf %176 : vector<128x4xf32> to vector<128x4xbf16>
    %c0_93 = arith.constant 0 : index
    %c0_94 = arith.constant 0 : index
    %178 = vector.load %arg7[%c0_93, %c0_94] : memref<4x4xbf16, #tpu.memory_space<vmem>>, vector<4x4xbf16>
    %cst_95 = arith.constant dense<0.000000e+00> : vector<128x4xf32>
    %179 = tpu.matmul %177, %178, %cst_95 {dimension_numbers = #tpu.dot_dimension_numbers<[1], [0], [0], [1], [0, 0, 1, 1], [], []>} : vector<128x4xbf16>, vector<4x4xbf16>, vector<128x4xf32> -> vector<128x4xf32>
    %c0_96 = arith.constant 0 : index
    %c0_97 = arith.constant 0 : index
    %180 = vector.load %arg8[%c0_96, %c0_97] : memref<1x4xf32, #tpu.memory_space<vmem>>, vector<1x4xf32>
    %181 = vector.broadcast %180 : vector<1x4xf32> to vector<128x4xf32>
    %182 = arith.mulf %179, %181 : vector<128x4xf32>
    %c0_98 = arith.constant 0 : index
    %c0_99 = arith.constant 0 : index
    %183 = vector.load %arg9[%c0_98, %c0_99] : memref<1x4xf32, #tpu.memory_space<vmem>>, vector<1x4xf32>
    %184 = vector.broadcast %183 : vector<1x4xf32> to vector<128x4xf32>
    %185 = arith.addf %182, %184 : vector<128x4xf32>
    %cst_100 = arith.constant 0.000000e+00 : f32
    %186 = vector.broadcast %cst_100 : f32 to vector<128x4xf32>
    %187 = arith.subf %186, %185 : vector<128x4xf32>
    %188 = math.exp %187 : vector<128x4xf32>
    %cst_101 = arith.constant 1.000000e+00 : f32
    %189 = vector.broadcast %cst_101 : f32 to vector<128x4xf32>
    %190 = arith.addf %189, %188 : vector<128x4xf32>
    %191 = tpu.reciprocal %190 {approx = true} : vector<128x4xf32> -> vector<128x4xf32>
    %192 = arith.mulf %185, %191 : vector<128x4xf32>
    %c0_102 = arith.constant 0 : index
    %c0_103 = arith.constant 0 : index
    %193 = vector.load %arg11[%c0_102, %c0_103] : memref<1x4xf32, #tpu.memory_space<vmem>>, vector<1x4xf32>
    %194 = vector.shape_cast %193 : vector<1x4xf32> to vector<1x1x4xf32>
    %195 = vector.broadcast %194 : vector<1x1x4xf32> to vector<8x16x4xf32>
    %196 = arith.addf %160, %195 : vector<8x16x4xf32>
    %cst_104 = arith.constant 0.000000e+00 : f32
    %197 = vector.broadcast %cst_104 : f32 to vector<8x16x4xf32>
    %198 = arith.subf %197, %196 : vector<8x16x4xf32>
    %199 = math.exp %198 : vector<8x16x4xf32>
    %cst_105 = arith.constant 1.000000e+00 : f32
    %200 = vector.broadcast %cst_105 : f32 to vector<8x16x4xf32>
    %201 = arith.addf %200, %199 : vector<8x16x4xf32>
    %202 = tpu.reciprocal %201 {approx = true} : vector<8x16x4xf32> -> vector<8x16x4xf32>
    %203 = arith.mulf %196, %202 : vector<8x16x4xf32>
    %204 = vector.shape_cast %203 : vector<8x16x4xf32> to vector<128x4xf32>
    %205 = arith.truncf %204 : vector<128x4xf32> to vector<128x4xbf16>
    %c0_106 = arith.constant 0 : index
    %c0_107 = arith.constant 0 : index
    %206 = vector.load %arg12[%c0_106, %c0_107] : memref<4x4xbf16, #tpu.memory_space<vmem>>, vector<4x4xbf16>
    %cst_108 = arith.constant dense<0.000000e+00> : vector<128x4xf32>
    %207 = tpu.matmul %205, %206, %cst_108 {dimension_numbers = #tpu.dot_dimension_numbers<[1], [0], [0], [1], [0, 0, 1, 1], [], []>} : vector<128x4xbf16>, vector<4x4xbf16>, vector<128x4xf32> -> vector<128x4xf32>
    %c0_109 = arith.constant 0 : index
    %c0_110 = arith.constant 0 : index
    %208 = vector.load %arg13[%c0_109, %c0_110] : memref<1x4xf32, #tpu.memory_space<vmem>>, vector<1x4xf32>
    %209 = vector.broadcast %208 : vector<1x4xf32> to vector<128x4xf32>
    %210 = arith.mulf %207, %209 : vector<128x4xf32>
    %c0_111 = arith.constant 0 : index
    %c0_112 = arith.constant 0 : index
    %211 = vector.load %arg14[%c0_111, %c0_112] : memref<1x4xf32, #tpu.memory_space<vmem>>, vector<1x4xf32>
    %212 = vector.broadcast %211 : vector<1x4xf32> to vector<128x4xf32>
    %213 = arith.addf %210, %212 : vector<128x4xf32>
    %cst_113 = arith.constant 0.000000e+00 : f32
    %214 = vector.broadcast %cst_113 : f32 to vector<128x4xf32>
    %215 = arith.subf %214, %213 : vector<128x4xf32>
    %216 = math.exp %215 : vector<128x4xf32>
    %cst_114 = arith.constant 1.000000e+00 : f32
    %217 = vector.broadcast %cst_114 : f32 to vector<128x4xf32>
    %218 = arith.addf %217, %216 : vector<128x4xf32>
    %219 = tpu.reciprocal %218 {approx = true} : vector<128x4xf32> -> vector<128x4xf32>
    %220 = arith.mulf %213, %219 : vector<128x4xf32>
    %c0_115 = arith.constant 0 : index
    %c0_116 = arith.constant 0 : index
    %221 = vector.load %arg15[%c0_115, %c0_116] : memref<1x4xf32, #tpu.memory_space<vmem>>, vector<1x4xf32>
    %222 = vector.broadcast %221 : vector<1x4xf32> to vector<128x4xf32>
    %223 = arith.mulf %220, %222 : vector<128x4xf32>
    %c0_117 = arith.constant 0 : index
    %c0_118 = arith.constant 0 : index
    %224 = vector.load %arg16[%c0_117, %c0_118] : memref<1x4xf32, #tpu.memory_space<vmem>>, vector<1x4xf32>
    %225 = vector.broadcast %224 : vector<1x4xf32> to vector<128x4xf32>
    %226 = arith.addf %223, %225 : vector<128x4xf32>
    %cst_119 = arith.constant 0.000000e+00 : f32
    %227 = vector.broadcast %cst_119 : f32 to vector<128x4xf32>
    %228 = arith.subf %227, %226 : vector<128x4xf32>
    %229 = math.exp %228 : vector<128x4xf32>
    %cst_120 = arith.constant 1.000000e+00 : f32
    %230 = vector.broadcast %cst_120 : f32 to vector<128x4xf32>
    %231 = arith.addf %230, %229 : vector<128x4xf32>
    %cst_121 = arith.constant 1.000000e+00 : f32
    %232 = vector.broadcast %cst_121 : f32 to vector<128x4xf32>
    %233 = arith.divf %232, %231 : vector<128x4xf32>
    %234 = arith.mulf %192, %233 : vector<128x4xf32>
    %235 = vector.shape_cast %234 : vector<128x4xf32> to vector<8x16x4xf32>
    %c0_122 = arith.constant 0 : index
    %c0_123 = arith.constant 0 : index
    %c0_124 = arith.constant 0 : index
    %c0_125 = arith.constant 0 : index
    %236 = vector.load %arg17[%c0_122, %c0_123, %c0_124, %c0_125] : memref<1x8x16x4xf32, #tpu.memory_space<vmem>>, vector<1x8x16x4xf32>
    %237 = vector.shape_cast %236 : vector<1x8x16x4xf32> to vector<8x16x4xf32>
    %238 = vector.shape_cast %235 : vector<8x16x4xf32> to vector<1x8x16x4xf32>
    tpu.vector_store %arg17[%c0_122, %c0_123, %c0_124, %c0_125], %238 {strides = array<i32>} : memref<1x8x16x4xf32, #tpu.memory_space<vmem>>, vector<1x8x16x4xf32>,
    return
  }
  func.func @transform_0(%arg0: i32, %arg1: i32) -> (i32, i32, i32, i32) {
    %c1_i32 = arith.constant 1 : i32
    %0 = arith.minsi %arg1, %c1_i32 : i32
    %c0_i32 = arith.constant 0 : i32
    %c0_i32_0 = arith.constant 0 : i32
    %c0_i32_1 = arith.constant 0 : i32
    return %arg0, %0, %c0_i32, %c0_i32_0 : i32, i32, i32, i32
  }
  func.func @transform_1(%arg0: i32, %arg1: i32) -> (i32, i32, i32) {
    %c1_i32 = arith.constant 1 : i32
    %0 = arith.minsi %arg1, %c1_i32 : i32
    %c0_i32 = arith.constant 0 : i32
    %c0_i32_0 = arith.constant 0 : i32
    return %arg0, %0, %c0_i32 : i32, i32, i32
  }
  func.func @transform_2(%arg0: i32, %arg1: i32) -> (i32, i32, i32) {
    %c0_i32 = arith.constant 0 : i32
    %c0_i32_0 = arith.constant 0 : i32
    %c0_i32_1 = arith.constant 0 : i32
    return %arg0, %c0_i32, %c0_i32_0 : i32, i32, i32
  }
  func.func @transform_3(%arg0: i32, %arg1: i32) -> (i32, i32) {
    %c0_i32 = arith.constant 0 : i32
    %c0_i32_0 = arith.constant 0 : i32
    %c0_i32_1 = arith.constant 0 : i32
    return %c0_i32, %c0_i32_0 : i32, i32
  }
  func.func @transform_4(%arg0: i32, %arg1: i32) -> (i32, i32) {
    %c0_i32 = arith.constant 0 : i32
    %c0_i32_0 = arith.constant 0 : i32
    %c0_i32_1 = arith.constant 0 : i32
    return %c0_i32, %c0_i32_0 : i32, i32
  }
  func.func @transform_5(%arg0: i32, %arg1: i32) -> (i32, i32) {
    %c0_i32 = arith.constant 0 : i32
    %c0_i32_0 = arith.constant 0 : i32
    %c0_i32_1 = arith.constant 0 : i32
    return %c0_i32, %c0_i32_0 : i32, i32
  }
  func.func @transform_6(%arg0: i32, %arg1: i32) -> (i32, i32) {
    %c0_i32 = arith.constant 0 : i32
    %c0_i32_0 = arith.constant 0 : i32
    %c0_i32_1 = arith.constant 0 : i32
    return %c0_i32, %c0_i32_0 : i32, i32
  }
  func.func @transform_7(%arg0: i32, %arg1: i32) -> (i32, i32) {
    %c0_i32 = arith.constant 0 : i32
    %c0_i32_0 = arith.constant 0 : i32
    %c0_i32_1 = arith.constant 0 : i32
    return %c0_i32, %c0_i32_0 : i32, i32
  }
  func.func @transform_8(%arg0: i32, %arg1: i32) -> (i32, i32) {
    %c0_i32 = arith.constant 0 : i32
    %c0_i32_0 = arith.constant 0 : i32
    %c0_i32_1 = arith.constant 0 : i32
    return %c0_i32, %c0_i32_0 : i32, i32
  }
  func.func @transform_9(%arg0: i32, %arg1: i32) -> (i32, i32) {
    %c0_i32 = arith.constant 0 : i32
    %c0_i32_0 = arith.constant 0 : i32
    %c0_i32_1 = arith.constant 0 : i32
    return %c0_i32, %c0_i32_0 : i32, i32
  }
  func.func @transform_10(%arg0: i32, %arg1: i32) -> (i32, i32) {
    %c0_i32 = arith.constant 0 : i32
    %c0_i32_0 = arith.constant 0 : i32
    %c0_i32_1 = arith.constant 0 : i32
    return %c0_i32, %c0_i32_0 : i32, i32
  }
  func.func @transform_11(%arg0: i32, %arg1: i32) -> (i32, i32) {
    %c0_i32 = arith.constant 0 : i32
    %c0_i32_0 = arith.constant 0 : i32
    %c0_i32_1 = arith.constant 0 : i32
    return %c0_i32, %c0_i32_0 : i32, i32
  }
  func.func @transform_12(%arg0: i32, %arg1: i32) -> (i32, i32) {
    %c0_i32 = arith.constant 0 : i32
    %c0_i32_0 = arith.constant 0 : i32
    %c0_i32_1 = arith.constant 0 : i32
    return %c0_i32, %c0_i32_0 : i32, i32
  }
  func.func @transform_13(%arg0: i32, %arg1: i32) -> (i32, i32) {
    %c0_i32 = arith.constant 0 : i32
    %c0_i32_0 = arith.constant 0 : i32
    %c0_i32_1 = arith.constant 0 : i32
    return %c0_i32, %c0_i32_0 : i32, i32
  }
  func.func @transform_14(%arg0: i32, %arg1: i32) -> (i32, i32) {
    %c0_i32 = arith.constant 0 : i32
    %c0_i32_0 = arith.constant 0 : i32
    %c0_i32_1 = arith.constant 0 : i32
    return %c0_i32, %c0_i32_0 : i32, i32
  }
  func.func @transform_15(%arg0: i32, %arg1: i32) -> (i32, i32, i32, i32) {
    %c0_i32 = arith.constant 0 : i32
    %c0_i32_0 = arith.constant 0 : i32
    %c0_i32_1 = arith.constant 0 : i32
    return %arg0, %arg1, %c0_i32, %c0_i32_0 : i32, i32, i32, i32
  }
}

</mosaic_0001>

<bundles_post_ra>
// kernel: lram_forward.3
= control target key start
LH: loop header
LB: loop body
LE: loop exit
PB: predicated region body
PF: predicated region fallthrough
CT: control target
= control target key end

     0   :  { %vm122_vm0 = vcmask 1041408   ;;  %vm109_vm1 = vcmask 31744   ;;  %vm227_vm2 = vcmask 64512   ;;  %s449_s3 = inlined_call_operand.vmem [shape: bf16[4,8], index: 3, kind: input, shape index: {}]   ;;  %s450_s0 = inlined_call_operand.vmem [shape: f32[64,4], index: 0, kind: input, shape index: {}]   ;;  %s451_s1 = inlined_call_operand.vmem [shape: f32[1,4], index: 1, kind: input, shape index: {}]   ;;  %s452_s2 = inlined_call_operand.vmem [shape: f32[1,4], index: 2, kind: input, shape index: {}]   ;;  %s453_s4 = inlined_call_operand.vmem [shape: f32[1,8], index: 4, kind: input, shape index: {}]   ;;  %s454_s5 = inlined_call_operand.vmem [shape: f32[1,8], index: 5, kind: input, shape index: {}]   ;;  %s455_s6 = inlined_call_operand.vmem [shape: f32[64,8], index: 6, kind: output, shape index: {}]  }
   0x1   :  { %v108_v0 = vld [vmem:[%s449_s3] sm:$0x3]  ;;  %v25_v2 = vld [vmem:[%s450_s0 + $0x8] sm:$0xff]  ;;  %v26_v5 = vld [vmem:[%s450_s0 + $0x10] sm:$0xff] }
   0x2   :  { %v24_v1 = vld [vmem:[%s450_s0] sm:$0xff]  ;;  %v124_v3 = vsel %vm122_vm0, %v108_v0, 0  ;;  %v27_v7 = vld [vmem:[%s450_s0 + $0x18] sm:$0xff]  ;;  %v29_v12 = vld [vmem:[%s450_s0 + $0x28] sm:$0xff] }
   0x3   :  { %v247_v4 = vld [vmem:[%s451_s1] ss:$0 sm:$0xff]  ;;  %133 = vmatpush.bf16.msra.mxu0 %v124_v3  ;;  %244 = vmatpush.bf16.msra.mxu1 %v124_v3  ;;  %v30_v13 = vld [vmem:[%s450_s0 + $0x30] sm:$0xff]  ;;  %v31_v17 = vld [vmem:[%s450_s0 + $0x38] sm:$0xff] }
   0x4   :  { %v248_v6 = vld [vmem:[%s452_s2] ss:$0 sm:$0xff]  ;;  %245 = vmatpush.bf16.msra.mxu2 %v124_v3  ;;  %246 = vmatpush.bf16.msra.mxu3 %v124_v3  ;;  %v36_v8 = vmul.f32 %v247_v4, %v24_v1  ;;  %v37_v9 = vmul.f32 %v247_v4, %v25_v2  ;;  %v38_v10 = vmul.f32 %v247_v4, %v26_v5 }
   0x5   :  { %v28_v11 = vld [vmem:[%s450_s0 + $0x20] sm:$0xff]  ;;  %v39_v14 = vmul.f32 %v247_v4, %v27_v7  ;;  %v41_v16 = vmul.f32 %v247_v4, %v29_v12  ;;  %v42_v18 = vmul.f32 %v247_v4, %v30_v13  ;;  %v43_v22 = vmul.f32 %v247_v4, %v31_v17 }
   0x6   :  { %v40_v15 = vmul.f32 %v247_v4, %v28_v11  ;;  %v48_v19 = vadd.f32 %v248_v6, %v36_v8  ;;  %v49_v20 = vadd.f32 %v248_v6, %v37_v9  ;;  %v50_v21 = vadd.f32 %v248_v6, %v38_v10  ;;  %v250_v17 = vld [vmem:[%s454_s5] ss:$0 sm:$0xff] }
   0x7   :  { %v383_v23 = vadd.f32 %v248_v6, %v39_v14  ;;  %v387_v25 = vadd.f32 %v248_v6, %v41_v16  ;;  %v389_v26 = vadd.f32 %v248_v6, %v42_v18  ;;  %v391_v30 = vadd.f32 %v248_v6, %v43_v22  ;;  %v249_v16 = vld [vmem:[%s453_s4] ss:$0 sm:$0xff] }
   0x8   :  { %v385_v24 = vadd.f32 %v248_v6, %v40_v15  ;;  %v56_v27 = vsub.f32 0.0, %v48_v19  ;;  %v57_v28 = vsub.f32 0.0, %v49_v20  ;;  %v58_v29 = vsub.f32 0.0, %v50_v21 }
   0x9   :  { %v59_v31 = vsub.f32 0.0, %v383_v23  ;;  %v61_v33 = vsub.f32 0.0, %v387_v25  ;;  %v62_v34 = vsub.f32 0.0, %v389_v26  ;;  %v63_v40 = vsub.f32 0.0, %v391_v30 }
   0xa   :  { %v60_v32 = vsub.f32 0.0, %v385_v24  ;;  %v64_v35 = vmul.f32 1.442695, %v56_v27  ;;  %v66_v36 = vmul.f32 1.442695, %v57_v28 }
   0xb   :  { %v68_v37 = vmul.f32 1.442695, %v58_v29  ;;  %v70_v38 = vmul.f32 1.442695, %v59_v31  ;;  %v74_v41 = vmul.f32 1.442695, %v61_v33 }
   0xc   :  { %251 = vpow2.f32 %v64_v35  ;;  %v72_v39 = vmul.f32 1.442695, %v60_v32  ;;  %v76_v42 = vmul.f32 1.442695, %v62_v34  ;;  %v78_v43 = vmul.f32 1.442695, %v63_v40 }
   0xd   :  { %253 = vpow2.f32 %v66_v36 }
   0xe   :  { %255 = vpow2.f32 %v68_v37 }
   0xf   :  { %257 = vpow2.f32 %v70_v38 }
  0x10   :  { %259 = vpow2.f32 %v72_v39 }
  0x11   :  { %261 = vpow2.f32 %v74_v41 }
  0x12   :  { %v252_v44 = vpop.eup %251  ;;  %263 = vpow2.f32 %v76_v42 }
  0x13   :  { %v254_v45 = vpop.eup %253  ;;  %v80_v46 = vadd.f32 1.0, %v252_v44  ;;  %265 = vpow2.f32 %v78_v43 }
  0x14   :  { %v256_v47 = vpop.eup %255  ;;  %v81_v48 = vadd.f32 1.0, %v254_v45 }
  0x15   :  { %v258_v49 = vpop.eup %257  ;;  %267 = vrcp.f32 %v80_v46  ;;  %v82_v50 = vadd.f32 1.0, %v256_v47 }
  0x16   :  { %v260_v51 = vpop.eup %259  ;;  %269 = vrcp.f32 %v81_v48  ;;  %v83_v52 = vadd.f32 1.0, %v258_v49 }
  0x17   :  { %v262_v53 = vpop.eup %261  ;;  %271 = vrcp.f32 %v82_v50  ;;  %v84_v54 = vadd.f32 1.0, %v260_v51 }
  0x18   :  { %v264_v55 = vpop.eup %263  ;;  %273 = vrcp.f32 %v83_v52  ;;  %v85_v56 = vadd.f32 1.0, %v262_v53 }
  0x19   :  { %v266_v57 = vpop.eup %265  ;;  %275 = vrcp.f32 %v84_v54  ;;  %v86_v58 = vadd.f32 1.0, %v264_v55 }
  0x1a   :  { %277 = vrcp.f32 %v85_v56  ;;  %v87_v59 = vadd.f32 1.0, %v266_v57 }
  0x1b   :  { %v268_v60 = vpop.eup %267  ;;  %279 = vrcp.f32 %v86_v58 }
  0x1c   :  { %v270_v61 = vpop.eup %269  ;;  %v96_v62 = vmul.f32 %v268_v60, %v48_v19  ;;  %281 = vrcp.f32 %v87_v59 }
  0x1d   :  { %v272_v63 = vpop.eup %271  ;;  %v97_v0 = vmul.f32 %v270_v61, %v49_v20 }
  0x1e   :  { %v274_v1 = vpop.eup %273  ;;  %v98_v2 = vmul.f32 %v272_v63, %v50_v21 }
  0x1f   :  { %v276_v3 = vpop.eup %275  ;;  %v104_v4 = vpack.c.bf16 %v97_v0, %v96_v62  ;;  %v99_v5 = vmul.f32 %v274_v1, %v383_v23 }
  0x20   :  { %v278_v6 = vpop.eup %277  ;;  %v100_v7 = vmul.f32 %v276_v3, %v385_v24 }
  0x21   :  { %v280_v8 = vpop.eup %279  ;;  %240 = vmatmul.msk.bf16.vlgmr.msra.gmra.mxu0 %vm109_vm1, %v104_v4  ;;  %v105_v9 = vpack.c.bf16 %v99_v5, %v98_v2  ;;  %v101_v10 = vmul.f32 %v278_v6, %v387_v25 }
  0x22   :  { %v282_v11 = vpop.eup %281  ;;  %v102_v12 = vmul.f32 %v280_v8, %v389_v26 }
  0x23   :  { %241 = vmatmul.msk.bf16.vlgmr.msra.gmra.mxu1 %vm109_vm1, %v105_v9  ;;  %v106_v13 = vpack.c.bf16 %v101_v10, %v100_v7  ;;  %v103_v14 = vmul.f32 %v282_v11, %v391_v30 }
  0x25   :  { %242 = vmatmul.msk.bf16.vlgmr.msra.gmra.mxu2 %vm109_vm1, %v106_v13  ;;  %v107_v15 = vpack.c.bf16 %v103_v14, %v102_v12 }
  0x27   :  { %243 = vmatmul.msk.bf16.vlgmr.msra.gmra.mxu3 %vm109_vm1, %v107_v15 }
  0x9e   :  { %v135_v18 = vpop.f32.mrf.mxu0 }
  0x9f   :  { %v159_v19 = vmul.f32 %v249_v16, %v135_v18 }
  0xa0   :  { %v140_v20 = vpop.f32.mrf.mxu1 }
  0xa1   :  { %v171_v21 = vadd.f32 %v250_v17, %v159_v19  ;;  %v161_v22 = vmul.f32 %v249_v16, %v140_v20 }
  0xa3   :  { %v179_v23 = vsub.f32 0.0, %v171_v21  ;;  %v173_v24 = vadd.f32 %v250_v17, %v161_v22 }
  0xa5   :  { %v187_v25 = vmul.f32 1.442695, %v179_v23  ;;  %v181_v26 = vsub.f32 0.0, %v173_v24 }
  0xa6   :  { %v137_v27 = vpop.f32.mrf.mxu0 }
  0xa7   :  { %283 = vpow2.f32 %v187_v25  ;;  %v191_v28 = vmul.f32 1.442695, %v181_v26  ;;  %v160_v29 = vmul.f32 %v249_v16, %v137_v27 }
  0xa8   :  { %v145_v30 = vpop.f32.mrf.mxu2  ;;  %v142_v31 = vpop.f32.mrf.mxu1 }
  0xa9   :  { %285 = vpow2.f32 %v191_v28  ;;  %v163_v32 = vmul.f32 %v249_v16, %v145_v30  ;;  %v172_v33 = vadd.f32 %v250_v17, %v160_v29  ;;  %v162_v34 = vmul.f32 %v249_v16, %v142_v31 }
  0xaa   :  { %v150_v35 = vpop.f32.mrf.mxu3 }
  0xab   :  { %v175_v36 = vadd.f32 %v250_v17, %v163_v32  ;;  %v165_v37 = vmul.f32 %v249_v16, %v150_v35  ;;  %v180_v38 = vsub.f32 0.0, %v172_v33  ;;  %v413_v39 = vadd.f32 %v250_v17, %v162_v34 }
  0xad   :  { %v284_v40 = vpop.eup %283  ;;  %v183_v41 = vsub.f32 0.0, %v175_v36  ;;  %v177_v42 = vadd.f32 %v250_v17, %v165_v37  ;;  %v189_v43 = vmul.f32 1.442695, %v180_v38  ;;  %v182_v44 = vsub.f32 0.0, %v413_v39 }
  0xae   :  { %v203_v45 = vadd.f32 1.0, %v284_v40 }
  0xaf   :  { %v286_v46 = vpop.eup %285  ;;  %v195_v47 = vmul.f32 1.442695, %v183_v41  ;;  %v185_v48 = vsub.f32 0.0, %v177_v42  ;;  %287 = vpow2.f32 %v189_v43  ;;  %v193_v50 = vmul.f32 1.442695, %v182_v44 }
  0xb0   :  { %289 = vrcp.f32 %v203_v45  ;;  %v205_v49 = vadd.f32 1.0, %v286_v46  ;;  %v147_v51 = vpop.f32.mrf.mxu2 }
  0xb1   :  { %291 = vpow2.f32 %v195_v47  ;;  %v199_v52 = vmul.f32 1.442695, %v185_v48  ;;  %v164_v53 = vmul.f32 %v249_v16, %v147_v51 }
  0xb2   :  { %293 = vrcp.f32 %v205_v49  ;;  %v152_v54 = vpop.f32.mrf.mxu3 }
  0xb3   :  { %295 = vpow2.f32 %v199_v52  ;;  %v176_v55 = vadd.f32 %v250_v17, %v164_v53  ;;  %v166_v56 = vmul.f32 %v249_v16, %v152_v54 }
  0xb4   :  { %297 = vpow2.f32 %v193_v50 }
  0xb5   :  { %v288_v57 = vpop.eup %287  ;;  %v184_v58 = vsub.f32 0.0, %v176_v55  ;;  %v178_v59 = vadd.f32 %v250_v17, %v166_v56 }
  0xb6   :  { %v290_v60 = vpop.eup %289  ;;  %v204_v61 = vadd.f32 1.0, %v288_v57 }
  0xb7   :  { %v292_v62 = vpop.eup %291  ;;  %v219_v63 = vmul.f32 %v290_v60, %v171_v21  ;;  %v197_v0 = vmul.f32 1.442695, %v184_v58  ;;  %v186_v1 = vsub.f32 0.0, %v178_v59 }
  0xb8   :  { %v294_v2 = vpop.eup %293  ;;  %v207_v3 = vadd.f32 1.0, %v292_v62  ;;  %299 = vrcp.f32 %v204_v61 }
  0xb9   :  { %v296_v4 = vpop.eup %295  ;;  %228 = vst.msk [vmem:[%s455_s6] sm:$0xff] %vm227_vm2, %v219_v63  ;;  %v221_v5 = vmul.f32 %v294_v2, %v173_v24  ;;  %301 = vpow2.f32 %v197_v0  ;;  %v201_v6 = vmul.f32 1.442695, %v186_v1 }
  0xba   :  { %v298_v7 = vpop.eup %297  ;;  %303 = vrcp.f32 %v207_v3  ;;  %v209_v8 = vadd.f32 1.0, %v296_v4 }
  0xbb   :  { %230 = vst.msk [vmem:[%s455_s6 + $0x10] sm:$0xff] %vm227_vm2, %v221_v5  ;;  %v206_v9 = vadd.f32 1.0, %v298_v7  ;;  %305 = vpow2.f32 %v201_v6 }
  0xbc   :  { %307 = vrcp.f32 %v209_v8 }
  0xbd   :  { %309 = vrcp.f32 %v206_v9 }
  0xbe   :  { %v300_v10 = vpop.eup %299 }
  0xbf   :  { %v302_v11 = vpop.eup %301  ;;  %v220_v12 = vmul.f32 %v300_v10, %v172_v33 }
  0xc0   :  { %v304_v13 = vpop.eup %303  ;;  %v208_v14 = vadd.f32 1.0, %v302_v11 }
  0xc1   :  { %v306_v15 = vpop.eup %305  ;;  %v223_v16 = vmul.f32 %v304_v13, %v175_v36  ;;  %229 = vst.msk [vmem:[%s455_s6 + $0x8] sm:$0xff] %vm227_vm2, %v220_v12 }
  0xc2   :  { %v308_v17 = vpop.eup %307  ;;  %311 = vrcp.f32 %v208_v14  ;;  %v210_v18 = vadd.f32 1.0, %v306_v15 }
  0xc3   :  { %v310_v19 = vpop.eup %309  ;;  %232 = vst.msk [vmem:[%s455_s6 + $0x20] sm:$0xff] %vm227_vm2, %v223_v16  ;;  %v225_v20 = vmul.f32 %v308_v17, %v177_v42 }
  0xc4   :  { %v222_v21 = vmul.f32 %v310_v19, %v413_v39  ;;  %313 = vrcp.f32 %v210_v18 }
  0xc5   :  { %234 = vst.msk [vmem:[%s455_s6 + $0x30] sm:$0xff] %vm227_vm2, %v225_v20 }
  0xc6   :  { %231 = vst.msk [vmem:[%s455_s6 + $0x18] sm:$0xff] %vm227_vm2, %v222_v21 }
  0xc8   :  { %v312_v22 = vpop.eup %311 }
  0xc9   :  { %v224_v23 = vmul.f32 %v312_v22, %v176_v55 }
  0xca   :  { %v314_v24 = vpop.eup %313 }
  0xcb   :  { %233 = vst.msk [vmem:[%s455_s6 + $0x28] sm:$0xff] %vm227_vm2, %v224_v23  ;;  %v226_v25 = vmul.f32 %v314_v24, %v178_v59 }
  0xcd   :  { %235 = vst.msk [vmem:[%s455_s6 + $0x38] sm:$0xff] %vm227_vm2, %v226_v25 }

// kernel: lram_forward.4
= control target key start
LH: loop header
LB: loop body
LE: loop exit
PB: predicated region body
PF: predicated region fallthrough
CT: control target
= control target key end

     0   :  { %s570_s21 = smov 0   ;;  %s631_s0 = inlined_call_operand.vmem [shape: f32[2,32,8], index: 0, kind: input, shape index: {}]   ;;  %s632_s1 = inlined_call_operand.vmem [shape: f32[32,8], index: 1, kind: input, shape index: {}]   ;;  %s633_s2 = inlined_call_operand.vmem [shape: f32[32,8], index: 2, kind: input, shape index: {}]   ;;  %s634_s3 = inlined_call_operand.vmem [shape: bf16[8,8], index: 3, kind: input, shape index: {}]   ;;  %s635_s4 = inlined_call_operand.vmem [shape: f32[1,8], index: 4, kind: input, shape index: {}]   ;;  %s636_s5 = inlined_call_operand.vmem [shape: f32[1,8], index: 5, kind: input, shape index: {}]   ;;  %s637_s6 = inlined_call_operand.vmem [shape: f32[2,32,4], index: 6, kind: output, shape index: {}]  }
   0x1 LB: > { %s467_s22 = sadd.s32 4294967295, %s532_s21   ;;  %p471_p0 = scmp.ge.s32.totalorder %s532_s21, 1  ;;  %s532_s21 = sphi %s570_s21, %s16_s21  }
   0x2   : > { %p212_p1 = scmp.lt.s32.totalorder %s532_s21, 3 }
   0x4   : > { %p213_p2 = pnand %p471_p0, %p212_p1 }
   0x5   : > { %p242_p3 = scmp.lt.s32.totalorder (!%p213_p2), %s467_s22, 1  ;;  %s534_s28 = smov (!%p213_p2), 124  }
   0x6   : > { %216 = sbr.rel (%p213_p2) target bundleno = 320 (0x140), region = 44 }
   0xb   : > { %v299_v0 = vld [vmem:[%s634_s3] sm:$0xf]  ;;  %vm307_vm0 = vcmask 1043456   ;;  %s639_s22 = smov (!%p242_p3, %s467_s22), 1  ;;  %v259_v2 = vld [vmem:[%s632_s1 + $0x10] sm:$0xff]  ;;  %v260_v3 = vld [vmem:[%s632_s1 + $0x18] sm:$0xff] }
   0xc   : > { %v309_v1 = vsel %vm307_vm0, %v299_v0, 0  ;;  %s480_s27 = sshll.u32 %s639_s22, 5  ;;  %v267_v4 = vld [vmem:[%s633_s2 + $0x10] sm:$0xff]  ;;  %v257_v5 = vld [vmem:[%s632_s1] sm:$0xff]  ;;  %v268_v6 = vld [vmem:[%s633_s2 + $0x18] sm:$0xff]  ;;  %vm300_vm1 = vcmask 64512  }
   0xd   : > { %482 = vmatpush.bf16.msra.mxu1 %v309_v1  ;;  %318 = vmatpush.bf16.msra.mxu0 %v309_v1  ;;  %s246_s12 = scalar_lea.vmem %s631_s0, %s480_s27  ;;  %v258_v7 = vld [vmem:[%s632_s1 + $0x8] sm:$0xff]  ;;  %v265_v8 = vld [vmem:[%s633_s2] sm:$0xff]  ;;  %s251_s7 = scalar_lea.vmem %s637_s6, %s480_s27  ;;  %vm407_vm2 = vcmask 31744  }
   0xe   : > { %v255_v9 = vld [vmem:[%s246_s12 + $0x10] sm:$0xff]  ;;  %v256_v10 = vld [vmem:[%s246_s12 + $0x18] sm:$0xff]  ;;  %v253_v11 = vld [vmem:[%s246_s12] sm:$0xff] }
   0xf   : > { %v263_v12 = vmul.f32 %v259_v2, %v255_v9  ;;  %v264_v13 = vmul.f32 %v260_v3, %v256_v10  ;;  %v254_v14 = vld [vmem:[%s246_s12 + $0x8] sm:$0xff]  ;;  %v261_v15 = vmul.f32 %v257_v5, %v253_v11  ;;  %v492_v48 = vld [vmem:[%s635_s4] ss:$0 sm:$0xff] }
  0x10   : > { %v266_v16 = vld [vmem:[%s633_s2 + $0x8] sm:$0xff]  ;;  %v262_v17 = vmul.f32 %v258_v7, %v254_v14  ;;  %v493_v49 = vld [vmem:[%s636_s5] ss:$0 sm:$0xff] }
  0x11   : > { %v271_v18 = vadd.f32 %v267_v4, %v263_v12  ;;  %v272_v19 = vadd.f32 %v268_v6, %v264_v13  ;;  %v269_v20 = vadd.f32 %v265_v8, %v261_v15 }
  0x12   : > { %v270_v21 = vadd.f32 %v266_v16, %v262_v17 }
  0x13   : > { %v275_v22 = vsub.f32 0.0, %v271_v18  ;;  %v276_v23 = vsub.f32 0.0, %v272_v19  ;;  %v273_v24 = vsub.f32 0.0, %v269_v20 }
  0x14   : > { %v274_v25 = vsub.f32 0.0, %v270_v21 }
  0x15   : > { %v281_v26 = vmul.f32 1.442695, %v275_v22  ;;  %v283_v27 = vmul.f32 1.442695, %v276_v23  ;;  %v277_v28 = vmul.f32 1.442695, %v273_v24 }
  0x16   : > { %v279_v29 = vmul.f32 1.442695, %v274_v25 }
  0x17   : > { %494 = vpow2.f32 %v281_v26 }
  0x18   : > { %496 = vpow2.f32 %v283_v27 }
  0x19   : > { %498 = vpow2.f32 %v277_v28 }
  0x1a   : > { %500 = vpow2.f32 %v279_v29 }
  0x1d   : > { %v495_v30 = vpop.eup %494 }
  0x1e   : > { %v497_v31 = vpop.eup %496  ;;  %v287_v32 = vadd.f32 1.0, %v495_v30 }
  0x1f   : > { %v499_v33 = vpop.eup %498  ;;  %v288_v34 = vadd.f32 1.0, %v497_v31 }
  0x20   : > { %v501_v35 = vpop.eup %500  ;;  %502 = vrcp.f32 %v287_v32  ;;  %v285_v36 = vadd.f32 1.0, %v499_v33 }
  0x21   : > { %504 = vrcp.f32 %v288_v34  ;;  %v286_v37 = vadd.f32 1.0, %v501_v35 }
  0x22   : > { %506 = vrcp.f32 %v285_v36 }
  0x23   : > { %508 = vrcp.f32 %v286_v37 }
  0x26   : > { %v503_v38 = vpop.eup %502 }
  0x27   : > { %v505_v39 = vpop.eup %504  ;;  %v295_v40 = vmul.f32 %v503_v38, %v271_v18 }
  0x28   : > { %v507_v41 = vpop.eup %506  ;;  %v296_v42 = vmul.f32 %v505_v39, %v272_v19 }
  0x29   : > { %v509_v43 = vpop.eup %508  ;;  %v293_v44 = vmul.f32 %v507_v41, %v269_v20 }
  0x2a   : > { %v298_v45 = vpack.c.bf16 %v296_v42, %v295_v40  ;;  %v294_v46 = vmul.f32 %v509_v43, %v270_v21 }
  0x2c   : > { %477 = vmatmul.msk.bf16.vlgmr.msra.gmra.mxu1 %vm300_vm1, %v298_v45  ;;  %v297_v47 = vpack.c.bf16 %v294_v46, %v293_v44 }
  0x2e   : > { %476 = vmatmul.msk.bf16.vlgmr.msra.gmra.mxu0 %vm300_vm1, %v297_v47 }
  0xa9   : > { %v325_v50 = vpop.f32.mrf.mxu1 }
  0xaa   : > { %v336_v51 = vmul.f32 %v492_v48, %v325_v50 }
  0xab   : > { %v320_v52 = vpop.f32.mrf.mxu0 }
  0xac   : > { %v344_v53 = vadd.f32 %v493_v49, %v336_v51  ;;  %v334_v54 = vmul.f32 %v492_v48, %v320_v52 }
  0xae   : > { %371 = vrot.lane.b32.xlu0 %v344_v53, %s534_s28  ;;  %v342_v55 = vadd.f32 %v493_v49, %v334_v54 }
  0xb0   : > { %v383_v56 = vsub.f32 0.0, %v342_v55 }
  0xb1   : > { %v327_v57 = vpop.f32.mrf.mxu1 }
  0xb2   : > { %v337_v58 = vmul.f32 %v492_v48, %v327_v57  ;;  %v387_v59 = vmul.f32 1.442695, %v383_v56 }
  0xb3   : > { %v322_v60 = vpop.f32.mrf.mxu0 }
  0xb4   : > { %v345_v61 = vadd.f32 %v493_v49, %v337_v58  ;;  %510 = vpow2.f32 %v387_v59  ;;  %v335_v62 = vmul.f32 %v492_v48, %v322_v60 }
  0xb6   : > { %373 = vrot.lane.b32.xlu0 %v345_v61, %s534_s28  ;;  %v343_v63 = vadd.f32 %v493_v49, %v335_v62 }
  0xb8   : > { %v384_v0 = vsub.f32 0.0, %v343_v63 }
  0xba   : > { %v511_v1 = vpop.eup %510  ;;  %v389_v2 = vmul.f32 1.442695, %v384_v0 }
  0xbb   : > { %v395_v3 = vadd.f32 1.0, %v511_v1 }
  0xbc   : > { %512 = vpow2.f32 %v389_v2 }
  0xbd   : > { %514 = vrcp.f32 %v395_v3 }
  0xc2   : > { %v513_v4 = vpop.eup %512 }
  0xc3   : > { %v515_v5 = vpop.eup %514  ;;  %v396_v6 = vadd.f32 1.0, %v513_v4 }
  0xc4   : > { %v403_v7 = vmul.f32 %v515_v5, %v342_v55 }
  0xc5   : > { %516 = vrcp.f32 %v396_v6 }
  0xc6   : > { %408 = vst.msk [vmem:[%s251_s7] sm:$0xff] %vm407_vm2, %v403_v7 }
  0xcb   : > { %v517_v8 = vpop.eup %516 }
  0xcc   : > { %v404_v9 = vmul.f32 %v517_v8, %v343_v63 }
  0xce   : > { %409 = vst.msk [vmem:[%s251_s7 + $0x8] sm:$0xff] %vm407_vm2, %v404_v9 }
 0x120   : > { %v372_v10 = vpop.permute.xlu0 %371 }
 0x121   : > { %v385_v11 = vsub.f32 0.0, %v372_v10 }
 0x123   : > { %v391_v12 = vmul.f32 1.442695, %v385_v11 }
 0x125   : > { %518 = vpow2.f32 %v391_v12 }
 0x128   : > { %v374_v13 = vpop.permute.xlu0 %373 }
 0x129   : > { %v386_v14 = vsub.f32 0.0, %v374_v13 }
 0x12b   : > { %v519_v15 = vpop.eup %518  ;;  %v393_v16 = vmul.f32 1.442695, %v386_v14 }
 0x12c   : > { %v397_v17 = vadd.f32 1.0, %v519_v15 }
 0x12d   : > { %520 = vpow2.f32 %v393_v16 }
 0x12e   : > { %522 = vrcp.f32 %v397_v17 }
 0x133   : > { %v521_v18 = vpop.eup %520 }
 0x134   : > { %v523_v19 = vpop.eup %522  ;;  %v398_v20 = vadd.f32 1.0, %v521_v18 }
 0x135   : > { %v405_v21 = vmul.f32 %v523_v19, %v372_v10 }
 0x136   : > { %524 = vrcp.f32 %v398_v20 }
 0x137   : > { %410 = vst.msk [vmem:[%s251_s7 + $0x10] sm:$0xff] %vm407_vm2, %v405_v21 }
 0x13c   : > { %v525_v22 = vpop.eup %524 }
 0x13d   : > { %v406_v23 = vmul.f32 %v525_v22, %v374_v13 }
 0x13f   : > { %411 = vst.msk [vmem:[%s251_s7 + $0x18] sm:$0xff] %vm407_vm2, %v406_v23 }
 0x140 PF: > { %s16_s21 = sadd.s32 1, %s532_s21  }
 0x141   : > { %p13_p4 = scmp.ge.s32.totalorder %s16_s21, 4  }
 0x143   :  { %15 = sbr.rel (!%p13_p4) target bundleno = 1 (0x1), region = 74 }

// kernel: lram_forward.5
= control target key start
LH: loop header
LB: loop body
LE: loop exit
PB: predicated region body
PF: predicated region fallthrough
CT: control target
= control target key end

     0   :  { %s3510_s18 = smov 0   ;;  %s3512_s19 = smov 0   ;;  %s5120_s0 = inlined_call_operand.vmem [shape: f32[2,16,16,4], index: 0, kind: input, shape index: {}]   ;;  %s5121_s1 = inlined_call_operand.vmem [shape: f32[2,16,4], index: 1, kind: input, shape index: {}]   ;;  %s5122_s2 = inlined_call_operand.vmem [shape: f32[2,16,4], index: 2, kind: input, shape index: {}]   ;;  %s5123_s3 = inlined_call_operand.vmem [shape: f32[9,4], index: 3, kind: input, shape index: {}]   ;;  %s5124_s4 = inlined_call_operand.vmem [shape: f32[1,4], index: 4, kind: input, shape index: {}]   ;;  %s5125_s5 = inlined_call_operand.vmem [shape: bf16[4,4], index: 5, kind: input, shape index: {}]   ;;  %s5126_s6 = inlined_call_operand.vmem [shape: f32[1,4], index: 6, kind: input, shape index: {}]   ;;  %s5127_s7 = inlined_call_operand.vmem [shape: f32[1,4], index: 7, kind: input, shape index: {}]   ;;  %s5128_s8 = inlined_call_operand.vmem [shape: f32[9,4], index: 8, kind: input, shape index: {}]   ;;  %s5129_s9 = inlined_call_operand.vmem [shape: f32[1,4], index: 9, kind: input, shape index: {}]   ;;  %s5130_s10 = inlined_call_operand.vmem [shape: bf16[4,4], index: 10, kind: input, shape index: {}]   ;;  %s5131_s11 = inlined_call_operand.vmem [shape: f32[1,4], index: 11, kind: input, shape index: {}]   ;;  %s5132_s12 = inlined_call_operand.vmem [shape: f32[1,4], index: 12, kind: input, shape index: {}]   ;;  %s5133_s13 = inlined_call_operand.vmem [shape: f32[1,4], index: 13, kind: input, shape index: {}]   ;;  %s5134_s14 = inlined_call_operand.vmem [shape: f32[1,4], index: 14, kind: input, shape index: {}]   ;;  %s5135_s15 = inlined_call_operand.vmem [shape: f32[2,24,16,4], index: 15, kind: output, shape index: {}]  }
   0x1   :  { %5222 = sst [smem:[#allocation46_spill]] %s5124_s4  ;;  %s3514_s20 = smov 0  }
   0x2   :  { %5223 = sst [smem:[#allocation47_spill]] %s5126_s6  ;;  %s3516_s21 = smov 0  }
   0x3   :  { %5224 = sst [smem:[#allocation48_spill]] %s5127_s7  ;;  %s3518_s22 = smov 0  }
   0x4   :  { %5225 = sst [smem:[#allocation49_spill]] %s5131_s11 }
   0x5   :  { %5226 = sst [smem:[#allocation50_spill]] %s5132_s12 }
   0x6   :  { %5227 = sst [smem:[#allocation51_spill]] %s5133_s13 }
   0x7   :  { %5228 = sst [smem:[#allocation52_spill]] %s5134_s14 }
   0x8 LB: > { %5229 = sst [smem:[#allocation4_spill]] %s3419_s20  ;;  %s34_s23 = sadd.s32 1, %s3419_s20  ;;  %s3427_s22 = sphi %s3518_s22, %s25_s22   ;;  %s3423_s21 = sphi %s3516_s21, %s5390_s21   ;;  %s3419_s20 = sphi %s3514_s20, %s5389_s20   ;;  %s3415_s19 = sphi %s3512_s19, %s5388_s19   ;;  %s3411_s18 = sphi %s3510_s18, %s5387_s18  }
   0x9   : > { %5230 = sst [smem:[#allocation5_spill]] %s3423_s21  ;;  %s37_s24 = sadd.s32 1, %s3423_s21 }
   0xa   : > { %5231 = sst [smem:[#allocation6_spill]] %s3427_s22  ;;  %p35_p0 = scmp.ge.s32.totalorder %s34_s23, 3 }
   0xb   : > { %p2962_p1 = scmp.ge.s32.totalorder %s3427_s22, 1  ;;  %p500_p2 = scmp.lt.s32.totalorder %s3427_s22, 7 }
   0xc   : > { %s5392_s23 = smov (%p35_p0, %s34_s23), 0  ;;  %s5394_s24 = smov (!%p35_p0, %s37_s24), %s3423_s21 }
   0xd   : > { %5232 = sst [smem:[#allocation7_spill]] %s5392_s23  ;;  %p501_p3 = pnand %p2962_p1, %p500_p2 }
   0xe   : > { %p39_p4 = scmp.ge.s32.totalorder %s5394_s24, 2 }
   0xf   : > { %504 = sbr.rel (%p501_p3) target bundleno = 575 (0x23f), region = 80 }
  0x10   : > { %s5396_s24 = smov (%p39_p4, %s5394_s24), 0 }
  0x11   : > { %5233 = sst [smem:[#allocation8_spill]] %s5396_s24 }
  0x14   : > { %p575_p5 = scmp.lt.s32.totalorder %s3411_s18, 1  ;;  %p578_p6 = scmp.lt.s32.totalorder %s3415_s19, 1 }
  0x15   : > { %s3544_s25 = sshll.u32 %s3411_s18, 3  ;;  %p2977_p9 = scmp.ne.s32.totalorder %s3411_s18, 0 }
  0x16   : > { %s576_s26 = scalar_select %p575_p5, %s3411_s18, 1 }
  0x17   : > { %s5398_s19 = smov (!%p578_p6, %s3415_s19), 1  ;;  %p610_p7 = scmp.lt.s32.totalorder %s3544_s25, 23 }
  0x18   : > { %s2963_s27 = sshll.u32 %s576_s26, 3  ;;  %s2965_s28 = sshll.u32 %s5398_s19, 5 }
  0x19   : > { %p580_p8 = scmp.lt.s32.totalorder %s2963_s27, 15  ;;  %s5400_s26 = smov (!%p575_p5, %s576_s26), 1 }
  0x1a   : > { %s2970_s29 = sshll.u32 %s5398_s19, 1  ;;  %s2998_s30 = sshll.u32 %s5398_s19, 4 }
  0x1b   : > { %s5402_s27 = smov (!%p580_p8, %s2963_s27), 15  ;;  %s597_s17 = sadd.s32 %s2970_s29, %s5400_s26 }
  0x1c   : > { %s2964_s16 = sshll.u32 %s5402_s27, 1  ;;  %s2971_s23 = sshll.u32 %s597_s17, 3 }
  0x1d   : > { %s584_s24 = sadd.s32 %s2965_s28, %s2964_s16  ;;  %s3551_s7 = scalar_lea.vmem %s5121_s1, %s2971_s23 }
  0x1e   : > { %s2966_s21 = sshll.u32 %s584_s24, 3  ;;  %s3561_s4 = scalar_lea.vmem %s5122_s2, %s2998_s30 }
  0x1f   : > { %s3556_s13 = scalar_lea.vmem %s5120_s0, %s2966_s21  ;;  %s3001_s27 = smul.u32 48, %s5398_s19 }
  0x20   : > { %s611_s26 = scalar_select %p610_p7, %s3544_s25, 23 }
  0x21   : > { %622 = sbr.rel (%p2977_p9) target bundleno = 99 (0x63), region = 84 }
  0x22   : > { %s2975_s28 = sshll.u32 %s611_s26, 1 }
  0x23   : > { %s614_s24 = sadd.s32 %s3001_s27, %s2975_s28 }
  0x24   : > { %s2976_s29 = sshll.u32 %s614_s24, 3 }
  0x25   : > { %s3569_s22 = scalar_lea.vmem %s5135_s15, %s2976_s29 }
  0x26   : > { %vm623_vm0 = vcmask 31744   ;;  %v3429_v0 = vmov 0.0   ;;  %vm626_vm1 = vcmask 25600  }
  0x27   : > { %624 = vst.msk [vmem:[#allocation2] sm:$0xff] %vm623_vm0, %v3429_v0 }
  0x28   : > { %625 = vst.msk [vmem:[#allocation2 + $0x8] sm:$0xff] %vm623_vm0, %v3429_v0 }
  0x29   : > { %628 = vst.msk [vmem:[#allocation2 + $0x18] sm:$0xff] %vm623_vm0, %v3429_v0 }
  0x2a   : > { %629 = vst.msk [vmem:[#allocation2 + $0x20] sm:$0xff] %vm623_vm0, %v3429_v0 }
  0x2b   : > { %631 = vst.msk [vmem:[#allocation2 + $0x30] sm:$0xff] %vm623_vm0, %v3429_v0 }
  0x2c   : > { %632 = vst.msk [vmem:[#allocation2 + $0x38] sm:$0xff] %vm623_vm0, %v3429_v0 }
  0x2d   : > { %634 = vst.msk [vmem:[#allocation2 + $0x48] sm:$0xff] %vm623_vm0, %v3429_v0 }
  0x2e   : > { %635 = vst.msk [vmem:[#allocation2 + $0x50] sm:$0xff] %vm623_vm0, %v3429_v0 }
  0x2f   : > { %637 = vst.msk [vmem:[#allocation2 + $0x60] sm:$0xff] %vm623_vm0, %v3429_v0 }
  0x30   : > { %638 = vst.msk [vmem:[#allocation2 + $0x68] sm:$0xff] %vm623_vm0, %v3429_v0 }
  0x31   : > { %640 = vst.msk [vmem:[#allocation2 + $0x78] sm:$0xff] %vm623_vm0, %v3429_v0 }
  0x32   : > { %641 = vst.msk [vmem:[#allocation2 + $0x80] sm:$0xff] %vm623_vm0, %v3429_v0 }
  0x33   : > { %643 = vst.msk [vmem:[#allocation2 + $0x90] sm:$0xff] %vm623_vm0, %v3429_v0 }
  0x34   : > { %644 = vst.msk [vmem:[#allocation2 + $0x98] sm:$0xff] %vm623_vm0, %v3429_v0 }
  0x35   : > { %646 = vst.msk [vmem:[#allocation2 + $0xa8] sm:$0xff] %vm623_vm0, %v3429_v0 }
  0x36   : > { %647 = vst.msk [vmem:[#allocation2 + $0xb0] sm:$0xff] %vm623_vm0, %v3429_v0 }
  0x37   : > { %649 = vst.msk [vmem:[#allocation2 + $0xc0] sm:$0xff] %vm623_vm0, %v3429_v0 }
  0x38   : > { %650 = vst.msk [vmem:[#allocation2 + $0xc8] sm:$0xff] %vm623_vm0, %v3429_v0 }
  0x39   : > { %652 = vst.msk [vmem:[#allocation2 + $0xd8] sm:$0xff] %vm623_vm0, %v3429_v0 }
  0x3a   : > { %653 = vst.msk [vmem:[#allocation2 + $0xe0] sm:$0xff] %vm623_vm0, %v3429_v0 }
  0x3b   : > { %655 = vst.msk [vmem:[#allocation3] sm:$0xff] %vm623_vm0, %v3429_v0 }
  0x3c   : > { %656 = vst.msk [vmem:[#allocation3 + $0x8] sm:$0xff] %vm623_vm0, %v3429_v0 }
  0x3d   : > { %658 = vst.msk [vmem:[#allocation3 + $0x18] sm:$0xff] %vm623_vm0, %v3429_v0 }
  0x3e   : > { %659 = vst.msk [vmem:[#allocation3 + $0x20] sm:$0xff] %vm623_vm0, %v3429_v0 }
  0x3f   : > { %661 = vst.msk [vmem:[#allocation3 + $0x30] sm:$0xff] %vm623_vm0, %v3429_v0 }
  0x40   : > { %662 = vst.msk [vmem:[#allocation3 + $0x38] sm:$0xff] %vm623_vm0, %v3429_v0 }
  0x41   : > { %664 = vst.msk [vmem:[#allocation3 + $0x48] sm:$0xff] %vm623_vm0, %v3429_v0 }
  0x42   : > { %665 = vst.msk [vmem:[#allocation3 + $0x50] sm:$0xff] %vm623_vm0, %v3429_v0 }
  0x43   : > { %667 = vst.msk [vmem:[#allocation3 + $0x60] sm:$0xff] %vm623_vm0, %v3429_v0 }
  0x44   : > { %668 = vst.msk [vmem:[#allocation3 + $0x68] sm:$0xff] %vm623_vm0, %v3429_v0 }
  0x45   : > { %670 = vst.msk [vmem:[#allocation3 + $0x78] sm:$0xff] %vm623_vm0, %v3429_v0 }
  0x46   : > { %671 = vst.msk [vmem:[#allocation3 + $0x80] sm:$0xff] %vm623_vm0, %v3429_v0 }
  0x47   : > { %673 = vst.msk [vmem:[#allocation3 + $0x90] sm:$0xff] %vm623_vm0, %v3429_v0 }
  0x48   : > { %674 = vst.msk [vmem:[#allocation3 + $0x98] sm:$0xff] %vm623_vm0, %v3429_v0 }
  0x49   : > { %676 = vst.msk [vmem:[#allocation3 + $0xa8] sm:$0xff] %vm623_vm0, %v3429_v0 }
  0x4a   : > { %677 = vst.msk [vmem:[#allocation3 + $0xb0] sm:$0xff] %vm623_vm0, %v3429_v0 }
  0x4b   : > { %679 = vst.msk [vmem:[#allocation3 + $0xc0] sm:$0xff] %vm623_vm0, %v3429_v0 }
  0x4c   : > { %680 = vst.msk [vmem:[#allocation3 + $0xc8] sm:$0xff] %vm623_vm0, %v3429_v0 }
  0x4d   : > { %682 = vst.msk [vmem:[#allocation3 + $0xd8] sm:$0xff] %vm623_vm0, %v3429_v0 }
  0x4e   : > { %683 = vst.msk [vmem:[#allocation3 + $0xe0] sm:$0xff] %vm623_vm0, %v3429_v0 }
  0x4f   : > { %627 = vst.msk [vmem:[#allocation2 + $0x10] sm:$0x3] %vm626_vm1, %v3429_v0 }
  0x50   : > { %630 = vst.msk [vmem:[#allocation2 + $0x28] sm:$0x3] %vm626_vm1, %v3429_v0 }
  0x51   : > { %633 = vst.msk [vmem:[#allocation2 + $0x40] sm:$0x3] %vm626_vm1, %v3429_v0 }
  0x52   : > { %636 = vst.msk [vmem:[#allocation2 + $0x58] sm:$0x3] %vm626_vm1, %v3429_v0 }
  0x53   : > { %639 = vst.msk [vmem:[#allocation2 + $0x70] sm:$0x3] %vm626_vm1, %v3429_v0 }
  0x54   : > { %642 = vst.msk [vmem:[#allocation2 + $0x88] sm:$0x3] %vm626_vm1, %v3429_v0 }
  0x55   : > { %645 = vst.msk [vmem:[#allocation2 + $0xa0] sm:$0x3] %vm626_vm1, %v3429_v0 }
  0x56   : > { %648 = vst.msk [vmem:[#allocation2 + $0xb8] sm:$0x3] %vm626_vm1, %v3429_v0 }
  0x57   : > { %651 = vst.msk [vmem:[#allocation2 + $0xd0] sm:$0x3] %vm626_vm1, %v3429_v0 }
  0x58   : > { %654 = vst.msk [vmem:[#allocation2 + $0xe8] sm:$0x3] %vm626_vm1, %v3429_v0 }
  0x59   : > { %657 = vst.msk [vmem:[#allocation3 + $0x10] sm:$0x3] %vm626_vm1, %v3429_v0 }
  0x5a   : > { %660 = vst.msk [vmem:[#allocation3 + $0x28] sm:$0x3] %vm626_vm1, %v3429_v0 }
  0x5b   : > { %663 = vst.msk [vmem:[#allocation3 + $0x40] sm:$0x3] %vm626_vm1, %v3429_v0 }
  0x5c   : > { %666 = vst.msk [vmem:[#allocation3 + $0x58] sm:$0x3] %vm626_vm1, %v3429_v0 }
  0x5d   : > { %669 = vst.msk [vmem:[#allocation3 + $0x70] sm:$0x3] %vm626_vm1, %v3429_v0 }
  0x5e   : > { %672 = vst.msk [vmem:[#allocation3 + $0x88] sm:$0x3] %vm626_vm1, %v3429_v0 }
  0x5f   : > { %675 = vst.msk [vmem:[#allocation3 + $0xa0] sm:$0x3] %vm626_vm1, %v3429_v0 }
  0x60   : > { %678 = vst.msk [vmem:[#allocation3 + $0xb8] sm:$0x3] %vm626_vm1, %v3429_v0 }
  0x61   : > { %681 = vst.msk [vmem:[#allocation3 + $0xd0] sm:$0x3] %vm626_vm1, %v3429_v0 }
  0x62   : > { %684 = vst.msk [vmem:[#allocation3 + $0xe8] sm:$0x3] %vm626_vm1, %v3429_v0 }
  0x63 PF: > { %v685_v1 = vld [vmem:[%s3556_s13] sm:$0xff]  ;;  %vm754_vm2 = vcmask 31744   ;;  %v686_v2 = vld [vmem:[%s3556_s13 + $0x8] sm:$0xff]  ;;  %v687_v3 = vld [vmem:[%s3556_s13 + $0x10] sm:$0xff]  ;;  %v701_v4 = vlaneseq  ;;  %s788_s6 = sadd.s32 8, %s3544_s25  ;;  %v3639_v6 = vstv %s3544_s25 }
  0x64   : > { %755 = vst.msk [vmem:[#allocation2 + $0x31] sm:$0xff] %vm754_vm2, %v685_v1  ;;  %v688_v5 = vld [vmem:[%s3556_s13 + $0x18] sm:$0xff]  ;;  %v689_v7 = vld [vmem:[%s3556_s13 + $0x20] sm:$0xff]  ;;  %v690_v9 = vld [vmem:[%s3556_s13 + $0x28] sm:$0xff]  ;;  %p2979_p10 = scmp.le.s32.totalorder %s788_s6, 16 }
  0x65   : > { %756 = vst.msk [vmem:[#allocation2 + $0x39] sm:$0xff] %vm754_vm2, %v686_v2  ;;  %v702_v8 = vshrl.u32 %v701_v4, 7  ;;  %v691_v10 = vld [vmem:[%s3556_s13 + $0x30] sm:$0xff]  ;;  %v692_v12 = vld [vmem:[%s3556_s13 + $0x38] sm:$0xff]  ;;  %v707_v13 = vld [vmem:[%s3551_s7] sm:$0xff]  ;;  %p3043_p11 = scmp.lt.s32.totalorder (!%p2979_p10), %s3544_s25, 16 }
  0x66   : > { %757 = vst.msk [vmem:[#allocation2 + $0x49] sm:$0xff] %vm754_vm2, %v687_v3  ;;  %v693_v14 = vld [vmem:[%s3556_s13 + $0x40] sm:$0xff]  ;;  %v694_v15 = vld [vmem:[%s3556_s13 + $0x48] sm:$0xff]  ;;  %v695_v17 = vld [vmem:[%s3556_s13 + $0x50] sm:$0xff] }
  0x67   : > { %758 = vst.msk [vmem:[#allocation2 + $0x51] sm:$0xff] %vm754_vm2, %v688_v5  ;;  %v705_v11 = vadd.s32 %v3639_v6, %v702_v8  ;;  %v696_v19 = vld [vmem:[%s3556_s13 + $0x58] sm:$0xff]  ;;  %v697_v22 = vld [vmem:[%s3556_s13 + $0x60] sm:$0xff]  ;;  %v698_v24 = vld [vmem:[%s3556_s13 + $0x68] sm:$0xff] }
  0x68   : > { %759 = vst.msk [vmem:[#allocation2 + $0x61] sm:$0xff] %vm754_vm2, %v689_v7  ;;  %v711_v23 = vld [vmem:[%s3561_s4] sm:$0xff]  ;;  %v712_v25 = vld [vmem:[%s3561_s4 + $0x8] sm:$0xff]  ;;  %v699_v28 = vld [vmem:[%s3556_s13 + $0x70] sm:$0xff] }
  0x69   : > { %760 = vst.msk [vmem:[#allocation2 + $0x69] sm:$0xff] %vm754_vm2, %v690_v9  ;;  %vm706_vm3 = vcmp.lt.s32.totalorder %v705_v11, 16  ;;  %v700_v29 = vld [vmem:[%s3556_s13 + $0x78] sm:$0xff] }
  0x6a   : > { %761 = vst.msk [vmem:[#allocation2 + $0x79] sm:$0xff] %vm754_vm2, %v691_v10  ;;  %v710_v16 = vsel %vm706_vm3, %v707_v13, 0.0 }
  0x6b   : > { %762 = vst.msk [vmem:[#allocation2 + $0x81] sm:$0xff] %vm754_vm2, %v692_v12  ;;  %v714_v18 = vrot.slane %v710_v16, 1  ;;  %v721_v20 = vperm.slane %v710_v16, 0  ;;  %v715_v21 = vrot.slane %v710_v16, 2  ;;  %v716_v27 = vrot.slane %v710_v16, 3 }
  0x6c   : > { %763 = vst.msk [vmem:[#allocation2 + $0x91] sm:$0xff] %vm754_vm2, %v693_v14  ;;  %v717_v32 = vrot.slane %v710_v16, 4  ;;  %v718_v36 = vrot.slane %v710_v16, 5  ;;  %v719_v40 = vrot.slane %v710_v16, 6  ;;  %v720_v44 = vrot.slane %v710_v16, 7 }
  0x6d   : > { %764 = vst.msk [vmem:[#allocation2 + $0x99] sm:$0xff] %vm754_vm2, %v694_v15  ;;  %v722_v26 = vperm.slane %v714_v18, 0  ;;  %v737_v30 = vmul.f32 %v721_v20, %v711_v23  ;;  %v723_v31 = vperm.slane %v715_v21, 0  ;;  %v738_v33 = vmul.f32 %v721_v20, %v712_v25 }
  0x6e   : > { %765 = vst.msk [vmem:[#allocation2 + $0xa9] sm:$0xff] %vm754_vm2, %v695_v17  ;;  %v724_v35 = vperm.slane %v716_v27, 0  ;;  %v725_v39 = vperm.slane %v717_v32, 0  ;;  %v726_v43 = vperm.slane %v718_v36, 0  ;;  %v727_v47 = vperm.slane %v719_v40, 0 }
  0x6f   : > { %766 = vst.msk [vmem:[#allocation2 + $0xb1] sm:$0xff] %vm754_vm2, %v696_v19  ;;  %v739_v34 = vmul.f32 %v722_v26, %v711_v23  ;;  %v740_v37 = vmul.f32 %v722_v26, %v712_v25  ;;  %v741_v38 = vmul.f32 %v723_v31, %v711_v23  ;;  %v742_v41 = vmul.f32 %v723_v31, %v712_v25 }
  0x70   : > { %767 = vst.msk [vmem:[#allocation2 + $0xc1] sm:$0xff] %vm754_vm2, %v697_v22  ;;  %v743_v42 = vmul.f32 %v724_v35, %v711_v23  ;;  %v744_v45 = vmul.f32 %v724_v35, %v712_v25  ;;  %v745_v46 = vmul.f32 %v725_v39, %v711_v23  ;;  %v746_v48 = vmul.f32 %v725_v39, %v712_v25 }
  0x71   : > { %768 = vst.msk [vmem:[#allocation2 + $0xc9] sm:$0xff] %vm754_vm2, %v698_v24  ;;  %v747_v49 = vmul.f32 %v726_v43, %v711_v23  ;;  %v728_v50 = vperm.slane %v720_v44, 0  ;;  %v748_v51 = vmul.f32 %v726_v43, %v712_v25  ;;  %v749_v52 = vmul.f32 %v727_v47, %v711_v23 }
  0x72   : > { %769 = vst.msk [vmem:[#allocation2 + $0xd9] sm:$0xff] %vm754_vm2, %v699_v28  ;;  %v750_v53 = vmul.f32 %v727_v47, %v712_v25 }
  0x73   : > { %770 = vst.msk [vmem:[#allocation2 + $0xe1] sm:$0xff] %vm754_vm2, %v700_v29  ;;  %v751_v54 = vmul.f32 %v728_v50, %v711_v23  ;;  %v752_v55 = vmul.f32 %v728_v50, %v712_v25 }
  0x74   : > { %772 = vst.msk [vmem:[#allocation3 + $0x31] sm:$0xff] %vm754_vm2, %v737_v30 }
  0x75   : > { %773 = vst.msk [vmem:[#allocation3 + $0x39] sm:$0xff] %vm754_vm2, %v738_v33 }
  0x76   : > { %774 = vst.msk [vmem:[#allocation3 + $0x49] sm:$0xff] %vm754_vm2, %v739_v34 }
  0x77   : > { %775 = vst.msk [vmem:[#allocation3 + $0x51] sm:$0xff] %vm754_vm2, %v740_v37 }
  0x78   : > { %776 = vst.msk [vmem:[#allocation3 + $0x61] sm:$0xff] %vm754_vm2, %v741_v38 }
  0x79   : > { %777 = vst.msk [vmem:[#allocation3 + $0x69] sm:$0xff] %vm754_vm2, %v742_v41 }
  0x7a   : > { %778 = vst.msk [vmem:[#allocation3 + $0x79] sm:$0xff] %vm754_vm2, %v743_v42 }
  0x7b   : > { %779 = vst.msk [vmem:[#allocation3 + $0x81] sm:$0xff] %vm754_vm2, %v744_v45 }
  0x7c   : > { %780 = vst.msk [vmem:[#allocation3 + $0x91] sm:$0xff] %vm754_vm2, %v745_v46 }
  0x7d   : > { %781 = vst.msk [vmem:[#allocation3 + $0x99] sm:$0xff] %vm754_vm2, %v746_v48 }
  0x7e   : > { %782 = vst.msk [vmem:[#allocation3 + $0xa9] sm:$0xff] %vm754_vm2, %v747_v49 }
  0x7f   : > { %783 = vst.msk [vmem:[#allocation3 + $0xb1] sm:$0xff] %vm754_vm2, %v748_v51  ;;  %792 = sbr.rel (%p2979_p10) target bundleno = 152 (0x98), region = 88 }
  0x80   : > { %784 = vst.msk [vmem:[#allocation3 + $0xc1] sm:$0xff] %vm754_vm2, %v749_v52 }
  0x81   : > { %785 = vst.msk [vmem:[#allocation3 + $0xc9] sm:$0xff] %vm754_vm2, %v750_v53 }
  0x82   : > { %786 = vst.msk [vmem:[#allocation3 + $0xd9] sm:$0xff] %vm754_vm2, %v751_v54 }
  0x83   : > { %787 = vst.msk [vmem:[#allocation3 + $0xe1] sm:$0xff] %vm754_vm2, %v752_v55 }
  0x84   : > { %v793_v56 = vadd.s32 1, %v3639_v6  ;;  %v810_v57 = vld [vmem:[#allocation2 + $0x49] sm:$0xff]  ;;  %v811_v58 = vld [vmem:[#allocation2 + $0x51] sm:$0xff]  ;;  %v794_v59 = vadd.s32 2, %v3639_v6  ;;  %v795_v60 = vadd.s32 3, %v3639_v6  ;;  %v812_v61 = vld [vmem:[#allocation2 + $0x61] sm:$0xff] }
  0x85   : > { %s3044_s4 = scalar_select %p3043_p11, 255, 0  ;;  %v796_v62 = vadd.s32 4, %v3639_v6  ;;  %v813_v0 = vld [vmem:[#allocation2 + $0x69] sm:$0xff]  ;;  %v814_v3 = vld [vmem:[#allocation2 + $0x79] sm:$0xff]  ;;  %v815_v7 = vld [vmem:[#allocation2 + $0x81] sm:$0xff] }
  0x86   : > { %vm801_vm4 = vcmp.lt.s32.totalorder %v793_v56, 16  ;;  %vm802_vm5 = vcmp.lt.s32.totalorder %v794_v59, 16  ;;  %vm803_vm6 = vcmp.lt.s32.totalorder %v795_v60, 16  ;;  %v797_v8 = vadd.s32 5, %v3639_v6  ;;  %v816_v10 = vld [vmem:[#allocation2 + $0x91] sm:$0xff]  ;;  %v817_v13 = vld [vmem:[#allocation2 + $0x99] sm:$0xff] }
  0x87   : > { %v842_v63 = vsel %vm801_vm4, %v810_v57, 0.0  ;;  %v3045_v1 = vld [vmem:[#allocation2 + $0x31] sm:%s3044_s4]  ;;  %v843_v2 = vsel %vm801_vm4, %v811_v58, 0.0  ;;  %v3048_v4 = vld [vmem:[#allocation2 + $0x39] sm:%s3044_s4]  ;;  %v844_v5 = vsel %vm802_vm5, %v812_v61, 0.0  ;;  %v845_v9 = vsel %vm802_vm5, %v813_v0, 0.0 }
  0x88   : > { %858 = vst.msk [vmem:[#allocation2 + $0x49] sm:$0xff] %vm754_vm2, %v842_v63  ;;  %vm804_vm7 = vcmp.lt.s32.totalorder %v796_v62, 16  ;;  %v798_v11 = vadd.s32 6, %v3639_v6  ;;  %v846_v12 = vsel %vm803_vm6, %v814_v3, 0.0  ;;  %v847_v14 = vsel %vm803_vm6, %v815_v7, 0.0  ;;  %v818_v15 = vld [vmem:[#allocation2 + $0xa9] sm:$0xff] }
  0x89   : > { %856 = vst.msk [vmem:[#allocation2 + $0x31] sm:$0xff] %vm754_vm2, %v3045_v1  ;;  %vm805_vm8 = vcmp.lt.s32.totalorder %v797_v8, 16  ;;  %v799_v16 = vadd.s32 7, %v3639_v6  ;;  %v848_v17 = vsel %vm804_vm7, %v816_v10, 0.0  ;;  %v819_v18 = vld [vmem:[#allocation2 + $0xb1] sm:$0xff]  ;;  %v849_v19 = vsel %vm804_vm7, %v817_v13, 0.0 }
  0x8a   : > { %857 = vst.msk [vmem:[#allocation2 + $0x39] sm:$0xff] %vm754_vm2, %v3048_v4  ;;  %vm806_vm9 = vcmp.lt.s32.totalorder %v798_v11, 16  ;;  %v820_v20 = vld [vmem:[#allocation2 + $0xc1] sm:$0xff]  ;;  %v850_v21 = vsel %vm805_vm8, %v818_v15, 0.0  ;;  %v821_v22 = vld [vmem:[#allocation2 + $0xc9] sm:$0xff]  ;;  %v851_v23 = vsel %vm805_vm8, %v819_v18, 0.0 }
  0x8b   : > { %859 = vst.msk [vmem:[#allocation2 + $0x51] sm:$0xff] %vm754_vm2, %v843_v2  ;;  %vm807_vm10 = vcmp.lt.s32.totalorder %v799_v16, 16  ;;  %v822_v24 = vld [vmem:[#allocation2 + $0xd9] sm:$0xff]  ;;  %v852_v6 = vsel %vm806_vm9, %v820_v20, 0.0  ;;  %v823_v25 = vld [vmem:[#allocation2 + $0xe1] sm:$0xff]  ;;  %v853_v26 = vsel %vm806_vm9, %v821_v22, 0.0 }
  0x8c   : > { %860 = vst.msk [vmem:[#allocation2 + $0x61] sm:$0xff] %vm754_vm2, %v844_v5  ;;  %v854_v27 = vsel %vm807_vm10, %v822_v24, 0.0  ;;  %v855_v28 = vsel %vm807_vm10, %v823_v25, 0.0 }
  0x8d   : > { %861 = vst.msk [vmem:[#allocation2 + $0x69] sm:$0xff] %vm754_vm2, %v845_v9 }
  0x8e   : > { %862 = vst.msk [vmem:[#allocation2 + $0x79] sm:$0xff] %vm754_vm2, %v846_v12 }
  0x8f   : > { %863 = vst.msk [vmem:[#allocation2 + $0x81] sm:$0xff] %vm754_vm2, %v847_v14 }
  0x90   : > { %864 = vst.msk [vmem:[#allocation2 + $0x91] sm:$0xff] %vm754_vm2, %v848_v17 }
  0x91   : > { %865 = vst.msk [vmem:[#allocation2 + $0x99] sm:$0xff] %vm754_vm2, %v849_v19 }
  0x92   : > { %866 = vst.msk [vmem:[#allocation2 + $0xa9] sm:$0xff] %vm754_vm2, %v850_v21 }
  0x93   : > { %867 = vst.msk [vmem:[#allocation2 + $0xb1] sm:$0xff] %vm754_vm2, %v851_v23 }
  0x94   : > { %868 = vst.msk [vmem:[#allocation2 + $0xc1] sm:$0xff] %vm754_vm2, %v852_v6 }
  0x95   : > { %869 = vst.msk [vmem:[#allocation2 + $0xc9] sm:$0xff] %vm754_vm2, %v853_v26 }
  0x96   : > { %870 = vst.msk [vmem:[#allocation2 + $0xd9] sm:$0xff] %vm754_vm2, %v854_v27 }
  0x97   : > { %871 = vst.msk [vmem:[#allocation2 + $0xe1] sm:$0xff] %vm754_vm2, %v855_v28 }
  0x98 PF: > { %vm1927_vm11 = vcmask 1041408   ;;  %v2240_v29 = vld [vmem:[%s5130_s10] sm:$0x3]  ;;  %v925_v32 = vld [vmem:[#allocation3] sm:$0xff]  ;;  %v926_v33 = vld [vmem:[#allocation3 + $0x8] sm:$0xff]  ;;  %s5260_s29 = sld [smem:[#allocation46_spill]] }
  0x99   : > { %v874_v30 = vld [vmem:[%s5128_s8] sm:$0xff]  ;;  %v2266_v31 = vsel %vm1927_vm11, %v2240_v29, 0  ;;  %v1023_v35 = vld [vmem:[#allocation3 + $0x1] sm:$0xff]  ;;  %v3737_v47 = vld [vmem:[#allocation3 + $0x18] sm:$0xff]  ;;  %s5369_s19 = sld [smem:[#allocation49_spill]] }
  0x9a   : > { %v3723_v34 = vperm.slane %v874_v30, 0  ;;  %v3725_v36 = vperm.slane %v874_v30, 1  ;;  %2275 = vmatpush.bf16.msra.mxu1 %v2266_v31  ;;  %3000 = vmatpush.bf16.msra.mxu3 %v2266_v31  ;;  %v1024_v37 = vld [vmem:[#allocation3 + $0x9] sm:$0xff]  ;;  %v3727_v40 = vperm.slane %v874_v30, 2  ;;  %v3729_v41 = vperm.slane %v874_v30, 3  ;;  %v3739_v48 = vld [vmem:[#allocation3 + $0x20] sm:$0xff] }
  0x9b   : > { %v1121_v38 = vld [vmem:[#allocation3 + $0x2] sm:$0xff]  ;;  %v1122_v39 = vld [vmem:[#allocation3 + $0xa] sm:$0xff]  ;;  %v3731_v42 = vperm.slane %v874_v30, 4  ;;  %v3741_v49 = vld [vmem:[#allocation3 + $0x19] sm:$0xff]  ;;  %v3761_v62 = vperm.slane %v874_v30, 5  ;;  %v3763_v63 = vperm.slane %v874_v30, 6 }
  0x9c   : > { %v942_v43 = vmul.f32 %v3723_v34, %v925_v32  ;;  %v943_v44 = vmul.f32 %v3723_v34, %v926_v33  ;;  %v1040_v45 = vmul.f32 %v3725_v36, %v1023_v35  ;;  %v1041_v46 = vmul.f32 %v3725_v36, %v1024_v37  ;;  %v3745_v52 = vld [vmem:[#allocation3 + $0x21] sm:$0xff]  ;;  %v3755_v59 = vld [vmem:[#allocation3 + $0x30] sm:$0xff]  ;;  %v3757_v60 = vld [vmem:[#allocation3 + $0x38] sm:$0xff]  ;;  %s5371_s30 = sld [smem:[#allocation50_spill]] }
  0x9d   : > { %v1138_v50 = vmul.f32 %v3727_v40, %v1121_v38  ;;  %v1139_v51 = vmul.f32 %v3727_v40, %v1122_v39  ;;  %v3747_v53 = vld [vmem:[#allocation3 + $0x1a] sm:$0xff]  ;;  %v3749_v54 = vld [vmem:[#allocation3 + $0x22] sm:$0xff]  ;;  %v1238_v57 = vmul.f32 %v3729_v41, %v3737_v47  ;;  %v1239_v58 = vmul.f32 %v3729_v41, %v3739_v48  ;;  %v3759_v61 = vld [vmem:[#allocation3 + $0x31] sm:$0xff]  ;;  %s5372_s27 = sld [smem:[#allocation51_spill]] }
  0x9e   : > { %v1056_v55 = vadd.f32 %v1040_v45, %v942_v43  ;;  %v1057_v56 = vadd.f32 %v1041_v46, %v943_v44  ;;  %v3765_v0 = vld [vmem:[#allocation3 + $0x39] sm:$0xff]  ;;  %v3767_v1 = vperm.slane %v874_v30, 7  ;;  %v1336_v7 = vmul.f32 %v3731_v42, %v3741_v49  ;;  %v3780_v9 = vld [vmem:[%s5128_s8 + $0x8] ss:$0 sm:$0xff]  ;;  %v1770_v10 = vld [vmem:[#allocation3 + $0xc1] sm:$0xff]  ;;  %s5373_s16 = sld [smem:[#allocation52_spill]] }
  0x9f   : > { %v3769_v2 = vld [vmem:[#allocation3 + $0x32] sm:$0xff]  ;;  %v3771_v3 = vld [vmem:[#allocation3 + $0x3a] sm:$0xff]  ;;  %v1337_v8 = vmul.f32 %v3731_v42, %v3745_v52  ;;  %v1771_v11 = vld [vmem:[#allocation3 + $0xc9] sm:$0xff]  ;;  %v1434_v12 = vmul.f32 %v3761_v62, %v3747_v53  ;;  %v1435_v13 = vmul.f32 %v3761_v62, %v3749_v54  ;;  %v1532_v14 = vmul.f32 %v3763_v63, %v3755_v59  ;;  %1774 = vst.msk [vmem:[#allocation3 + $0x1] sm:$0xff] %vm754_vm2, %v1770_v10  ;;  %s5370_s23 = smov %s5369_s19  ;;  %s5374_s4 = sld [smem:[#allocation47_spill]] }
  0xa0   : > { %v1154_v4 = vadd.f32 %v1138_v50, %v1056_v55  ;;  %v1155_v5 = vadd.f32 %v1139_v51, %v1057_v56  ;;  %v1533_v15 = vmul.f32 %v3763_v63, %v3757_v60  ;;  %v933_v16 = vld [vmem:[#allocation3 + $0x60] sm:$0xff]  ;;  %v1630_v19 = vmul.f32 %v3767_v1, %v3759_v61  ;;  %1775 = vst.msk [vmem:[#allocation3 + $0x9] sm:$0xff] %vm754_vm2, %v1771_v11  ;;  %v934_v21 = vld [vmem:[#allocation3 + $0x68] sm:$0xff]  ;;  %v3802_v29 = vld [vmem:[#allocation3 + $0x78] sm:$0xff]  ;;  %s5375_s12 = sld [smem:[#allocation48_spill]] }
  0xa1   : > { %v1631_v20 = vmul.f32 %v3767_v1, %v3765_v0  ;;  %v1031_v22 = vld [vmem:[#allocation3 + $0x61] sm:$0xff]  ;;  %v1032_v23 = vld [vmem:[#allocation3 + $0x69] sm:$0xff]  ;;  %v1728_v24 = vmul.f32 %v3780_v9, %v3769_v2  ;;  %v1729_v6 = vmul.f32 %v3780_v9, %v3771_v3  ;;  %v950_v25 = vmul.f32 %v3723_v34, %v933_v16  ;;  %v3808_v37 = vld [vmem:[#allocation3 + $0x79] sm:$0xff] }
  0xa2   : > { %v1254_v17 = vadd.f32 %v1238_v57, %v1154_v4  ;;  %v1255_v18 = vadd.f32 %v1239_v58, %v1155_v5  ;;  %v951_v26 = vmul.f32 %v3723_v34, %v934_v21  ;;  %v1129_v27 = vld [vmem:[#allocation3 + $0x62] sm:$0xff]  ;;  %v1130_v28 = vld [vmem:[#allocation3 + $0x6a] sm:$0xff]  ;;  %v1048_v32 = vmul.f32 %v3725_v36, %v1031_v22  ;;  %5235 = vst [vmem:[#allocation10_spill] sm:$0xff] %v3808_v37  ;;  %v3818_v46 = vld [vmem:[#allocation3 + $0x7a] sm:$0xff] }
  0xa3   : > { %v1049_v33 = vmul.f32 %v3725_v36, %v1032_v23  ;;  %v3806_v35 = vld [vmem:[#allocation3 + $0x80] sm:$0xff]  ;;  %v1146_v39 = vmul.f32 %v3727_v40, %v1129_v27  ;;  %v1147_v43 = vmul.f32 %v3727_v40, %v1130_v28  ;;  %v1246_v44 = vmul.f32 %v3729_v41, %v3802_v29  ;;  %5237 = vst [vmem:[#allocation12_spill] sm:$0xff] %v3818_v46  ;;  %v3822_v51 = vld [vmem:[#allocation3 + $0x90] sm:$0xff]  ;;  %v3824_v4 = vld [vmem:[#allocation3 + $0x98] sm:$0xff] }
  0xa4   : > { %v1352_v30 = vadd.f32 %v1336_v7, %v1254_v17  ;;  %v1353_v31 = vadd.f32 %v1337_v8, %v1255_v18  ;;  %5234 = vst [vmem:[#allocation9_spill] sm:$0xff] %v3806_v35  ;;  %v3810_v38 = vld [vmem:[#allocation3 + $0x81] sm:$0xff]  ;;  %v1247_v45 = vmul.f32 %v3729_v41, %v3806_v35  ;;  %v1064_v57 = vadd.f32 %v1048_v32, %v950_v25  ;;  %v3826_v5 = vld [vmem:[#allocation3 + $0x91] sm:$0xff]  ;;  %v3828_v7 = vld [vmem:[#allocation3 + $0x99] sm:$0xff] }
  0xa5   : > { %5236 = vst [vmem:[#allocation11_spill] sm:$0xff] %v3810_v38  ;;  %v3820_v50 = vld [vmem:[#allocation3 + $0x82] sm:$0xff]  ;;  %v1065_v58 = vadd.f32 %v1049_v33, %v951_v26  ;;  %v1344_v8 = vmul.f32 %v3731_v42, %v3808_v37  ;;  %v1345_v10 = vmul.f32 %v3731_v42, %v3810_v38  ;;  %v1442_v11 = vmul.f32 %v3761_v62, %v3818_v46  ;;  %v3840_v22 = vld [vmem:[#allocation3 + $0x9a] sm:$0xff]  ;;  %v3845_v23 = vld [vmem:[%s5123_s3] sm:$0xff] }
  0xa6   : > { %5238 = vst [vmem:[#allocation13_spill] sm:$0xff] %v3820_v50  ;;  %v1450_v55 = vadd.f32 %v1434_v12, %v1352_v30  ;;  %v1451_v56 = vadd.f32 %v1435_v13, %v1353_v31  ;;  %v1443_v12 = vmul.f32 %v3761_v62, %v3820_v50  ;;  %v3838_v13 = vld [vmem:[#allocation3 + $0x92] sm:$0xff]  ;;  %v1162_v18 = vadd.f32 %v1146_v39, %v1064_v57  ;;  %v3850_v25 = vld [vmem:[%s5129_s9] ss:$0 sm:$0xff] }
  0xa7   : > { %5239 = vst [vmem:[#allocation14_spill] sm:$0xff] %v3822_v51  ;;  %v1163_v21 = vadd.f32 %v1147_v43, %v1065_v58  ;;  %v1540_v26 = vmul.f32 %v3763_v63, %v3822_v51  ;;  %v1639_v27 = vmul.f32 %v3767_v1, %v3828_v7  ;;  %v884_v28 = vld [vmem:[#allocation2 + $0x60] sm:$0xff]  ;;  %v885_v39 = vld [vmem:[#allocation2 + $0x68] sm:$0xff]  ;;  %v1737_v57 = vmul.f32 %v3780_v9, %v3840_v22 }
  0xa8   : > { %5240 = vst [vmem:[#allocation15_spill] sm:$0xff] %v3824_v4  ;;  %v1548_v16 = vadd.f32 %v1532_v14, %v1450_v55  ;;  %v1549_v17 = vadd.f32 %v1533_v15, %v1451_v56  ;;  %v1541_v14 = vmul.f32 %v3763_v63, %v3824_v4  ;;  %v1638_v15 = vmul.f32 %v3767_v1, %v3826_v5  ;;  %v982_v43 = vld [vmem:[#allocation2 + $0x61] sm:$0xff]  ;;  %v983_v55 = vld [vmem:[#allocation2 + $0x69] sm:$0xff] }
  0xa9   : > { %5241 = vst [vmem:[#allocation16_spill] sm:$0xff] %v3826_v5  ;;  %v1262_v32 = vadd.f32 %v1246_v44, %v1162_v18  ;;  %v1263_v33 = vadd.f32 %v1247_v45, %v1163_v21  ;;  %v1736_v56 = vmul.f32 %v3780_v9, %v3838_v13  ;;  %v3865_v58 = vperm.slane %v3845_v23, 0  ;;  %v1080_v21 = vld [vmem:[#allocation2 + $0x62] sm:$0xff] }
  0xaa   : > { %5242 = vst [vmem:[#allocation17_spill] sm:$0xff] %v3828_v7  ;;  %v1646_v30 = vadd.f32 %v1630_v19, %v1548_v16  ;;  %v1647_v31 = vadd.f32 %v1631_v20, %v1549_v17  ;;  %v3868_v5 = vperm.slane %v3845_v23, 1 }
  0xab   : > { %5243 = vst [vmem:[#allocation18_spill] sm:$0xff] %v3838_v13  ;;  %v1360_v20 = vadd.f32 %v1344_v8, %v1262_v32  ;;  %v1361_v44 = vadd.f32 %v1345_v10, %v1263_v33  ;;  %v901_v45 = vmul.f32 %v3865_v58, %v884_v28  ;;  %v902_v16 = vmul.f32 %v3865_v58, %v885_v39  ;;  %v3880_v8 = vld [vmem:[#allocation2 + $0x78] sm:$0xff]  ;;  %v3882_v10 = vld [vmem:[#allocation2 + $0x80] sm:$0xff] }
  0xac   : > { %5244 = vst [vmem:[#allocation19_spill] sm:$0xff] %v3840_v22  ;;  %v1744_v7 = vadd.f32 %v1728_v24, %v1646_v30  ;;  %v1745_v19 = vadd.f32 %v1729_v6, %v1647_v31  ;;  %v999_v17 = vmul.f32 %v3868_v5, %v982_v43  ;;  %v1000_v18 = vmul.f32 %v3868_v5, %v983_v55  ;;  %v1081_v22 = vld [vmem:[#allocation2 + $0x6a] sm:$0xff] }
  0xad   : > { %5245 = vst [vmem:[#allocation20_spill] sm:$0xff] %v3850_v25  ;;  %v1458_v24 = vadd.f32 %v1442_v11, %v1360_v20  ;;  %v1459_v6 = vadd.f32 %v1443_v12, %v1361_v44  ;;  %v3885_v31 = vperm.slane %v3845_v23, 2  ;;  %v3888_v32 = vperm.slane %v3845_v23, 3 }
  0xae   : > { %v3875_v13 = vadd.f32 %v3850_v25, %v1744_v7  ;;  %v3878_v4 = vadd.f32 %v3850_v25, %v1745_v19  ;;  %5246 = vst [vmem:[#allocation21_spill] sm:$0xff] %v3880_v8  ;;  %v1015_v28 = vadd.f32 %v999_v17, %v901_v45  ;;  %v1016_v30 = vadd.f32 %v1000_v18, %v902_v16  ;;  %v3898_v17 = vld [vmem:[#allocation2 + $0x79] sm:$0xff] }
  0xaf   : > { %5247 = vst [vmem:[#allocation22_spill] sm:$0xff] %v3882_v10  ;;  %v1556_v39 = vadd.f32 %v1540_v26, %v1458_v24  ;;  %v1557_v43 = vadd.f32 %v1541_v14, %v1459_v6  ;;  %v1097_v11 = vmul.f32 %v3885_v31, %v1080_v21  ;;  %v1098_v12 = vmul.f32 %v3885_v31, %v1081_v22  ;;  %v1902_v26 = vld [vmem:[%s5125_s5] sm:$0x3] }
  0xb0   : > { %v2136_v7 = vsub.f32 0.0, %v3875_v13  ;;  %v2137_v33 = vsub.f32 0.0, %v3878_v4  ;;  %v1196_v55 = vmul.f32 %v3888_v32, %v3880_v8  ;;  %v1197_v19 = vmul.f32 %v3888_v32, %v3882_v10  ;;  %5248 = vst [vmem:[#allocation23_spill] sm:$0xff] %v3898_v17  ;;  %v3903_v21 = vld [vmem:[#allocation2 + $0x81] sm:$0xff] }
  0xb1   : > { %v1654_v45 = vadd.f32 %v1638_v15, %v1556_v39  ;;  %v1655_v16 = vadd.f32 %v1639_v27, %v1557_v43  ;;  %v1113_v14 = vadd.f32 %v1097_v11, %v1015_v28  ;;  %v1114_v18 = vadd.f32 %v1098_v12, %v1016_v30  ;;  %5249 = vst [vmem:[#allocation24_spill] sm:$0xff] %v3903_v21  ;;  %v3908_v24 = vld [vmem:[#allocation2 + $0x7a] sm:$0xff]  ;;  %v3919_v28 = vld [vmem:[%s5123_s3 + $0x8] ss:$0 sm:$0xff]  ;;  %v3923_v11 = vld [vmem:[#allocation2 + $0x90] sm:$0xff] }
  0xb2   : > { %v2152_v20 = vmul.f32 1.442695, %v2136_v7  ;;  %v2154_v44 = vmul.f32 1.442695, %v2137_v33  ;;  %v3906_v22 = vperm.slane %v3845_v23, 4  ;;  %5250 = vst [vmem:[#allocation25_spill] sm:$0xff] %v3908_v24 }
  0xb3   : > { %v3911_v6 = vperm.slane %v3845_v23, 5  ;;  %v1752_v15 = vadd.f32 %v1736_v56, %v1654_v45  ;;  %v1753_v27 = vadd.f32 %v1737_v57, %v1655_v16  ;;  %v1929_v7 = vsel %vm1927_vm11, %v1902_v26, 0  ;;  %v3914_v33 = vld [vmem:[#allocation2 + $0x82] sm:$0xff]  ;;  %5253 = vst [vmem:[#allocation28_spill] sm:$0xff] %v3923_v11  ;;  %v3925_v56 = vld [vmem:[#allocation2 + $0x92] sm:$0xff] }
  0xb4   : > { %3059 = vpow2.f32 %v2152_v20  ;;  %5252 = vst [vmem:[#allocation27_spill] sm:$0xff] %v3914_v33  ;;  %2999 = vmatpush.bf16.msra.mxu2 %v1929_v7  ;;  %v1212_v30 = vadd.f32 %v1196_v55, %v1113_v14  ;;  %v1213_v39 = vadd.f32 %v1197_v19, %v1114_v18  ;;  %v1295_v43 = vmul.f32 %v3906_v22, %v3898_v17  ;;  %v3937_v19 = vld [vmem:[#allocation2 + $0x98] sm:$0xff] }
  0xb5   : > { %5251 = vst [vmem:[#allocation26_spill] sm:$0xff] %v3911_v6  ;;  %3061 = vpow2.f32 %v2154_v44  ;;  %1938 = vmatpush.bf16.msra.mxu0 %v1929_v7  ;;  %v3928_v57 = vadd.f32 %v3850_v25, %v1752_v15  ;;  %v3931_v12 = vadd.f32 %v3850_v25, %v1753_v27  ;;  %v1296_v20 = vmul.f32 %v3906_v22, %v3903_v21  ;;  %v3939_v44 = vld [vmem:[#allocation2 + $0x91] sm:$0xff]  ;;  %v3941_v45 = vld [vmem:[#allocation2 + $0x99] sm:$0xff]  ;;  %v877_v7 = vld [vmem:[#allocation2 + $0x8] sm:$0xff] }
  0xb6   : > { %5254 = vst [vmem:[#allocation29_spill] sm:$0xff] %v3925_v56  ;;  %v1393_v55 = vmul.f32 %v3911_v6, %v3908_v24  ;;  %v1311_v16 = vadd.f32 %v1295_v43, %v1212_v30  ;;  %v1394_v26 = vmul.f32 %v3911_v6, %v3914_v33  ;;  %v3946_v14 = vperm.slane %v3845_v23, 6  ;;  %v3951_v15 = vld [vmem:[#allocation2 + $0x9a] sm:$0xff]  ;;  %v975_v33 = vld [vmem:[#allocation2 + $0x9] sm:$0xff] }
  0xb7   : > { %5255 = vst [vmem:[#allocation30_spill] sm:$0xff] %v3937_v19  ;;  %v3949_v18 = vperm.slane %v3845_v23, 7  ;;  %v876_v27 = vld [vmem:[#allocation2] sm:$0xff]  ;;  %v2144_v24 = vsub.f32 0.0, %v3928_v57  ;;  %v2145_v21 = vsub.f32 0.0, %v3931_v12  ;;  %v1312_v17 = vadd.f32 %v1296_v20, %v1213_v39 }
  0xb8   : > { %5256 = vst [vmem:[#allocation31_spill] sm:$0xff] %v3939_v44  ;;  %v1687_v30 = vmul.f32 %v3919_v28, %v3925_v56  ;;  %v974_v43 = vld [vmem:[#allocation2 + $0x1] sm:$0xff]  ;;  %v1409_v10 = vadd.f32 %v1393_v55, %v1311_v16  ;;  %v1491_v8 = vmul.f32 %v3946_v14, %v3923_v11  ;;  %v1492_v23 = vmul.f32 %v3946_v14, %v3937_v19  ;;  %v1073_v19 = vld [vmem:[#allocation2 + $0xa] sm:$0xff] }
  0xb9   : > { %5257 = vst [vmem:[#allocation32_spill] sm:$0xff] %v3941_v45  ;;  %v1589_v25 = vmul.f32 %v3949_v18, %v3939_v44  ;;  %v2168_v50 = vmul.f32 1.442695, %v2144_v24  ;;  %v2170_v46 = vmul.f32 1.442695, %v2145_v21  ;;  %v1410_v38 = vadd.f32 %v1394_v26, %v1312_v17  ;;  %v1072_v11 = vld [vmem:[#allocation2 + $0x2] sm:$0xff] }
  0xba   : > { %5258 = vst [vmem:[#allocation33_spill] sm:$0xff] %v3946_v14  ;;  %v3060_v51 = vpop.eup %3059  ;;  %v1590_v39 = vmul.f32 %v3949_v18, %v3941_v45  ;;  %v1507_v37 = vadd.f32 %v1491_v8, %v1409_v10  ;;  %v1688_v55 = vmul.f32 %v3919_v28, %v3951_v15  ;;  %v893_v16 = vmul.f32 %v3865_v58, %v876_v27  ;;  %v3971_v17 = vld [vmem:[%s5260_s29] ss:$0 sm:$0xff]  ;;  %v3974_v24 = vld [vmem:[#allocation2 + $0x18] sm:$0xff] }
  0xbb   : > { %5259 = vst [vmem:[#allocation34_spill] sm:$0xff] %v3951_v15  ;;  %v3062_v20 = vpop.eup %3061  ;;  %v2184_v56 = vadd.f32 1.0, %v3060_v51  ;;  %3063 = vpow2.f32 %v2168_v50  ;;  %v1508_v44 = vadd.f32 %v1492_v23, %v1410_v38  ;;  %v894_v21 = vmul.f32 %v3865_v58, %v877_v7  ;;  %v3978_v26 = vld [vmem:[#allocation2 + $0x20] sm:$0xff] }
  0xbc   : > { %v2185_v35 = vadd.f32 1.0, %v3062_v20  ;;  %5261 = vst [vmem:[#allocation35_spill] sm:$0xff] %v3974_v24  ;;  %v1605_v51 = vadd.f32 %v1589_v25, %v1507_v37  ;;  %v991_v8 = vmul.f32 %v3868_v5, %v974_v43  ;;  %v992_v10 = vmul.f32 %v3868_v5, %v975_v33  ;;  %v3980_v27 = vld [vmem:[#allocation2 + $0x19] sm:$0xff]  ;;  %v3982_v38 = vld [vmem:[#allocation2 + $0xc1] sm:$0xff] }
  0xbd   : > { %3065 = vrcp.f32 %v2184_v56  ;;  %5262 = vst [vmem:[#allocation36_spill] sm:$0xff] %v3978_v26  ;;  %v1606_v50 = vadd.f32 %v1590_v39, %v1508_v44  ;;  %v1089_v23 = vmul.f32 %v3885_v31, %v1072_v11  ;;  %v1090_v7 = vmul.f32 %v3885_v31, %v1073_v19  ;;  %v3986_v20 = vld [vmem:[#allocation2 + $0x21] sm:$0xff]  ;;  %v3988_v56 = vld [vmem:[#allocation2 + $0xc9] sm:$0xff] }
  0xbe   : > { %5263 = vst [vmem:[#allocation37_spill] sm:$0xff] %v3980_v27  ;;  %3067 = vrcp.f32 %v2185_v35  ;;  %v1703_v37 = vadd.f32 %v1687_v30, %v1605_v51  ;;  %v1007_v25 = vadd.f32 %v991_v8, %v893_v16  ;;  %v1008_v33 = vadd.f32 %v992_v10, %v894_v21  ;;  %v3992_v43 = vld [vmem:[#allocation2 + $0x1a] sm:$0xff]  ;;  %v3994_v15 = vld [vmem:[#allocation2 + $0x22] sm:$0xff]  ;;  %v3996_v35 = vld [vmem:[#allocation2 + $0x30] sm:$0xff] }
  0xbf   : > { %5264 = vst [vmem:[#allocation38_spill] sm:$0xff] %v3982_v38  ;;  %3069 = vpow2.f32 %v2170_v46  ;;  %v1704_v11 = vadd.f32 %v1688_v55, %v1606_v50  ;;  %v1188_v19 = vmul.f32 %v3888_v32, %v3974_v24  ;;  %v1189_v44 = vmul.f32 %v3888_v32, %v3978_v26  ;;  %v4011_v51 = vld [vmem:[#allocation2 + $0x38] sm:$0xff] }
  0xc0   : > { %5265 = vst [vmem:[#allocation39_spill] sm:$0xff] %v3986_v20  ;;  %v1287_v46 = vmul.f32 %v3906_v22, %v3980_v27  ;;  %v4007_v30 = vadd.f32 %v3971_v17, %v1703_v37  ;;  %v1105_v39 = vadd.f32 %v1089_v23, %v1007_v25  ;;  %v1106_v16 = vadd.f32 %v1090_v7, %v1008_v33  ;;  %v4013_v55 = vld [vmem:[#allocation2 + $0x31] sm:$0xff] }
  0xc1   : > { %5266 = vst [vmem:[#allocation40_spill] sm:$0xff] %v3988_v56  ;;  %v1288_v21 = vmul.f32 %v3906_v22, %v3986_v20  ;;  %v3064_v8 = vpop.eup %3063  ;;  %v4016_v10 = vadd.f32 %v3971_v17, %v1704_v11  ;;  %v1385_v50 = vmul.f32 %v3911_v6, %v3992_v43  ;;  %v1386_v37 = vmul.f32 %v3911_v6, %v3994_v15  ;;  %v4025_v20 = vld [vmem:[#allocation2 + $0x39] sm:$0xff] }
  0xc2   : > { %1765 = vst.msk [vmem:[#allocation2 + $0x1] sm:$0xff] %vm754_vm2, %v3982_v38  ;;  %v1483_v23 = vmul.f32 %v3946_v14, %v3996_v35  ;;  %v2192_v25 = vadd.f32 1.0, %v3064_v8  ;;  %v1806_v33 = vsub.f32 0.0, %v4007_v30  ;;  %v1205_v38 = vadd.f32 %v1189_v44, %v1106_v16 }
  0xc3   : > { %5267 = vst [vmem:[#allocation41_spill] sm:$0xff] %v3992_v43  ;;  %v3066_v7 = vpop.eup %3065  ;;  %v1807_v26 = vsub.f32 0.0, %v4016_v10  ;;  %v1484_v43 = vmul.f32 %v3946_v14, %v4011_v51  ;;  %v1582_v6 = vmul.f32 %v3949_v18, %v4025_v20 }
  0xc4   : > { %5268 = vst [vmem:[#allocation42_spill] sm:$0xff] %v3994_v15  ;;  %v3068_v27 = vpop.eup %3067  ;;  %v2216_v11 = vmul.f32 %v3066_v7, %v3875_v13  ;;  %v1581_v15 = vmul.f32 %v3949_v18, %v4013_v55  ;;  %3071 = vrcp.f32 %v2192_v25  ;;  %v1304_v7 = vadd.f32 %v1288_v21, %v1205_v38 }
  0xc5   : > { %5269 = vst [vmem:[#allocation43_spill] sm:$0xff] %v3996_v35  ;;  %v4033_v35 = vld [vmem:[#allocation2 + $0x32] sm:$0xff]  ;;  %v3070_v8 = vpop.eup %3069  ;;  %v2217_v24 = vmul.f32 %v3068_v27, %v3878_v4  ;;  %v1832_v13 = vmul.f32 1.442695, %v1807_v26  ;;  %v944_v27 = vmul.f32 %v3737_v47, %v3723_v34  ;;  %v1042_v38 = vmul.f32 %v3741_v49, %v3725_v36 }
  0xc6   : > { %1766 = vst.msk [vmem:[#allocation2 + $0x9] sm:$0xff] %vm754_vm2, %v3988_v56  ;;  %v1204_v56 = vadd.f32 %v1188_v19, %v1105_v39  ;;  %v1830_v19 = vmul.f32 1.442695, %v1806_v33  ;;  %v4036_v39 = vld [vmem:[#allocation2 + $0x3a] sm:$0xff]  ;;  %v2193_v16 = vadd.f32 1.0, %v3070_v8  ;;  %v1402_v45 = vadd.f32 %v1386_v37, %v1304_v7 }
  0xc7   : > { %5270 = vst [vmem:[#allocation44_spill] sm:$0xff] %v4011_v51  ;;  %v2232_v51 = vpack.c.bf16 %v2217_v24, %v2216_v11  ;;  %v1680_v4 = vmul.f32 %v3919_v28, %v4036_v39  ;;  %v945_v24 = vmul.f32 %v3739_v48, %v3723_v34  ;;  %v1140_v21 = vmul.f32 %v3747_v53, %v3727_v40 }
  0xc8   : > { %5271 = vst [vmem:[#allocation45_spill] sm:$0xff] %v4013_v55  ;;  %v1303_v44 = vadd.f32 %v1287_v46, %v1204_v56  ;;  %3073 = vpow2.f32 %v1830_v19  ;;  %v1679_v55 = vmul.f32 %v3919_v28, %v4033_v35  ;;  %v1500_v56 = vadd.f32 %v1484_v43, %v1402_v45  ;;  %v4065_v43 = vld [vmem:[#allocation3 + $0x48] sm:$0xff]  ;;  %v4074_v19 = vld [vmem:[#allocation3 + $0x50] sm:$0xff] }
  0xc9   : > { %3075 = vrcp.f32 %v2193_v16  ;;  %2988 = vmatmul.msk.bf16.vlgmr.msra.gmra.mxu1 %vm754_vm2, %v2232_v51  ;;  %v1043_v46 = vmul.f32 %v3745_v52, %v3725_v36  ;;  %v1141_v47 = vmul.f32 %v3749_v54, %v3727_v40  ;;  %v1773_v51 = vld [vmem:[#allocation3 + $0xe1] sm:$0xff]  ;;  %v1240_v48 = vmul.f32 %v3755_v59, %v3729_v41 }
  0xca   : > { %v1401_v14 = vadd.f32 %v1385_v50, %v1303_v44  ;;  %3077 = vpow2.f32 %v1832_v13  ;;  %v1772_v50 = vld [vmem:[#allocation3 + $0xd9] sm:$0xff]  ;;  %v3072_v37 = vpop.eup %3071  ;;  %v1241_v49 = vmul.f32 %v3757_v60, %v3729_v41  ;;  %v1598_v45 = vadd.f32 %v1582_v6, %v1500_v56  ;;  %1777 = vst.msk [vmem:[#allocation3 + $0x21] sm:$0xff] %vm754_vm2, %v1773_v51 }
  0xcb   : > { %1776 = vst.msk [vmem:[#allocation3 + $0x19] sm:$0xff] %vm754_vm2, %v1772_v50  ;;  %v2224_v52 = vmul.f32 %v3072_v37, %v3928_v57  ;;  %v1059_v53 = vadd.f32 %v1043_v46, %v945_v24  ;;  %v1338_v54 = vmul.f32 %v3759_v61, %v3731_v42  ;;  %v1339_v59 = vmul.f32 %v3765_v0, %v3731_v42  ;;  %v4094_v46 = vld [vmem:[#allocation3 + $0x52] sm:$0xff] }
  0xcc   : > { %v1499_v26 = vadd.f32 %v1483_v23, %v1401_v14  ;;  %v1058_v23 = vadd.f32 %v1042_v38, %v944_v27  ;;  %v1436_v60 = vmul.f32 %v3769_v2, %v3761_v62  ;;  %v1696_v6 = vadd.f32 %v1680_v4, %v1598_v45  ;;  %v4082_v2 = vld [vmem:[#allocation3 + $0x49] sm:$0xff]  ;;  %v4087_v27 = vld [vmem:[#allocation3 + $0x51] sm:$0xff] }
  0xcd   : > { %v1157_v8 = vadd.f32 %v1141_v47, %v1059_v53  ;;  %v1437_v61 = vmul.f32 %v3771_v3, %v3761_v62  ;;  %v1534_v0 = vmul.f32 %v3763_v63, %v4065_v43  ;;  %v1535_v56 = vmul.f32 %v3763_v63, %v4074_v19 }
  0xce   : > { %v1597_v14 = vadd.f32 %v1581_v15, %v1499_v26  ;;  %v3074_v15 = vpop.eup %3073  ;;  %v1156_v33 = vadd.f32 %v1140_v21, %v1058_v23  ;;  %v4085_v4 = vadd.f32 %v3971_v17, %v1696_v6  ;;  %v4089_v26 = vld [vmem:[#allocation3 + $0x4a] sm:$0xff]  ;;  %v1632_v50 = vmul.f32 %v3767_v1, %v4082_v2 }
  0xcf   : > { %v3076_v11 = vpop.eup %3075  ;;  %v1854_v57 = vadd.f32 1.0, %v3074_v15  ;;  %v1257_v3 = vadd.f32 %v1241_v49, %v1157_v8  ;;  %v1730_v23 = vmul.f32 %v3780_v9, %v4089_v26  ;;  %v952_v45 = vmul.f32 %v3802_v29, %v3723_v34  ;;  %v5275_v6 = vld [vmem:[#allocation12_spill] sm:$0xff] }
  0xd0   : > { %v1695_v25 = vadd.f32 %v1679_v55, %v1597_v14  ;;  %v3078_v44 = vpop.eup %3077  ;;  %v2225_v16 = vmul.f32 %v3076_v11, %v3931_v12  ;;  %v1256_v13 = vadd.f32 %v1240_v48, %v1156_v33  ;;  %v1799_v21 = vsub.f32 0.0, %v4085_v4  ;;  %v5274_v11 = vld [vmem:[#allocation11_spill] sm:$0xff] }
  0xd1   : > { %v1855_v7 = vadd.f32 1.0, %v3078_v44  ;;  %3079 = vrcp.f32 %v1854_v57  ;;  %v1355_v47 = vadd.f32 %v1339_v59, %v1257_v3  ;;  %v1633_v14 = vmul.f32 %v3767_v1, %v4087_v27 }
  0xd2   : > { %v4078_v55 = vadd.f32 %v3971_v17, %v1695_v25  ;;  %v2236_v12 = vpack.c.bf16 %v2225_v16, %v2224_v52  ;;  %v1354_v38 = vadd.f32 %v1338_v54, %v1256_v13  ;;  %v1816_v48 = vmul.f32 1.442695, %v1799_v21  ;;  %v5272_v54 = vld [vmem:[#allocation9_spill] sm:$0xff]  ;;  %v5273_v25 = vld [vmem:[#allocation10_spill] sm:$0xff] }
  0xd3   : > { %3081 = vrcp.f32 %v1855_v7  ;;  %v1453_v49 = vadd.f32 %v1437_v61, %v1355_v47  ;;  %v1731_v52 = vmul.f32 %v3780_v9, %v4094_v46  ;;  %v953_v15 = vmul.f32 %v5272_v54, %v3723_v34  ;;  %v5276_v16 = vld [vmem:[#allocation13_spill] sm:$0xff] }
  0xd4   : > { %v1798_v24 = vsub.f32 0.0, %v4078_v55  ;;  %2992 = vmatmul.msk.bf16.vlgmr.msra.gmra.mxu3 %vm754_vm2, %v2236_v12  ;;  %v1452_v37 = vadd.f32 %v1436_v60, %v1354_v38  ;;  %v1050_v33 = vmul.f32 %v5273_v25, %v3725_v36  ;;  %v1051_v57 = vmul.f32 %v5274_v11, %v3725_v36  ;;  %v5277_v12 = vld [vmem:[#allocation14_spill] sm:$0xff]  ;;  %v5278_v38 = vld [vmem:[#allocation15_spill] sm:$0xff] }
  0xd5   : > { %v1551_v60 = vadd.f32 %v1535_v56, %v1453_v49  ;;  %v1148_v8 = vmul.f32 %v5275_v6, %v3727_v40  ;;  %v1149_v13 = vmul.f32 %v5276_v16, %v3727_v40  ;;  %v1249_v56 = vmul.f32 %v5278_v38, %v3729_v41  ;;  %v4146_v16 = vld [vmem:[#allocation3 + $0xb1] sm:$0xff] }
  0xd6   : > { %v1814_v51 = vmul.f32 1.442695, %v1798_v24  ;;  %v1550_v53 = vadd.f32 %v1534_v0, %v1452_v37  ;;  %v1066_v44 = vadd.f32 %v1050_v33, %v952_v45  ;;  %v1067_v3 = vadd.f32 %v1051_v57, %v953_v15  ;;  %v4126_v37 = vld [vmem:[#allocation3 + $0xa8] sm:$0xff]  ;;  %v4132_v15 = vld [vmem:[#allocation3 + $0xb0] sm:$0xff] }
  0xd7   : > { %v3080_v59 = vpop.eup %3079  ;;  %v1649_v7 = vadd.f32 %v1633_v14, %v1551_v60  ;;  %v1248_v24 = vmul.f32 %v5277_v12, %v3729_v41  ;;  %v5280_v14 = vld [vmem:[#allocation17_spill] sm:$0xff]  ;;  %v5283_v60 = vld [vmem:[#allocation19_spill] sm:$0xff] }
  0xd8   : > { %3083 = vpow2.f32 %v1814_v51  ;;  %v1886_v61 = vmul.f32 %v3080_v59, %v4007_v30  ;;  %v1648_v29 = vadd.f32 %v1632_v50, %v1550_v53  ;;  %v1164_v51 = vadd.f32 %v1148_v8, %v1066_v44  ;;  %v5279_v30 = vld [vmem:[#allocation16_spill] sm:$0xff]  ;;  %v5281_v53 = vld [vmem:[#allocation18_spill] sm:$0xff] }
  0xd9   : > { %3085 = vpow2.f32 %v1816_v48  ;;  %v3082_v0 = vpop.eup %3081  ;;  %v1346_v50 = vmul.f32 %v5279_v30, %v3731_v42  ;;  %v1747_v48 = vadd.f32 %v1731_v52, %v1649_v7  ;;  %v1165_v49 = vadd.f32 %v1149_v13, %v1067_v3  ;;  %v4139_v57 = vld [vmem:[#allocation3 + $0xa9] sm:$0xff]  ;;  %v4154_v12 = vld [vmem:[#allocation3 + $0xb2] sm:$0xff] }
  0xda   : > { %v1887_v21 = vmul.f32 %v3082_v0, %v4016_v10  ;;  %v1746_v47 = vadd.f32 %v1730_v23, %v1648_v29  ;;  %v1347_v45 = vmul.f32 %v5280_v14, %v3731_v42  ;;  %v1444_v54 = vmul.f32 %v5281_v53, %v3761_v62  ;;  %v5282_v10 = vld [vmem:[#allocation20_spill] sm:$0xff] }
  0xdb   : > { %v1264_v59 = vadd.f32 %v1248_v24, %v1164_v51  ;;  %v1445_v11 = vmul.f32 %v5283_v60, %v3761_v62  ;;  %v4142_v8 = vadd.f32 %v5282_v10, %v1747_v48  ;;  %v1265_v29 = vadd.f32 %v1249_v56, %v1165_v49  ;;  %v4152_v3 = vld [vmem:[#allocation3 + $0xaa] sm:$0xff] }
  0xdc   : > { %v1898_v33 = vpack.c.bf16 %v1887_v21, %v1886_v61  ;;  %v4135_v23 = vadd.f32 %v5282_v10, %v1746_v47  ;;  %v1542_v44 = vmul.f32 %v3763_v63, %v4126_v37  ;;  %v1543_v7 = vmul.f32 %v3763_v63, %v4132_v15 }
  0xdd   : > { %v1362_v0 = vadd.f32 %v1346_v50, %v1264_v59  ;;  %v2139_v24 = vsub.f32 0.0, %v4142_v8  ;;  %v1363_v38 = vadd.f32 %v1347_v45, %v1265_v29  ;;  %v1640_v56 = vmul.f32 %v3767_v1, %v4139_v57  ;;  %v5284_v45 = vld [vmem:[#allocation21_spill] sm:$0xff]  ;;  %v5286_v59 = vld [vmem:[#allocation23_spill] sm:$0xff] }
  0xde   : > { %v3084_v25 = vpop.eup %3083  ;;  %2984 = vmatmul.msk.bf16.vlgmr.msra.gmra.mxu2 %vm754_vm2, %v1898_v33  ;;  %v2138_v13 = vsub.f32 0.0, %v4135_v23  ;;  %v1641_v51 = vmul.f32 %v3767_v1, %v4146_v16  ;;  %v1738_v48 = vmul.f32 %v3780_v9, %v4152_v3  ;;  %v1739_v49 = vmul.f32 %v3780_v9, %v4154_v12  ;;  %v5288_v29 = vld [vmem:[#allocation25_spill] sm:$0xff] }
  0xdf   : > { %v3086_v52 = vpop.eup %3085  ;;  %v1846_v6 = vadd.f32 1.0, %v3084_v25  ;;  %v1460_v47 = vadd.f32 %v1444_v54, %v1362_v0  ;;  %v2158_v30 = vmul.f32 1.442695, %v2139_v24  ;;  %v1461_v50 = vadd.f32 %v1445_v11, %v1363_v38  ;;  %v5285_v25 = vld [vmem:[#allocation22_spill] sm:$0xff]  ;;  %v5287_v11 = vld [vmem:[#allocation24_spill] sm:$0xff] }
  0xe0   : > { %v1847_v61 = vadd.f32 1.0, %v3086_v52  ;;  %v2156_v21 = vmul.f32 1.442695, %v2138_v13  ;;  %v903_v53 = vmul.f32 %v5284_v45, %v3865_v58  ;;  %v904_v33 = vmul.f32 %v5285_v25, %v3865_v58  ;;  %v5290_v13 = vld [vmem:[#allocation28_spill] sm:$0xff]  ;;  %v5293_v25 = vld [vmem:[#allocation31_spill] sm:$0xff] }
  0xe1   : > { %3087 = vrcp.f32 %v1846_v6  ;;  %v1558_v14 = vadd.f32 %v1542_v44, %v1460_v47  ;;  %v1559_v54 = vadd.f32 %v1543_v7, %v1461_v50  ;;  %v1001_v60 = vmul.f32 %v5286_v59, %v3868_v5  ;;  %v5289_v44 = vld [vmem:[#allocation27_spill] sm:$0xff]  ;;  %v5291_v47 = vld [vmem:[#allocation30_spill] sm:$0xff] }
  0xe2   : > { %3089 = vrcp.f32 %v1847_v61  ;;  %v1002_v52 = vmul.f32 %v5287_v11, %v3868_v5  ;;  %v1099_v9 = vmul.f32 %v5288_v29, %v3885_v31  ;;  %v1100_v61 = vmul.f32 %v5289_v44, %v3885_v31  ;;  %v4181_v50 = vld [vmem:[#allocation2 + $0xa8] sm:$0xff]  ;;  %v5294_v11 = vld [vmem:[#allocation32_spill] sm:$0xff] }
  0xe3   : > { %3091 = vpow2.f32 %v2156_v21  ;;  %v1656_v6 = vadd.f32 %v1640_v56, %v1558_v14  ;;  %v1198_v0 = vmul.f32 %v5290_v13, %v3888_v32  ;;  %v1657_v38 = vadd.f32 %v1641_v51, %v1559_v54  ;;  %5292 = vst [vmem:[#allocation9_spill] sm:$0xff] %v4181_v50  ;;  %v4189_v54 = vld [vmem:[#allocation2 + $0xb0] sm:$0xff]  ;;  %v5296_v13 = vld [vmem:[#allocation26_spill] sm:$0xff] }
  0xe4   : > { %3093 = vpow2.f32 %v2158_v30  ;;  %v1017_v21 = vadd.f32 %v1001_v60, %v903_v53  ;;  %v1018_v7 = vadd.f32 %v1002_v52, %v904_v33  ;;  %v1199_v30 = vmul.f32 %v5291_v47, %v3888_v32  ;;  %5295 = vst [vmem:[#allocation10_spill] sm:$0xff] %v4189_v54  ;;  %v5299_v47 = vld [vmem:[#allocation33_spill] sm:$0xff] }
  0xe5   : > { %v1754_v14 = vadd.f32 %v1738_v48, %v1656_v6  ;;  %v1297_v59 = vmul.f32 %v5293_v25, %v3906_v22  ;;  %v1298_v29 = vmul.f32 %v5294_v11, %v3906_v22  ;;  %v1755_v51 = vadd.f32 %v1739_v49, %v1657_v38  ;;  %v5298_v6 = vld [vmem:[#allocation34_spill] sm:$0xff] }
  0xe6   : > { %v1115_v53 = vadd.f32 %v1099_v9, %v1017_v21  ;;  %v1116_v33 = vadd.f32 %v1100_v61, %v1018_v7  ;;  %v1493_v25 = vmul.f32 %v5299_v47, %v4181_v50  ;;  %v4200_v11 = vld [vmem:[#allocation2 + $0xa9] sm:$0xff]  ;;  %v4205_v21 = vld [vmem:[#allocation2 + $0xb1] sm:$0xff] }
  0xe7   : > { %v3088_v24 = vpop.eup %3087  ;;  %v4192_v52 = vadd.f32 %v5282_v10, %v1754_v14  ;;  %5300 = vst [vmem:[#allocation11_spill] sm:$0xff] %v4200_v11  ;;  %v4203_v61 = vadd.f32 %v5282_v10, %v1755_v51  ;;  %v4212_v50 = vld [vmem:[#allocation2 + $0xb2] sm:$0xff] }
  0xe8   : > { %v3090_v45 = vpop.eup %3089  ;;  %v1878_v56 = vmul.f32 %v3088_v24, %v4078_v55  ;;  %v5297_v55 = vld [vmem:[#allocation29_spill] sm:$0xff]  ;;  %v1396_v24 = vmul.f32 %v5298_v6, %v5296_v13  ;;  %v1214_v38 = vadd.f32 %v1198_v0, %v1115_v53  ;;  %5301 = vst [vmem:[#allocation12_spill] sm:$0xff] %v4205_v21  ;;  %v1215_v14 = vadd.f32 %v1199_v30, %v1116_v33  ;;  %v4210_v6 = vld [vmem:[#allocation2 + $0xaa] sm:$0xff] }
  0xe9   : > { %v1879_v44 = vmul.f32 %v3090_v45, %v4085_v4  ;;  %v3092_v60 = vpop.eup %3091  ;;  %v1395_v48 = vmul.f32 %v5297_v55, %v5296_v13  ;;  %v2146_v45 = vsub.f32 0.0, %v4192_v52  ;;  %v1494_v55 = vmul.f32 %v5299_v47, %v4189_v54  ;;  %5302 = vst [vmem:[#allocation13_spill] sm:$0xff] %v4210_v6 }
  0xea   : > { %v3094_v4 = vpop.eup %3093  ;;  %v2186_v9 = vadd.f32 1.0, %v3092_v60  ;;  %5303 = vst [vmem:[#allocation14_spill] sm:$0xff] %v4212_v50  ;;  %v2147_v10 = vsub.f32 0.0, %v4203_v61  ;;  %v1591_v0 = vmul.f32 %v3949_v18, %v4200_v11  ;;  %v1314_v51 = vadd.f32 %v1298_v29, %v1215_v14 }
  0xeb   : > { %v1894_v49 = vpack.c.bf16 %v1879_v44, %v1878_v56  ;;  %v2187_v7 = vadd.f32 1.0, %v3094_v4  ;;  %v1313_v56 = vadd.f32 %v1297_v59, %v1214_v38  ;;  %v2172_v44 = vmul.f32 1.442695, %v2146_v45  ;;  %v5304_v59 = vld [vmem:[#allocation35_spill] sm:$0xff]  ;;  %v5305_v38 = vld [vmem:[#allocation36_spill] sm:$0xff]  ;;  %v5306_v45 = vld [vmem:[#allocation37_spill] sm:$0xff] }
  0xec   : > { %3095 = vrcp.f32 %v2186_v9  ;;  %v1592_v30 = vmul.f32 %v3949_v18, %v4205_v21  ;;  %v2174_v53 = vmul.f32 1.442695, %v2147_v10  ;;  %v1689_v60 = vmul.f32 %v3919_v28, %v4210_v6  ;;  %v5308_v6 = vld [vmem:[#allocation41_spill] sm:$0xff] }
  0xed   : > { %2980 = vmatmul.msk.bf16.vlgmr.msra.gmra.mxu0 %vm754_vm2, %v1894_v49  ;;  %3097 = vrcp.f32 %v2187_v7  ;;  %v1411_v33 = vadd.f32 %v1395_v48, %v1313_v56  ;;  %v1690_v4 = vmul.f32 %v3919_v28, %v4212_v50  ;;  %v1412_v49 = vadd.f32 %v1396_v24, %v1314_v51  ;;  %v5307_v48 = vld [vmem:[#allocation39_spill] sm:$0xff]  ;;  %v5309_v24 = vld [vmem:[#allocation42_spill] sm:$0xff]  ;;  %v4238_v21 = vld [vmem:[#allocation2 + $0xd9] sm:$0xff] }
  0xee   : > { %3099 = vpow2.f32 %v2172_v44  ;;  %v895_v9 = vmul.f32 %v5304_v59, %v3865_v58  ;;  %v896_v7 = vmul.f32 %v5305_v38, %v3865_v58  ;;  %v993_v14 = vmul.f32 %v5306_v45, %v3868_v5  ;;  %v5310_v51 = vld [vmem:[#allocation43_spill] sm:$0xff]  ;;  %5311 = vst [vmem:[#allocation15_spill] sm:$0xff] %v4238_v21  ;;  %v5312_v45 = vld [vmem:[#allocation44_spill] sm:$0xff] }
  0xef   : > { %3101 = vpow2.f32 %v2174_v53  ;;  %v1509_v29 = vadd.f32 %v1493_v25, %v1411_v33  ;;  %v994_v10 = vmul.f32 %v5307_v48, %v3868_v5  ;;  %v1510_v56 = vadd.f32 %v1494_v55, %v1412_v49  ;;  %v4242_v48 = vld [vmem:[#allocation2 + $0x48] sm:$0xff]  ;;  %1767 = vst.msk [vmem:[#allocation2 + $0x19] sm:$0xff] %vm754_vm2, %v4238_v21 }
  0xf0   : > { %v1091_v50 = vmul.f32 %v5308_v6, %v3885_v31  ;;  %v1092_v44 = vmul.f32 %v5309_v24, %v3885_v31  ;;  %v1190_v59 = vmul.f32 %v5310_v51, %v3888_v32  ;;  %v1009_v33 = vadd.f32 %v993_v14, %v895_v9  ;;  %v4244_v55 = vld [vmem:[#allocation2 + $0xe1] sm:$0xff] }
  0xf1   : > { %v1607_v25 = vadd.f32 %v1591_v0, %v1509_v29  ;;  %v1010_v38 = vadd.f32 %v994_v10, %v896_v7  ;;  %v1191_v11 = vmul.f32 %v5312_v45, %v3888_v32  ;;  %5313 = vst [vmem:[#allocation16_spill] sm:$0xff] %v4244_v55  ;;  %v1608_v24 = vadd.f32 %v1592_v30, %v1510_v56  ;;  %v5314_v51 = vld [vmem:[#allocation45_spill] sm:$0xff]  ;;  %v4256_v10 = vld [vmem:[#allocation2 + $0x50] sm:$0xff] }
  0xf2   : > { %v3096_v53 = vpop.eup %3095  ;;  %v1289_v54 = vmul.f32 %v5314_v51, %v3906_v22  ;;  %v1290_v0 = vmul.f32 %v4025_v20, %v3906_v22  ;;  %1768 = vst.msk [vmem:[#allocation2 + $0x21] sm:$0xff] %vm754_vm2, %v4244_v55  ;;  %v1107_v29 = vadd.f32 %v1091_v50, %v1009_v33  ;;  %v1388_v30 = vmul.f32 %v4036_v39, %v5296_v13  ;;  %v4264_v56 = vld [vmem:[#allocation2 + $0x49] sm:$0xff]  ;;  %v929_v51 = vld [vmem:[#allocation3 + $0x30] sm:$0xff] }
  0xf3   : > { %v3098_v6 = vpop.eup %3097  ;;  %v2218_v49 = vmul.f32 %v3096_v53, %v4135_v23  ;;  %v1705_v7 = vadd.f32 %v1689_v60, %v1607_v25  ;;  %v1108_v14 = vadd.f32 %v1092_v44, %v1010_v38  ;;  %v1706_v21 = vadd.f32 %v1690_v4, %v1608_v24  ;;  %5315 = vst [vmem:[#allocation17_spill] sm:$0xff] %v4264_v56  ;;  %v4269_v25 = vld [vmem:[#allocation2 + $0x51] sm:$0xff] }
  0xf4   : > { %v2219_v9 = vmul.f32 %v3098_v6, %v4142_v8  ;;  %v3100_v45 = vpop.eup %3099  ;;  %v1387_v23 = vmul.f32 %v4033_v35, %v5296_v13  ;;  %v1485_v20 = vmul.f32 %v5299_v47, %v4242_v48  ;;  %v1206_v44 = vadd.f32 %v1190_v59, %v1107_v29  ;;  %5316 = vst [vmem:[#allocation18_spill] sm:$0xff] %v4269_v25  ;;  %v4276_v38 = vld [vmem:[#allocation2 + $0x4a] sm:$0xff]  ;;  %v4278_v6 = vld [vmem:[#allocation2 + $0x52] sm:$0xff]  ;;  %v1027_v29 = vld [vmem:[#allocation3 + $0x31] sm:$0xff] }
  0xf5   : > { %v3102_v53 = vpop.eup %3101  ;;  %v2194_v60 = vadd.f32 1.0, %v3100_v45  ;;  %v4267_v50 = vadd.f32 %v3971_v17, %v1705_v7  ;;  %v4272_v35 = vadd.f32 %v3971_v17, %v1706_v21  ;;  %v1207_v33 = vadd.f32 %v1191_v11, %v1108_v14  ;;  %5317 = vst [vmem:[#allocation20_spill] sm:$0xff] %v4276_v38  ;;  %v930_v21 = vld [vmem:[#allocation3 + $0x38] sm:$0xff] }
  0xf6   : > { %v2233_v8 = vpack.c.bf16 %v2219_v9, %v2218_v49  ;;  %v2195_v4 = vadd.f32 1.0, %v3102_v53  ;;  %v1486_v39 = vmul.f32 %v5299_v47, %v4256_v10  ;;  %5318 = vst [vmem:[#allocation19_spill] sm:$0xff] %v4278_v6  ;;  %v1305_v59 = vadd.f32 %v1289_v54, %v1206_v44  ;;  %v1028_v14 = vld [vmem:[#allocation3 + $0x39] sm:$0xff] }
  0xf7   : > { %3103 = vrcp.f32 %v2194_v60  ;;  %v1808_v49 = vsub.f32 0.0, %v4267_v50  ;;  %v1583_v24 = vmul.f32 %v3949_v18, %v4264_v56  ;;  %v1809_v11 = vsub.f32 0.0, %v4272_v35  ;;  %v1125_v60 = vld [vmem:[#allocation3 + $0x32] sm:$0xff]  ;;  %v1126_v44 = vld [vmem:[#allocation3 + $0x3a] sm:$0xff] }
  0xf8   : > { %2989 = vmatmul.msk.bf16.gmra.mxu1 %vm754_vm2, %v2233_v8  ;;  %3105 = vrcp.f32 %v2195_v4  ;;  %v1306_v9 = vadd.f32 %v1290_v0, %v1207_v33  ;;  %v1584_v7 = vmul.f32 %v3949_v18, %v4269_v25  ;;  %v1403_v53 = vadd.f32 %v1387_v23, %v1305_v59 }
  0xf9   : > { %v1834_v45 = vmul.f32 1.442695, %v1808_v49  ;;  %v1681_v8 = vmul.f32 %v3919_v28, %v4276_v38  ;;  %v1682_v54 = vmul.f32 %v3919_v28, %v4278_v6  ;;  %v1836_v55 = vmul.f32 1.442695, %v1809_v11 }
  0xfa   : > { %v1404_v4 = vadd.f32 %v1388_v30, %v1306_v9  ;;  %v946_v56 = vmul.f32 %v3723_v34, %v929_v51  ;;  %v947_v0 = vmul.f32 %v3723_v34, %v930_v21  ;;  %v1501_v33 = vadd.f32 %v1485_v20, %v1403_v53 }
  0xfb   : > { %3107 = vpow2.f32 %v1834_v45  ;;  %v1044_v25 = vmul.f32 %v3725_v36, %v1027_v29  ;;  %v1045_v23 = vmul.f32 %v3725_v36, %v1028_v14  ;;  %v1142_v59 = vmul.f32 %v3727_v40, %v1125_v60  ;;  %v4320_v60 = vld [vmem:[#allocation3 + $0x69] sm:$0xff] }
  0xfc   : > { %3109 = vpow2.f32 %v1836_v55  ;;  %v1502_v49 = vadd.f32 %v1486_v39, %v1404_v4  ;;  %v1143_v28 = vmul.f32 %v3727_v40, %v1126_v44  ;;  %v1599_v38 = vadd.f32 %v1583_v24, %v1501_v33 }
  0xfd   : > { %v3104_v6 = vpop.eup %3103  ;;  %v1060_v11 = vadd.f32 %v1044_v25, %v946_v56  ;;  %v1061_v30 = vadd.f32 %v1045_v23, %v947_v0  ;;  %v1242_v51 = vmul.f32 %v4065_v43, %v3729_v41  ;;  %v1243_v29 = vmul.f32 %v4074_v19, %v3729_v41  ;;  %v4305_v56 = vld [vmem:[#allocation3 + $0x60] sm:$0xff]  ;;  %v4307_v25 = vld [vmem:[#allocation3 + $0x68] sm:$0xff] }
  0xfe   : > { %v3106_v21 = vpop.eup %3105  ;;  %v2226_v20 = vmul.f32 %v3104_v6, %v4192_v52  ;;  %v1600_v9 = vadd.f32 %v1584_v7, %v1502_v49  ;;  %v1340_v55 = vmul.f32 %v4082_v2, %v3731_v42  ;;  %v1697_v14 = vadd.f32 %v1681_v8, %v1599_v38  ;;  %v4318_v8 = vld [vmem:[#allocation3 + $0x61] sm:$0xff] }
  0xff   : > { %v2227_v39 = vmul.f32 %v3106_v21, %v4203_v61  ;;  %v1158_v45 = vadd.f32 %v1142_v59, %v1060_v11  ;;  %v1159_v24 = vadd.f32 %v1143_v28, %v1061_v30  ;;  %v1341_v52 = vmul.f32 %v4087_v27, %v3731_v42  ;;  %v4331_v49 = vld [vmem:[#allocation3 + $0x62] sm:$0xff]  ;;  %v4333_v59 = vld [vmem:[#allocation3 + $0x6a] sm:$0xff] }
 0x100   : > { %v1698_v43 = vadd.f32 %v1682_v54, %v1600_v9  ;;  %v1438_v6 = vmul.f32 %v4089_v26, %v3761_v62  ;;  %v1439_v19 = vmul.f32 %v4094_v46, %v3761_v62  ;;  %v4316_v61 = vadd.f32 %v3971_v17, %v1697_v14  ;;  %v937_v28 = vld [vmem:[#allocation3 + $0x90] sm:$0xff] }
 0x101   : > { %v3108_v2 = vpop.eup %3107  ;;  %v2237_v7 = vpack.c.bf16 %v2227_v39, %v2226_v20  ;;  %v1258_v38 = vadd.f32 %v1242_v51, %v1158_v45  ;;  %v1259_v53 = vadd.f32 %v1243_v29, %v1159_v24  ;;  %v1536_v26 = vmul.f32 %v3763_v63, %v4305_v56  ;;  %v938_v51 = vld [vmem:[#allocation3 + $0x98] sm:$0xff] }
 0x102   : > { %v3110_v54 = vpop.eup %3109  ;;  %v1856_v44 = vadd.f32 1.0, %v3108_v2  ;;  %v4323_v27 = vadd.f32 %v3971_v17, %v1698_v43  ;;  %v1537_v46 = vmul.f32 %v3763_v63, %v4307_v25  ;;  %v1800_v0 = vsub.f32 0.0, %v4316_v61  ;;  %v1035_v29 = vld [vmem:[#allocation3 + $0x91] sm:$0xff]  ;;  %v1134_v2 = vld [vmem:[#allocation3 + $0x9a] sm:$0xff] }
 0x103   : > { %2993 = vmatmul.msk.bf16.gmra.mxu3 %vm754_vm2, %v2237_v7  ;;  %v1857_v4 = vadd.f32 1.0, %v3110_v54  ;;  %v1356_v33 = vadd.f32 %v1340_v55, %v1258_v38  ;;  %v1357_v23 = vadd.f32 %v1341_v52, %v1259_v53  ;;  %v1634_v11 = vmul.f32 %v3767_v1, %v4318_v8  ;;  %v1036_v55 = vld [vmem:[#allocation3 + $0x99] sm:$0xff]  ;;  %v4343_v45 = vld [vmem:[%s5128_s8 + $0x8] ss:$0 sm:$0xff] }
 0x104   : > { %3111 = vrcp.f32 %v1856_v44  ;;  %v1801_v17 = vsub.f32 0.0, %v4323_v27  ;;  %v1635_v30 = vmul.f32 %v3767_v1, %v4320_v60  ;;  %v1818_v21 = vmul.f32 1.442695, %v1800_v0  ;;  %v1133_v39 = vld [vmem:[#allocation3 + $0x92] sm:$0xff] }
 0x105   : > { %3113 = vrcp.f32 %v1857_v4  ;;  %v1454_v20 = vadd.f32 %v1438_v6, %v1356_v33  ;;  %v1455_v9 = vadd.f32 %v1439_v19, %v1357_v23  ;;  %v1732_v24 = vmul.f32 %v4343_v45, %v4331_v49 }
 0x106   : > { %v1820_v14 = vmul.f32 1.442695, %v1801_v17  ;;  %v1733_v43 = vmul.f32 %v4343_v45, %v4333_v59  ;;  %v954_v52 = vmul.f32 %v3723_v34, %v937_v28  ;;  %3115 = vpow2.f32 %v1818_v21 }
 0x107   : > { %v1552_v6 = vadd.f32 %v1536_v26, %v1454_v20  ;;  %v1553_v19 = vadd.f32 %v1537_v46, %v1455_v9  ;;  %v955_v7 = vmul.f32 %v3723_v34, %v938_v51  ;;  %v1052_v38 = vmul.f32 %v3725_v36, %v1035_v29  ;;  %v4361_v51 = vld [vmem:[#allocation3 + $0xc0] sm:$0xff] }
 0x108   : > { %3117 = vpow2.f32 %v1820_v14  ;;  %v1053_v53 = vmul.f32 %v3725_v36, %v1036_v55  ;;  %v1150_v54 = vmul.f32 %v3727_v40, %v1133_v39  ;;  %v1151_v0 = vmul.f32 %v3727_v40, %v1134_v2  ;;  %v4369_v39 = vld [vmem:[#allocation3 + $0xc8] sm:$0xff] }
 0x109   : > { %v1650_v44 = vadd.f32 %v1634_v11, %v1552_v6  ;;  %v1651_v4 = vadd.f32 %v1635_v30, %v1553_v19  ;;  %v1250_v33 = vmul.f32 %v4126_v37, %v3729_v41  ;;  %v1068_v28 = vadd.f32 %v1052_v38, %v954_v52  ;;  %5319 = vst [vmem:[#allocation21_spill] sm:$0xff] %v4369_v39  ;;  %v4374_v52 = vld [vmem:[%s5129_s9] ss:$0 sm:$0xff]  ;;  %v4386_v2 = vld [vmem:[#allocation3 + $0xc1] sm:$0xff] }
 0x10a   : > { %v3112_v23 = vpop.eup %3111  ;;  %v1069_v26 = vadd.f32 %v1053_v53, %v955_v7  ;;  %v1251_v46 = vmul.f32 %v4132_v15, %v3729_v41  ;;  %v1348_v17 = vmul.f32 %v4139_v57, %v3731_v42  ;;  %v1349_v9 = vmul.f32 %v4146_v16, %v3731_v42  ;;  %5320 = vst [vmem:[#allocation22_spill] sm:$0xff] %v4374_v52 }
 0x10b   : > { %v3114_v21 = vpop.eup %3113  ;;  %v1888_v11 = vmul.f32 %v3112_v23, %v4267_v50  ;;  %v1748_v30 = vadd.f32 %v1732_v24, %v1650_v44  ;;  %v1749_v20 = vadd.f32 %v1733_v43, %v1651_v4  ;;  %v1166_v29 = vadd.f32 %v1150_v54, %v1068_v28  ;;  %5321 = vst [vmem:[#allocation23_spill] sm:$0xff] %v4386_v2  ;;  %v4388_v54 = vld [vmem:[#allocation3 + $0xc9] sm:$0xff] }
 0x10c   : > { %v1889_v37 = vmul.f32 %v3114_v21, %v4272_v35  ;;  %v1167_v55 = vadd.f32 %v1151_v0, %v1069_v26  ;;  %v1446_v15 = vmul.f32 %v4152_v3, %v3761_v62  ;;  %v3116_v14 = vpop.eup %3115  ;;  %v1447_v35 = vmul.f32 %v4154_v12, %v3761_v62  ;;  %5322 = vst [vmem:[#allocation24_spill] sm:$0xff] %v4388_v54  ;;  %v4394_v28 = vld [vmem:[#allocation3 + $0xc2] sm:$0xff]  ;;  %v4396_v26 = vld [vmem:[#allocation3 + $0xca] sm:$0xff] }
 0x10d   : > { %v4377_v50 = vadd.f32 %v4374_v52, %v1748_v30  ;;  %v4380_v24 = vadd.f32 %v4374_v52, %v1749_v20  ;;  %v1544_v43 = vmul.f32 %v3763_v63, %v4361_v51  ;;  %v1848_v7 = vadd.f32 1.0, %v3116_v14  ;;  %5323 = vst [vmem:[#allocation25_spill] sm:$0xff] %v4394_v28  ;;  %v889_v30 = vld [vmem:[#allocation2 + $0x98] sm:$0xff] }
 0x10e   : > { %v3118_v6 = vpop.eup %3117  ;;  %v1899_v19 = vpack.c.bf16 %v1889_v37, %v1888_v11  ;;  %v1266_v38 = vadd.f32 %v1250_v33, %v1166_v29  ;;  %v1267_v53 = vadd.f32 %v1251_v46, %v1167_v55  ;;  %v1545_v23 = vmul.f32 %v3763_v63, %v4369_v39  ;;  %5324 = vst [vmem:[#allocation27_spill] sm:$0xff] %v4396_v26  ;;  %v888_v11 = vld [vmem:[#allocation2 + $0x90] sm:$0xff]  ;;  %v987_v14 = vld [vmem:[#allocation2 + $0x99] sm:$0xff] }
 0x10f   : > { %v1849_v44 = vadd.f32 1.0, %v3118_v6  ;;  %v2140_v4 = vsub.f32 0.0, %v4377_v50  ;;  %v2141_v0 = vsub.f32 0.0, %v4380_v24  ;;  %3119 = vrcp.f32 %v1848_v7  ;;  %v986_v20 = vld [vmem:[#allocation2 + $0x91] sm:$0xff]  ;;  %v1085_v7 = vld [vmem:[#allocation2 + $0x9a] sm:$0xff] }
 0x110   : > { %2985 = vmatmul.msk.bf16.gmra.mxu2 %vm754_vm2, %v1899_v19  ;;  %v1364_v21 = vadd.f32 %v1348_v17, %v1266_v38  ;;  %v1365_v33 = vadd.f32 %v1349_v9, %v1267_v53  ;;  %v1642_v46 = vmul.f32 %v3767_v1, %v4386_v2  ;;  %v1643_v55 = vmul.f32 %v3767_v1, %v4388_v54  ;;  %v1084_v9 = vld [vmem:[#allocation2 + $0x92] sm:$0xff] }
 0x111   : > { %3121 = vrcp.f32 %v1849_v44  ;;  %v2160_v37 = vmul.f32 1.442695, %v2140_v4  ;;  %v2162_v29 = vmul.f32 1.442695, %v2141_v0  ;;  %v1740_v19 = vmul.f32 %v4343_v45, %v4394_v28 }
 0x112   : > { %v1462_v6 = vadd.f32 %v1446_v15, %v1364_v21  ;;  %v1463_v39 = vadd.f32 %v1447_v35, %v1365_v33  ;;  %v1741_v17 = vmul.f32 %v4343_v45, %v4396_v26  ;;  %v905_v38 = vmul.f32 %v3865_v58, %v888_v11  ;;  %v5325_v26 = vld [vmem:[#allocation9_spill] sm:$0xff] }
 0x113   : > { %3123 = vpow2.f32 %v2160_v37  ;;  %v906_v53 = vmul.f32 %v3865_v58, %v889_v30  ;;  %v1003_v44 = vmul.f32 %v3868_v5, %v986_v20  ;;  %v1004_v15 = vmul.f32 %v3868_v5, %v987_v14  ;;  %v5326_v30 = vld [vmem:[#allocation10_spill] sm:$0xff]  ;;  %v5328_v14 = vld [vmem:[#allocation11_spill] sm:$0xff] }
 0x114   : > { %3125 = vpow2.f32 %v2162_v29  ;;  %v1560_v4 = vadd.f32 %v1544_v43, %v1462_v6  ;;  %v1561_v0 = vadd.f32 %v1545_v23, %v1463_v39  ;;  %v1101_v21 = vmul.f32 %v3885_v31, %v1084_v9  ;;  %v4417_v29 = vld [vmem:[#allocation2 + $0xc0] sm:$0xff]  ;;  %v5329_v9 = vld [vmem:[#allocation12_spill] sm:$0xff] }
 0x115   : > { %v1019_v35 = vadd.f32 %v1003_v44, %v905_v38  ;;  %v1102_v33 = vmul.f32 %v3885_v31, %v1085_v7  ;;  %v1200_v28 = vmul.f32 %v5325_v26, %v3888_v32  ;;  %v3120_v37 = vpop.eup %3119  ;;  %v1020_v2 = vadd.f32 %v1004_v15, %v906_v53  ;;  %5327 = vst [vmem:[#allocation28_spill] sm:$0xff] %v4417_v29  ;;  %v4425_v53 = vld [vmem:[#allocation2 + $0xc8] sm:$0xff] }
 0x116   : > { %v1658_v54 = vadd.f32 %v1642_v46, %v1560_v4  ;;  %v1659_v11 = vadd.f32 %v1643_v55, %v1561_v0  ;;  %v1201_v20 = vmul.f32 %v5326_v30, %v3888_v32  ;;  %v1880_v43 = vmul.f32 %v3120_v37, %v4316_v61  ;;  %5330 = vst [vmem:[#allocation30_spill] sm:$0xff] %v4425_v53  ;;  %v5331_v0 = vld [vmem:[#allocation13_spill] sm:$0xff]  ;;  %v5332_v61 = vld [vmem:[#allocation14_spill] sm:$0xff] }
 0x117   : > { %v3122_v39 = vpop.eup %3121  ;;  %v1117_v23 = vadd.f32 %v1101_v21, %v1019_v35  ;;  %v1299_v6 = vmul.f32 %v5328_v14, %v3906_v22  ;;  %v1300_v7 = vmul.f32 %v5329_v9, %v3906_v22  ;;  %v1118_v38 = vadd.f32 %v1102_v33, %v1020_v2  ;;  %v4441_v33 = vld [vmem:[#allocation2 + $0xc2] sm:$0xff] }
 0x118   : > { %v1881_v26 = vmul.f32 %v3122_v39, %v4323_v27  ;;  %v1756_v46 = vadd.f32 %v1740_v19, %v1658_v54  ;;  %v1757_v55 = vadd.f32 %v1741_v17, %v1659_v11  ;;  %v1397_v15 = vmul.f32 %v5331_v0, %v5296_v13  ;;  %5333 = vst [vmem:[#allocation31_spill] sm:$0xff] %v4441_v33  ;;  %v4443_v11 = vld [vmem:[#allocation2 + $0xca] sm:$0xff] }
 0x119   : > { %v3124_v44 = vpop.eup %3123  ;;  %v1216_v4 = vadd.f32 %v1200_v28, %v1117_v23  ;;  %v1398_v35 = vmul.f32 %v5332_v61, %v5296_v13  ;;  %v1495_v21 = vmul.f32 %v5299_v47, %v4417_v29  ;;  %v1217_v28 = vadd.f32 %v1201_v20, %v1118_v38  ;;  %5334 = vst [vmem:[#allocation32_spill] sm:$0xff] %v4443_v11  ;;  %v5335_v23 = vld [vmem:[#allocation38_spill] sm:$0xff]  ;;  %v881_v20 = vld [vmem:[#allocation2 + $0x38] sm:$0xff] }
 0x11a   : > { %v3126_v37 = vpop.eup %3125  ;;  %v1895_v30 = vpack.c.bf16 %v1881_v26, %v1880_v43  ;;  %v2188_v9 = vadd.f32 1.0, %v3124_v44  ;;  %v4434_v27 = vadd.f32 %v4374_v52, %v1756_v46  ;;  %v4437_v2 = vadd.f32 %v4374_v52, %v1757_v55  ;;  %v880_v46 = vld [vmem:[#allocation2 + $0x30] sm:$0xff]  ;;  %v5336_v38 = vld [vmem:[#allocation40_spill] sm:$0xff]  ;;  %v4455_v29 = vld [vmem:[%s5123_s3 + $0x8] ss:$0 sm:$0xff] }
 0x11b   : > { %v2189_v54 = vadd.f32 1.0, %v3126_v37  ;;  %v1315_v19 = vadd.f32 %v1299_v6, %v1216_v4  ;;  %v1496_v17 = vmul.f32 %v5299_v47, %v4425_v53  ;;  %v1593_v26 = vmul.f32 %v5335_v23, %v3949_v18  ;;  %v978_v4 = vld [vmem:[#allocation2 + $0x31] sm:$0xff]  ;;  %v979_v37 = vld [vmem:[#allocation2 + $0x39] sm:$0xff] }
 0x11c   : > { %2981 = vmatmul.msk.bf16.gmra.mxu0 %vm754_vm2, %v1895_v30  ;;  %3127 = vrcp.f32 %v2188_v9  ;;  %v2148_v39 = vsub.f32 0.0, %v4434_v27  ;;  %v2149_v43 = vsub.f32 0.0, %v4437_v2  ;;  %v1316_v6 = vadd.f32 %v1300_v7, %v1217_v28  ;;  %v1076_v53 = vld [vmem:[#allocation2 + $0x32] sm:$0xff] }
 0x11d   : > { %3129 = vrcp.f32 %v2189_v54  ;;  %v1413_v55 = vadd.f32 %v1397_v15, %v1315_v19  ;;  %v1594_v44 = vmul.f32 %v5336_v38, %v3949_v18  ;;  %v1691_v23 = vmul.f32 %v4455_v29, %v4441_v33  ;;  %v1077_v15 = vld [vmem:[#allocation2 + $0x3a] sm:$0xff] }
 0x11e   : > { %v2176_v30 = vmul.f32 1.442695, %v2148_v39  ;;  %v2178_v9 = vmul.f32 1.442695, %v2149_v43  ;;  %v1692_v7 = vmul.f32 %v4455_v29, %v4443_v11  ;;  %v1414_v54 = vadd.f32 %v1398_v35, %v1316_v6 }
 0x11f   : > { %v1511_v28 = vadd.f32 %v1495_v21, %v1413_v55  ;;  %v897_v19 = vmul.f32 %v3865_v58, %v880_v46  ;;  %v898_v38 = vmul.f32 %v3865_v58, %v881_v20  ;;  %v995_v39 = vmul.f32 %v3868_v5, %v978_v4 }
 0x120   : > { %3131 = vpow2.f32 %v2176_v30  ;;  %v996_v43 = vmul.f32 %v3868_v5, %v979_v37  ;;  %v1093_v61 = vmul.f32 %v3885_v31, %v1076_v53  ;;  %v1512_v0 = vadd.f32 %v1496_v17, %v1414_v54  ;;  %v5337_v53 = vld [vmem:[#allocation17_spill] sm:$0xff]  ;;  %v4479_v54 = vld [vmem:[#allocation2 + $0x68] sm:$0xff] }
 0x121   : > { %3133 = vpow2.f32 %v2178_v9  ;;  %v1609_v33 = vadd.f32 %v1593_v26, %v1511_v28  ;;  %v1094_v14 = vmul.f32 %v3885_v31, %v1077_v15  ;;  %v1011_v52 = vadd.f32 %v995_v39, %v897_v19  ;;  %v4474_v26 = vld [vmem:[#allocation2 + $0x60] sm:$0xff]  ;;  %v5339_v15 = vld [vmem:[#allocation18_spill] sm:$0xff]  ;;  %5340 = vst [vmem:[#allocation29_spill] sm:$0xff] %v4479_v54 }
 0x122   : > { %v3128_v11 = vpop.eup %3127  ;;  %v1012_v35 = vadd.f32 %v996_v43, %v898_v38  ;;  %v1192_v21 = vmul.f32 %v4242_v48, %v3888_v32  ;;  %v1193_v46 = vmul.f32 %v4256_v10, %v3888_v32  ;;  %v1610_v55 = vadd.f32 %v1594_v44, %v1512_v0  ;;  %5338 = vst [vmem:[#allocation26_spill] sm:$0xff] %v4474_v26  ;;  %v4497_v19 = vld [vmem:[#allocation2 + $0x69] sm:$0xff] }
 0x123   : > { %v3130_v20 = vpop.eup %3129  ;;  %v2220_v6 = vmul.f32 %v3128_v11, %v4377_v50  ;;  %v1707_v4 = vadd.f32 %v1691_v23, %v1609_v33  ;;  %v1291_v17 = vmul.f32 %v5337_v53, %v3906_v22  ;;  %v1109_v30 = vadd.f32 %v1093_v61, %v1011_v52  ;;  %v4484_v50 = vld [vmem:[%s5260_s29] ss:$0 sm:$0xff]  ;;  %v5341_v33 = vld [vmem:[#allocation20_spill] sm:$0xff]  ;;  %v5342_v52 = vld [vmem:[#allocation19_spill] sm:$0xff]  ;;  %5344 = vst [vmem:[#allocation33_spill] sm:$0xff] %v4497_v19 }
 0x124   : > { %v2221_v37 = vmul.f32 %v3130_v20, %v4380_v24  ;;  %v1110_v9 = vadd.f32 %v1094_v14, %v1012_v35  ;;  %v1292_v48 = vmul.f32 %v5339_v15, %v3906_v22  ;;  %v1708_v10 = vadd.f32 %v1692_v7, %v1610_v55  ;;  %v4493_v14 = vld [vmem:[#allocation2 + $0x61] sm:$0xff] }
 0x125   : > { %v4487_v0 = vadd.f32 %v4484_v50, %v1707_v4  ;;  %v1389_v11 = vmul.f32 %v5341_v33, %v5296_v13  ;;  %v1390_v24 = vmul.f32 %v5342_v52, %v5296_v13  ;;  %5343 = vst [vmem:[#allocation34_spill] sm:$0xff] %v4493_v14  ;;  %v1208_v23 = vadd.f32 %v1192_v21, %v1109_v30  ;;  %v4505_v55 = vld [vmem:[#allocation2 + $0x62] sm:$0xff]  ;;  %v931_v30 = vld [vmem:[#allocation3 + $0x48] sm:$0xff] }
 0x126   : > { %v3132_v61 = vpop.eup %3131  ;;  %v2234_v44 = vpack.c.bf16 %v2221_v37, %v2220_v6  ;;  %v1209_v7 = vadd.f32 %v1193_v46, %v1110_v9  ;;  %v1487_v28 = vmul.f32 %v5299_v47, %v4474_v26  ;;  %v4500_v43 = vadd.f32 %v4484_v50, %v1708_v10  ;;  %v4510_v37 = vld [vmem:[#allocation2 + $0x6a] sm:$0xff]  ;;  %v1029_v26 = vld [vmem:[#allocation3 + $0x49] sm:$0xff] }
 0x127   : > { %v3134_v38 = vpop.eup %3133  ;;  %v2196_v39 = vadd.f32 1.0, %v3132_v61  ;;  %v1810_v35 = vsub.f32 0.0, %v4487_v0  ;;  %v1488_v20 = vmul.f32 %v5299_v47, %v4479_v54  ;;  %v1307_v46 = vadd.f32 %v1291_v17, %v1208_v23  ;;  %5345 = vst [vmem:[#allocation35_spill] sm:$0xff] %v4510_v37  ;;  %v932_v54 = vld [vmem:[#allocation3 + $0x50] sm:$0xff] }
 0x128   : > { %2990 = vmatmul.msk.bf16.gmra.mxu1 %vm754_vm2, %v2234_v44  ;;  %v2197_v21 = vadd.f32 1.0, %v3134_v38  ;;  %v1308_v6 = vadd.f32 %v1292_v48, %v1209_v7  ;;  %v1585_v4 = vmul.f32 %v3949_v18, %v4493_v14  ;;  %v1811_v9 = vsub.f32 0.0, %v4500_v43  ;;  %v1030_v48 = vld [vmem:[#allocation3 + $0x51] sm:$0xff] }
 0x129   : > { %3135 = vrcp.f32 %v2196_v39  ;;  %v1838_v10 = vmul.f32 1.442695, %v1810_v35  ;;  %v1586_v61 = vmul.f32 %v3949_v18, %v4497_v19  ;;  %v1405_v44 = vadd.f32 %v1389_v11, %v1307_v46  ;;  %v1127_v23 = vld [vmem:[#allocation3 + $0x4a] sm:$0xff]  ;;  %v1128_v7 = vld [vmem:[#allocation3 + $0x52] sm:$0xff] }
 0x12a   : > { %3137 = vrcp.f32 %v2197_v21  ;;  %v1406_v38 = vadd.f32 %v1390_v24, %v1308_v6  ;;  %v1683_v17 = vmul.f32 %v4455_v29, %v4505_v55  ;;  %v1840_v14 = vmul.f32 1.442695, %v1811_v9 }
 0x12b   : > { %3139 = vpow2.f32 %v1838_v10  ;;  %v1684_v39 = vmul.f32 %v4455_v29, %v4510_v37  ;;  %v948_v35 = vmul.f32 %v3723_v34, %v931_v30  ;;  %v1503_v52 = vadd.f32 %v1487_v28, %v1405_v44 }
 0x12c   : > { %v1504_v19 = vadd.f32 %v1488_v20, %v1406_v38  ;;  %v949_v33 = vmul.f32 %v3723_v34, %v932_v54  ;;  %v1046_v11 = vmul.f32 %v3725_v36, %v1029_v26  ;;  %3141 = vpow2.f32 %v1840_v14  ;;  %v1522_v38 = vld [vmem:[#allocation3 + $0x80] sm:$0xff] }
 0x12d   : > { %v1047_v24 = vmul.f32 %v3725_v36, %v1030_v48  ;;  %v1144_v21 = vmul.f32 %v3727_v40, %v1127_v23  ;;  %v1145_v46 = vmul.f32 %v3727_v40, %v1128_v7  ;;  %v1601_v6 = vadd.f32 %v1585_v4, %v1503_v52  ;;  %v1619_v7 = vld [vmem:[#allocation3 + $0x79] sm:$0xff] }
 0x12e   : > { %v1602_v9 = vadd.f32 %v1586_v61, %v1504_v19  ;;  %v1062_v10 = vadd.f32 %v1046_v11, %v948_v35  ;;  %v1244_v37 = vmul.f32 %v4305_v56, %v3729_v41  ;;  %v1245_v54 = vmul.f32 %v4307_v25, %v3729_v41  ;;  %v1521_v61 = vld [vmem:[#allocation3 + $0x78] sm:$0xff] }
 0x12f   : > { %v3136_v30 = vpop.eup %3135  ;;  %v1063_v28 = vadd.f32 %v1047_v24, %v949_v33  ;;  %v1342_v26 = vmul.f32 %v4318_v8, %v3731_v42  ;;  %v1343_v14 = vmul.f32 %v4320_v60, %v3731_v42  ;;  %v1699_v52 = vadd.f32 %v1683_v17, %v1601_v6 }
 0x130   : > { %v3138_v20 = vpop.eup %3137  ;;  %v2228_v44 = vmul.f32 %v3136_v30, %v4434_v27  ;;  %v1700_v19 = vadd.f32 %v1684_v39, %v1602_v9  ;;  %v1160_v4 = vadd.f32 %v1144_v21, %v1062_v10  ;;  %v1440_v25 = vmul.f32 %v4331_v49, %v3761_v62  ;;  %v1620_v39 = vld [vmem:[#allocation3 + $0x81] sm:$0xff] }
 0x131   : > { %v3140_v56 = vpop.eup %3139  ;;  %v2229_v33 = vmul.f32 %v3138_v20, %v4437_v2  ;;  %v1161_v48 = vadd.f32 %v1145_v46, %v1063_v28  ;;  %v1441_v8 = vmul.f32 %v4333_v59, %v3761_v62  ;;  %v4540_v60 = vadd.f32 %v4484_v50, %v1699_v52  ;;  %v1717_v21 = vld [vmem:[#allocation3 + $0x7a] sm:$0xff]  ;;  %v1718_v9 = vld [vmem:[#allocation3 + $0x82] sm:$0xff]  ;;  %v940_v20 = vld [vmem:[#allocation3 + $0xb0] sm:$0xff] }
 0x132   : > { %v1858_v23 = vadd.f32 1.0, %v3140_v56  ;;  %v4543_v27 = vadd.f32 %v4484_v50, %v1700_v19  ;;  %v1260_v17 = vadd.f32 %v1244_v37, %v1160_v4  ;;  %v3142_v35 = vpop.eup %3141  ;;  %v1538_v24 = vmul.f32 %v3763_v63, %v1521_v61  ;;  %v939_v10 = vld [vmem:[#allocation3 + $0xa8] sm:$0xff] }
 0x133   : > { %v2238_v11 = vpack.c.bf16 %v2229_v33, %v2228_v44  ;;  %v1261_v2 = vadd.f32 %v1245_v54, %v1161_v48  ;;  %v1539_v49 = vmul.f32 %v3763_v63, %v1522_v38  ;;  %v1859_v46 = vadd.f32 1.0, %v3142_v35 }
 0x134   : > { %3143 = vrcp.f32 %v1858_v23  ;;  %v1802_v59 = vsub.f32 0.0, %v4540_v60  ;;  %v1803_v6 = vsub.f32 0.0, %v4543_v27  ;;  %v1358_v37 = vadd.f32 %v1342_v26, %v1260_v17 }
 0x135   : > { %2994 = vmatmul.msk.bf16.gmra.mxu3 %vm754_vm2, %v2238_v11  ;;  %v1359_v30 = vadd.f32 %v1343_v14, %v1261_v2  ;;  %v1636_v28 = vmul.f32 %v3767_v1, %v1619_v7  ;;  %v1637_v54 = vmul.f32 %v3767_v1, %v1620_v39  ;;  %3145 = vrcp.f32 %v1859_v46  ;;  %v1529_v2 = vld [vmem:[#allocation3 + $0xd8] sm:$0xff] }
 0x136   : > { %v1822_v44 = vmul.f32 1.442695, %v1802_v59  ;;  %v1824_v52 = vmul.f32 1.442695, %v1803_v6  ;;  %v1734_v19 = vmul.f32 %v4343_v45, %v1717_v21  ;;  %v1456_v4 = vadd.f32 %v1440_v25, %v1358_v37  ;;  %v5347_v21 = vld [vmem:[#allocation23_spill] sm:$0xff]  ;;  %v5348_v59 = vld [vmem:[#allocation24_spill] sm:$0xff] }
 0x137   : > { %v1457_v61 = vadd.f32 %v1441_v8, %v1359_v30  ;;  %v1735_v38 = vmul.f32 %v4343_v45, %v1718_v9  ;;  %v956_v56 = vmul.f32 %v3723_v34, %v939_v10  ;;  %v957_v26 = vmul.f32 %v3723_v34, %v940_v20  ;;  %v1530_v10 = vld [vmem:[#allocation3 + $0xe0] sm:$0xff] }
 0x138   : > { %3147 = vpow2.f32 %v1822_v44  ;;  %v1054_v14 = vmul.f32 %v4139_v57, %v3725_v36  ;;  %v1055_v33 = vmul.f32 %v4146_v16, %v3725_v36  ;;  %v1554_v48 = vadd.f32 %v1538_v24, %v1456_v4  ;;  %v5346_v36 = vld [vmem:[#allocation21_spill] sm:$0xff]  ;;  %v1627_v44 = vld [vmem:[#allocation3 + $0xd9] sm:$0xff] }
 0x139   : > { %3149 = vpow2.f32 %v1824_v52  ;;  %v1555_v23 = vadd.f32 %v1539_v49, %v1457_v61  ;;  %v1152_v25 = vmul.f32 %v4152_v3, %v3727_v40  ;;  %v1153_v39 = vmul.f32 %v4154_v12, %v3727_v40  ;;  %v5351_v61 = vld [vmem:[#allocation22_spill] sm:$0xff] }
 0x13a   : > { %v3144_v8 = vpop.eup %3143  ;;  %v1070_v17 = vadd.f32 %v1054_v14, %v956_v56  ;;  %v1071_v7 = vadd.f32 %v1055_v33, %v957_v26  ;;  %v1252_v34 = vmul.f32 %v4361_v51, %v3729_v41  ;;  %v1652_v35 = vadd.f32 %v1636_v28, %v1554_v48  ;;  %v5350_v28 = vld [vmem:[#allocation27_spill] sm:$0xff] }
 0x13b   : > { %v1890_v57 = vmul.f32 %v3144_v8, %v4487_v0  ;;  %v1653_v11 = vadd.f32 %v1637_v54, %v1555_v23  ;;  %v1253_v16 = vmul.f32 %v5346_v36, %v3729_v41  ;;  %v3146_v24 = vpop.eup %3145  ;;  %v1350_v46 = vmul.f32 %v5347_v21, %v3731_v42  ;;  %v5349_v0 = vld [vmem:[#allocation25_spill] sm:$0xff]  ;;  %v1725_v48 = vld [vmem:[#allocation3 + $0xda] sm:$0xff] }
 0x13c   : > { %v1168_v49 = vadd.f32 %v1152_v25, %v1070_v17  ;;  %v1169_v3 = vadd.f32 %v1153_v39, %v1071_v7  ;;  %v1351_v40 = vmul.f32 %v5348_v59, %v3731_v42  ;;  %v1891_v12 = vmul.f32 %v3146_v24, %v4500_v43  ;;  %v890_v17 = vld [vmem:[#allocation2 + $0xa8] sm:$0xff]  ;;  %v891_v7 = vld [vmem:[#allocation2 + $0xb0] sm:$0xff] }
 0x13d   : > { %v1750_v51 = vadd.f32 %v1734_v19, %v1652_v35  ;;  %v1751_v6 = vadd.f32 %v1735_v38, %v1653_v11  ;;  %v1448_v9 = vmul.f32 %v5349_v0, %v3761_v62  ;;  %v1449_v54 = vmul.f32 %v5350_v28, %v3761_v62  ;;  %v1628_v38 = vld [vmem:[#allocation3 + $0xe1] sm:$0xff] }
 0x13e   : > { %v3148_v37 = vpop.eup %3147  ;;  %v1268_v41 = vadd.f32 %v1252_v34, %v1168_v49  ;;  %v1269_v30 = vadd.f32 %v1253_v16, %v1169_v3  ;;  %v1546_v20 = vmul.f32 %v3763_v63, %v1529_v2  ;;  %v1900_v4 = vpack.c.bf16 %v1891_v12, %v1890_v57  ;;  %v1726_v62 = vld [vmem:[#allocation3 + $0xe2] sm:$0xff]  ;;  %v1284_v12 = vld [vmem:[#allocation2 + $0xc1] sm:$0xff] }
 0x13f   : > { %v3150_v52 = vpop.eup %3149  ;;  %v1850_v42 = vadd.f32 1.0, %v3148_v37  ;;  %v4580_v43 = vadd.f32 %v5351_v61, %v1750_v51  ;;  %v4583_v19 = vadd.f32 %v5351_v61, %v1751_v6  ;;  %v1547_v33 = vmul.f32 %v3763_v63, %v1530_v10  ;;  %v5352_v3 = vld [vmem:[#allocation11_spill] sm:$0xff]  ;;  %v5355_v6 = vld [vmem:[#allocation14_spill] sm:$0xff] }
 0x140   : > { %v1851_v56 = vadd.f32 1.0, %v3150_v52  ;;  %v1366_v26 = vadd.f32 %v1350_v46, %v1268_v41  ;;  %v1367_v14 = vadd.f32 %v1351_v40, %v1269_v30  ;;  %2986 = vmatmul.msk.bf16.gmra.mxu2 %vm754_vm2, %v1900_v4  ;;  %v1644_v8 = vmul.f32 %v3767_v1, %v1627_v44  ;;  %v5353_v46 = vld [vmem:[#allocation12_spill] sm:$0xff] }
 0x141   : > { %3151 = vrcp.f32 %v1850_v42  ;;  %v2142_v23 = vsub.f32 0.0, %v4580_v43  ;;  %v2143_v25 = vsub.f32 0.0, %v4583_v19  ;;  %v1645_v57 = vmul.f32 %v3767_v1, %v1628_v38  ;;  %v5354_v1 = vld [vmem:[#allocation13_spill] sm:$0xff]  ;;  %v5356_v30 = vld [vmem:[#allocation28_spill] sm:$0xff] }
 0x142   : > { %3153 = vrcp.f32 %v1851_v56  ;;  %v1464_v39 = vadd.f32 %v1448_v9, %v1366_v26  ;;  %v1465_v34 = vadd.f32 %v1449_v54, %v1367_v14  ;;  %v1742_v11 = vmul.f32 %v4343_v45, %v1725_v48  ;;  %v1285_v9 = vld [vmem:[#allocation2 + $0xc9] sm:$0xff]  ;;  %v1480_v56 = vld [vmem:[#allocation2 + $0xd8] sm:$0xff] }
 0x143   : > { %v2164_v35 = vmul.f32 1.442695, %v2142_v23  ;;  %v2166_v63 = vmul.f32 1.442695, %v2143_v25  ;;  %v1743_v36 = vmul.f32 %v4343_v45, %v1726_v62  ;;  %v907_v24 = vmul.f32 %v3865_v58, %v890_v17  ;;  %v5357_v54 = vld [vmem:[#allocation30_spill] sm:$0xff]  ;;  %v1481_v62 = vld [vmem:[#allocation2 + $0xe0] sm:$0xff] }
 0x144   : > { %v1562_v16 = vadd.f32 %v1546_v20, %v1464_v39  ;;  %v1563_v2 = vadd.f32 %v1547_v33, %v1465_v34  ;;  %v908_v49 = vmul.f32 %v3865_v58, %v891_v7  ;;  %v1005_v21 = vmul.f32 %v5352_v3, %v3868_v5  ;;  %v5359_v17 = vld [vmem:[#allocation32_spill] sm:$0xff] }
 0x145   : > { %3155 = vpow2.f32 %v2164_v35  ;;  %v1006_v59 = vmul.f32 %v5353_v46, %v3868_v5  ;;  %v1103_v40 = vmul.f32 %v5354_v1, %v3885_v31  ;;  %v1104_v0 = vmul.f32 %v5355_v6, %v3885_v31  ;;  %v882_v1 = vld [vmem:[#allocation2 + $0x48] sm:$0xff] }
 0x146   : > { %3157 = vpow2.f32 %v2166_v63  ;;  %v1660_v51 = vadd.f32 %v1644_v8, %v1562_v16  ;;  %v1661_v45 = vadd.f32 %v1645_v57, %v1563_v2  ;;  %v1021_v37 = vadd.f32 %v1005_v21, %v907_v24  ;;  %v1676_v2 = vld [vmem:[#allocation2 + $0xda] sm:$0xff]  ;;  %v5360_v21 = vld [vmem:[#allocation15_spill] sm:$0xff] }
 0x147   : > { %v3152_v10 = vpop.eup %3151  ;;  %v1022_v41 = vadd.f32 %v1006_v59, %v908_v49  ;;  %v1202_v28 = vmul.f32 %v5356_v30, %v3888_v32  ;;  %v1203_v20 = vmul.f32 %v5357_v54, %v3888_v32  ;;  %v1301_v38 = vmul.f32 %v3906_v22, %v1284_v12  ;;  %v1677_v59 = vld [vmem:[#allocation2 + $0xe2] sm:$0xff] }
 0x148   : > { %v3154_v44 = vpop.eup %3153  ;;  %v1882_v52 = vmul.f32 %v3152_v10, %v4540_v60  ;;  %v1758_v4 = vadd.f32 %v1742_v11, %v1660_v51  ;;  %v1759_v42 = vadd.f32 %v1743_v36, %v1661_v45  ;;  %v1119_v14 = vadd.f32 %v1103_v40, %v1021_v37  ;;  %v5358_v60 = vld [vmem:[#allocation31_spill] sm:$0xff]  ;;  %v5361_v45 = vld [vmem:[#allocation16_spill] sm:$0xff] }
 0x149   : > { %v1883_v26 = vmul.f32 %v3154_v44, %v4543_v27  ;;  %v1120_v33 = vadd.f32 %v1104_v0, %v1022_v41  ;;  %v1302_v48 = vmul.f32 %v3906_v22, %v1285_v9  ;;  %v1399_v8 = vmul.f32 %v5358_v60, %v5296_v13  ;;  %v883_v40 = vld [vmem:[#allocation2 + $0x50] sm:$0xff]  ;;  %v5365_v60 = vld [vmem:[#allocation29_spill] sm:$0xff] }
 0x14a   : > { %v4612_v23 = vadd.f32 %v5351_v61, %v1758_v4  ;;  %v4615_v25 = vadd.f32 %v5351_v61, %v1759_v42  ;;  %v1400_v7 = vmul.f32 %v5359_v17, %v5296_v13  ;;  %v1218_v27 = vadd.f32 %v1202_v28, %v1119_v14  ;;  %v5363_v42 = vld [vmem:[#allocation19_spill] sm:$0xff] }
 0x14b   : > { %v3156_v39 = vpop.eup %3155  ;;  %v1896_v34 = vpack.c.bf16 %v1883_v26, %v1882_v52  ;;  %v1219_v57 = vadd.f32 %v1203_v20, %v1120_v33  ;;  %v1497_v35 = vmul.f32 %v5299_v47, %v1480_v56  ;;  %v1498_v61 = vmul.f32 %v5299_v47, %v1481_v62  ;;  %v5362_v52 = vld [vmem:[#allocation20_spill] sm:$0xff] }
 0x14c   : > { %v3158_v63 = vpop.eup %3157  ;;  %v2190_v11 = vadd.f32 1.0, %v3156_v39  ;;  %v2150_v36 = vsub.f32 0.0, %v4612_v23  ;;  %v2151_v16 = vsub.f32 0.0, %v4615_v25  ;;  %v1317_v49 = vadd.f32 %v1301_v38, %v1218_v27 }
 0x14d   : > { %2982 = vmatmul.msk.bf16.gmra.mxu0 %vm754_vm2, %v1896_v34  ;;  %v2191_v24 = vadd.f32 1.0, %v3158_v63  ;;  %v1318_v3 = vadd.f32 %v1302_v48, %v1219_v57  ;;  %v1595_v46 = vmul.f32 %v5360_v21, %v3949_v18  ;;  %v1596_v6 = vmul.f32 %v5361_v45, %v3949_v18  ;;  %v1472_v57 = vld [vmem:[#allocation2 + $0x78] sm:$0xff] }
 0x14e   : > { %3159 = vrcp.f32 %v2190_v11  ;;  %v2180_v12 = vmul.f32 1.442695, %v2150_v36  ;;  %v2182_v51 = vmul.f32 1.442695, %v2151_v16  ;;  %v1415_v0 = vadd.f32 %v1399_v8, %v1317_v49  ;;  %v5366_v8 = vld [vmem:[#allocation34_spill] sm:$0xff]  ;;  %v5368_v36 = vld [vmem:[#allocation35_spill] sm:$0xff] }
 0x14f   : > { %3161 = vrcp.f32 %v2191_v24  ;;  %v1416_v9 = vadd.f32 %v1400_v7, %v1318_v3  ;;  %v1693_v10 = vmul.f32 %v4455_v29, %v1676_v2  ;;  %v1694_v37 = vmul.f32 %v4455_v29, %v1677_v59  ;;  %v1473_v49 = vld [vmem:[#allocation2 + $0x80] sm:$0xff] }
 0x150   : > { %3163 = vpow2.f32 %v2180_v12  ;;  %v899_v41 = vmul.f32 %v3865_v58, %v882_v1  ;;  %v900_v30 = vmul.f32 %v3865_v58, %v883_v40  ;;  %v1513_v28 = vadd.f32 %v1497_v35, %v1415_v0  ;;  %v5364_v58 = vld [vmem:[#allocation26_spill] sm:$0xff]  ;;  %v1570_v59 = vld [vmem:[#allocation2 + $0x79] sm:$0xff] }
 0x151   : > { %3165 = vpow2.f32 %v2182_v51  ;;  %v1514_v54 = vadd.f32 %v1498_v61, %v1416_v9  ;;  %v997_v20 = vmul.f32 %v5337_v53, %v3868_v5  ;;  %v998_v44 = vmul.f32 %v5339_v15, %v3868_v5  ;;  %v5367_v15 = vld [vmem:[#allocation33_spill] sm:$0xff] }
 0x152   : > { %v1095_v4 = vmul.f32 %v5362_v52, %v3885_v31  ;;  %v1096_v38 = vmul.f32 %v5363_v42, %v3885_v31  ;;  %v1611_v56 = vadd.f32 %v1595_v46, %v1513_v28  ;;  %v1194_v33 = vmul.f32 %v5364_v58, %v3888_v32  ;;  %v1571_v40 = vld [vmem:[#allocation2 + $0x81] sm:$0xff]  ;;  %v2277_v52 = vpop.f32.mrf.mxu1 }
 0x153   : > { %v1612_v26 = vadd.f32 %v1596_v6, %v1514_v54  ;;  %v1013_v14 = vadd.f32 %v997_v20, %v899_v41  ;;  %v1014_v62 = vadd.f32 %v998_v44, %v900_v30  ;;  %v1195_v53 = vmul.f32 %v5365_v60, %v3888_v32  ;;  %v1668_v45 = vld [vmem:[#allocation2 + $0x7a] sm:$0xff] }
 0x154   : > { %v3160_v48 = vpop.eup %3159  ;;  %v1293_v5 = vmul.f32 %v5366_v8, %v3906_v22  ;;  %v1294_v17 = vmul.f32 %v5367_v15, %v3906_v22  ;;  %v1709_v39 = vadd.f32 %v1693_v10, %v1611_v56  ;;  %v1391_v32 = vmul.f32 %v4505_v55, %v5296_v13 }
 0x155   : > { %v3162_v7 = vpop.eup %3161  ;;  %v2222_v31 = vmul.f32 %v3160_v48, %v4580_v43  ;;  %v1710_v34 = vadd.f32 %v1694_v37, %v1612_v26  ;;  %v1111_v27 = vadd.f32 %v1095_v4, %v1013_v14  ;;  %v1112_v11 = vadd.f32 %v1096_v38, %v1014_v62  ;;  %v1669_v37 = vld [vmem:[#allocation2 + $0x82] sm:$0xff]  ;;  %v4679_v4 = vld [vmem:[%s5371_s30] ss:$0 sm:$0xff] }
 0x156   : > { %v3164_v35 = vpop.eup %3163  ;;  %v2223_v63 = vmul.f32 %v3162_v7, %v4583_v19  ;;  %v1392_v16 = vmul.f32 %v5368_v36, %v5296_v13  ;;  %v4657_v22 = vadd.f32 %v4484_v50, %v1709_v39  ;;  %v1489_v46 = vmul.f32 %v5299_v47, %v1472_v57 }
 0x157   : > { %v3166_v61 = vpop.eup %3165  ;;  %v2198_v2 = vadd.f32 1.0, %v3164_v35  ;;  %v4660_v43 = vadd.f32 %v4484_v50, %v1710_v34  ;;  %v1210_v24 = vadd.f32 %v1194_v33, %v1111_v27  ;;  %v1211_v19 = vadd.f32 %v1195_v53, %v1112_v11  ;;  %v2297_v27 = vpop.f32.mrf.mxu3 }
 0x158   : > { %v2235_v3 = vpack.c.bf16 %v2223_v63, %v2222_v31  ;;  %v2199_v21 = vadd.f32 1.0, %v3166_v61  ;;  %v1812_v55 = vsub.f32 0.0, %v4657_v22  ;;  %v1490_v51 = vmul.f32 %v5299_v47, %v1473_v49  ;;  %v4674_v47 = vld [vmem:[%s5369_s19] ss:$0 sm:$0xff] }
 0x159   : > { %3167 = vrcp.f32 %v2198_v2  ;;  %v1813_v13 = vsub.f32 0.0, %v4660_v43  ;;  %v1309_v1 = vadd.f32 %v1293_v5, %v1210_v24  ;;  %v1310_v12 = vadd.f32 %v1294_v17, %v1211_v19 }
 0x15a   : > { %2991 = vmatmul.msk.bf16.gmra.mxu1 %vm754_vm2, %v2235_v3  ;;  %3169 = vrcp.f32 %v2199_v21  ;;  %v1842_v6 = vmul.f32 1.442695, %v1812_v55  ;;  %v1587_v10 = vmul.f32 %v3949_v18, %v1570_v59  ;;  %v1588_v30 = vmul.f32 %v3949_v18, %v1571_v40 }
 0x15b   : > { %v1844_v0 = vmul.f32 1.442695, %v1813_v13  ;;  %v1407_v9 = vadd.f32 %v1391_v32, %v1309_v1  ;;  %v1408_v41 = vadd.f32 %v1392_v16, %v1310_v12  ;;  %v1685_v54 = vmul.f32 %v4455_v29, %v1668_v45  ;;  %v4701_v13 = vld [vmem:[%s5373_s16] ss:$0 sm:$0xff] }
 0x15c   : > { %3171 = vpow2.f32 %v1842_v6  ;;  %v1686_v44 = vmul.f32 %v4455_v29, %v1669_v37  ;;  %v2321_v14 = vmul.f32 %v4674_v47, %v2277_v52  ;;  %v2329_v35 = vmul.f32 %v4674_v47, %v2297_v27  ;;  %v4716_v52 = vld [vmem:[%s5375_s12] ss:$0 sm:$0xff] }
 0x15d   : > { %v1505_v28 = vadd.f32 %v1489_v46, %v1407_v9  ;;  %3173 = vpow2.f32 %v1844_v0  ;;  %v1506_v20 = vadd.f32 %v1490_v51, %v1408_v41  ;;  %v2279_v46 = vpop.f32.mrf.mxu1 }
 0x15e   : > { %v2341_v48 = vadd.f32 %v4679_v4, %v2321_v14  ;;  %v2349_v36 = vadd.f32 %v4679_v4, %v2329_v35  ;;  %v2322_v1 = vmul.f32 %v4674_v47, %v2279_v46 }
 0x15f   : > { %v3168_v18 = vpop.eup %3167  ;;  %v1603_v42 = vadd.f32 %v1587_v10, %v1505_v28  ;;  %v1604_v26 = vadd.f32 %v1588_v30, %v1506_v20 }
 0x160   : > { %v3170_v38 = vpop.eup %3169  ;;  %v2230_v56 = vmul.f32 %v3168_v18, %v4612_v23  ;;  %v2357_v17 = vsub.f32 0.0, %v2341_v48  ;;  %v2365_v3 = vsub.f32 0.0, %v2349_v36  ;;  %v2342_v0 = vadd.f32 %v4679_v4, %v2322_v1 }
 0x161   : > { %v2231_v29 = vmul.f32 %v3170_v38, %v4615_v25  ;;  %v1701_v58 = vadd.f32 %v1685_v54, %v1603_v42  ;;  %v1702_v33 = vadd.f32 %v1686_v44, %v1604_v26  ;;  %v4711_v44 = vld [vmem:[%s5374_s4] ss:$0 sm:$0xff]  ;;  %v1960_v38 = vpop.f32.mrf.mxu2 }
 0x162   : > { %v3172_v62 = vpop.eup %3171  ;;  %v2373_v25 = vmul.f32 1.442695, %v2357_v17  ;;  %v2389_v19 = vmul.f32 1.442695, %v2365_v3  ;;  %v2358_v41 = vsub.f32 0.0, %v2342_v0  ;;  %v1992_v26 = vmul.f32 %v4711_v44, %v1960_v38  ;;  %v2299_v17 = vpop.f32.mrf.mxu3 }
 0x163   : > { %v2239_v60 = vpack.c.bf16 %v2231_v29, %v2230_v56  ;;  %v1788_v53 = vadd.f32 %v4484_v50, %v1701_v58  ;;  %v3174_v8 = vpop.eup %3173  ;;  %v1860_v5 = vadd.f32 1.0, %v3172_v62  ;;  %v1789_v15 = vadd.f32 %v4484_v50, %v1702_v33 }
 0x164   : > { %v1861_v23 = vadd.f32 1.0, %v3174_v8  ;;  %v2375_v28 = vmul.f32 1.442695, %v2358_v41 }
 0x165   : > { %2995 = vmatmul.msk.bf16.gmra.mxu3 %vm754_vm2, %v2239_v60  ;;  %v1804_v7 = vsub.f32 0.0, %v1788_v53  ;;  %3175 = vrcp.f32 %v1860_v5  ;;  %v1805_v31 = vsub.f32 0.0, %v1789_v15 }
 0x166   : > { %3177 = vrcp.f32 %v1861_v23 }
 0x167   : > { %v1826_v39 = vmul.f32 1.442695, %v1804_v7  ;;  %v1828_v34 = vmul.f32 1.442695, %v1805_v31  ;;  %3179 = vpow2.f32 %v2373_v25  ;;  %v2330_v25 = vmul.f32 %v4674_v47, %v2299_v17 }
 0x169   : > { %3181 = vpow2.f32 %v1826_v39  ;;  %v4729_v39 = vadd.f32 %v4679_v4, %v2330_v25 }
 0x16a   : > { %3183 = vpow2.f32 %v1828_v34  ;;  %v1940_v42 = vpop.f32.mrf.mxu0 }
 0x16b   : > { %v3176_v57 = vpop.eup %3175  ;;  %v1984_v56 = vmul.f32 %v4711_v44, %v1940_v42 }
 0x16c   : > { %v3178_v63 = vpop.eup %3177  ;;  %v1892_v50 = vmul.f32 %v3176_v57, %v4657_v22  ;;  %v4696_v22 = vld [vmem:[%s5372_s27] ss:$0 sm:$0xff]  ;;  %v2366_v57 = vsub.f32 0.0, %v4729_v39 }
 0x16d   : > { %v3180_v11 = vpop.eup %3179  ;;  %v1893_v32 = vmul.f32 %v3178_v63, %v4660_v43  ;;  %v2004_v33 = vadd.f32 %v4716_v52, %v1984_v56 }
 0x16e   : > { %v2405_v61 = vadd.f32 1.0, %v3180_v11  ;;  %v2391_v11 = vmul.f32 1.442695, %v2366_v57 }
 0x16f   : > { %v3182_v16 = vpop.eup %3181  ;;  %v1901_v24 = vpack.c.bf16 %v1893_v32, %v1892_v50  ;;  %v2020_v8 = vsub.f32 0.0, %v2004_v33 }
 0x170   : > { %v3184_v2 = vpop.eup %3183  ;;  %v1852_v49 = vadd.f32 1.0, %v3182_v16  ;;  %3185 = vrcp.f32 %v2405_v61 }
 0x171   : > { %v1853_v21 = vadd.f32 1.0, %v3184_v2  ;;  %2987 = vmatmul.msk.bf16.gmra.mxu2 %vm754_vm2, %v1901_v24  ;;  %v2036_v23 = vmul.f32 1.442695, %v2020_v8 }
 0x172   : > { %3187 = vrcp.f32 %v1852_v49 }
 0x173   : > { %3189 = vrcp.f32 %v1853_v21 }
 0x174   : > { %3191 = vpow2.f32 %v2389_v19 }
 0x175   : > { %v2282_v46 = vpop.f32.mrf.mxu1 }
 0x176   : > { %v3186_v43 = vpop.eup %3185 }
 0x177   : > { %v2437_v55 = vmul.f32 %v3186_v43, %v2341_v48  ;;  %v4723_v48 = vadd.f32 %v4716_v52, %v1992_v26 }
 0x178   : > { %v3188_v59 = vpop.eup %3187 }
 0x179   : > { %v3190_v40 = vpop.eup %3189  ;;  %v1884_v12 = vmul.f32 %v3188_v59, %v1788_v53  ;;  %v2457_v6 = vmul.f32 %v4696_v22, %v2437_v55  ;;  %v2028_v5 = vsub.f32 0.0, %v4723_v48 }
 0x17a   : > { %v3192_v51 = vpop.eup %3191  ;;  %v1885_v45 = vmul.f32 %v3190_v40, %v1789_v15  ;;  %v2323_v40 = vmul.f32 %v4674_v47, %v2282_v46 }
 0x17b   : > { %v2413_v9 = vadd.f32 1.0, %v3192_v51  ;;  %v2477_v37 = vadd.f32 %v4701_v13, %v2457_v6  ;;  %v2052_v31 = vmul.f32 1.442695, %v2028_v5 }
 0x17c   : > { %v1897_v10 = vpack.c.bf16 %v1885_v45, %v1884_v12  ;;  %v4736_v6 = vadd.f32 %v4679_v4, %v2323_v40 }
 0x17d   : > { %3193 = vrcp.f32 %v2413_v9  ;;  %v2493_v30 = vsub.f32 0.0, %v2477_v37 }
 0x17e   : > { %2983 = vmatmul.msk.bf16.gmra.mxu0 %vm754_vm2, %v1897_v10  ;;  %3195 = vpow2.f32 %v2375_v28  ;;  %v2359_v37 = vsub.f32 0.0, %v4736_v6 }
 0x17f   : > { %v2509_v54 = vmul.f32 1.442695, %v2493_v30 }
 0x181   : > { %3197 = vpow2.f32 %v2509_v54  ;;  %v2377_v54 = vmul.f32 1.442695, %v2359_v37 }
 0x183   : > { %v3194_v20 = vpop.eup %3193 }
 0x184   : > { %v2445_v18 = vmul.f32 %v3194_v20, %v2349_v36  ;;  %v3196_v14 = vpop.eup %3195 }
 0x185   : > { %v2406_v58 = vadd.f32 1.0, %v3196_v14 }
 0x186   : > { %v2465_v29 = vmul.f32 %v4696_v22, %v2445_v18 }
 0x187   : > { %v3198_v62 = vpop.eup %3197  ;;  %3199 = vrcp.f32 %v2406_v58 }
 0x188   : > { %v2485_v60 = vadd.f32 %v4701_v13, %v2465_v29  ;;  %v2541_v53 = vadd.f32 1.0, %v3198_v62  ;;  %v1962_v62 = vpop.f32.mrf.mxu2 }
 0x189   : > { %v1993_v5 = vmul.f32 %v4711_v44, %v1962_v62 }
 0x18a   : > { %v2501_v15 = vsub.f32 0.0, %v2485_v60  ;;  %3201 = vrcp.f32 %v2541_v53  ;;  %v2568_v3 = vand.u32 2147483648, %v2541_v53  ;;  %vm2562_vm13 = vweird.f32 %v2541_v53 }
 0x18b   : > { %3203 = vpow2.f32 %v2036_v23  ;;  %v2566_v43 = vand.u32 2147483647, %v2541_v53 }
 0x18c   : > { %v2525_v7 = vmul.f32 1.442695, %v2501_v15  ;;  %v2569_v45 = vor.u32 1.1754944e-38, %v2568_v3 }
 0x18d   : > { %v3200_v34 = vpop.eup %3199  ;;  %vm2567_vm15 = vcmp.eq.f32.partialorder %v2566_v43, 8.507059e+37 }
 0x18e   : > { %3205 = vpow2.f32 %v2525_v7  ;;  %v2438_v27 = vmul.f32 %v3200_v34, %v2342_v0  ;;  %v4751_v34 = vadd.f32 %v4716_v52, %v1993_v5 }
 0x18f   : > { %3207 = vpow2.f32 %v2052_v31 }
 0x190   : > { %v3202_v35 = vpop.eup %3201  ;;  %v2458_v63 = vmul.f32 %v4696_v22, %v2438_v27  ;;  %3209 = vpow2.f32 %v2391_v11 }
 0x191   : > { %v2558_v50 = vmul.f32 %v3202_v35, %v2541_v53  ;;  %v3204_v32 = vpop.eup %3203  ;;  %vm2563_vm12 = vweird.f32 %v3202_v35 }
 0x192   : > { %v2478_v16 = vadd.f32 %v4701_v13, %v2458_v63  ;;  %v2068_v61 = vadd.f32 1.0, %v3204_v32  ;;  %vm2564_vm14 = vmor %vm2562_vm13, %vm2563_vm12 }
 0x193   : > { %v2559_v2 = vsub.f32 1.0, %v2558_v50 }
 0x194   : > { %v3206_v36 = vpop.eup %3205  ;;  %v2494_v21 = vsub.f32 0.0, %v2478_v16  ;;  %3211 = vrcp.f32 %v2068_v61  ;;  %v2302_v16 = vpop.f32.mrf.mxu3 }
 0x195   : > { %v3208_v24 = vpop.eup %3207  ;;  %v2549_v49 = vadd.f32 1.0, %v3206_v36  ;;  %v2560_v19 = vmul.f32 %v3202_v35, %v2559_v2  ;;  %v2331_v61 = vmul.f32 %v4674_v47, %v2302_v16 }
 0x196   : > { %v2511_v59 = vmul.f32 1.442695, %v2494_v21  ;;  %v2076_v1 = vadd.f32 1.0, %v3208_v24  ;;  %v3210_v12 = vpop.eup %3209 }
 0x197   : > { %3213 = vrcp.f32 %v2549_v49  ;;  %v2561_v55 = vadd.f32 %v3202_v35, %v2560_v19  ;;  %v2414_v0 = vadd.f32 1.0, %v3210_v12  ;;  %v2686_v56 = vand.u32 2147483647, %v2549_v49 }
 0x198   : > { %3215 = vpow2.f32 %v2511_v59  ;;  %v2688_v26 = vand.u32 2147483648, %v2549_v49  ;;  %vm2682_vm1 = vweird.f32 %v2549_v49  ;;  %v4760_v3 = vadd.f32 %v4679_v4, %v2331_v61 }
 0x199   : > { %v2565_v51 = vsel %vm2564_vm14, %v3202_v35, %v2561_v55  ;;  %3217 = vrcp.f32 %v2076_v1  ;;  %vm2687_vm4 = vcmp.eq.f32.partialorder %v2686_v56, 8.507059e+37 }
 0x19a   : > { %v3212_v9 = vpop.eup %3211  ;;  %v2570_v10 = vsel %vm2567_vm15, %v2569_v45, %v2565_v51  ;;  %3219 = vrcp.f32 %v2414_v0  ;;  %v2689_v17 = vor.u32 1.1754944e-38, %v2688_v26  ;;  %v2367_v19 = vsub.f32 0.0, %v4760_v3 }
 0x19b   : > { %v2100_v30 = vmul.f32 %v3212_v9, %v2004_v33  ;;  %3221 = vpow2.f32 %v2377_v54  ;;  %v1942_v33 = vpop.f32.mrf.mxu0 }
 0x19c   : > { %v1985_v8 = vmul.f32 %v4711_v44, %v1942_v33  ;;  %v2393_v59 = vmul.f32 1.442695, %v2367_v19 }
 0x19d   : > { %v3214_v41 = vpop.eup %3213  ;;  %v2797_v20 = vmul.f32 %v2570_v10, %v2100_v30 }
 0x19e   : > { %v2678_v28 = vmul.f32 %v3214_v41, %v2549_v49  ;;  %v3216_v18 = vpop.eup %3215  ;;  %vm2683_vm0 = vweird.f32 %v3214_v41  ;;  %v2005_v25 = vadd.f32 %v4716_v52, %v1985_v8 }
 0x19f   : > { %v4739_v38 = vadd.f32 1.0, %v3216_v18  ;;  %2813 = vst.msk [vmem:[%s3569_s22] sm:$0xff] %vm754_vm2, %v2797_v20  ;;  %v3218_v14 = vpop.eup %3217  ;;  %vm2684_vm3 = vmor %vm2682_vm1, %vm2683_vm0 }
 0x1a0   : > { %v2679_v42 = vsub.f32 1.0, %v2678_v28  ;;  %v3220_v58 = vpop.eup %3219  ;;  %v2108_v15 = vmul.f32 %v3218_v14, %v4723_v48  ;;  %v2021_v63 = vsub.f32 0.0, %v2005_v25  ;;  %v2029_v48 = vsub.f32 0.0, %v4751_v34 }
 0x1a1   : > { %3223 = vrcp.f32 %v4739_v38  ;;  %v2446_v53 = vmul.f32 %v3220_v58, %v4729_v39  ;;  %v3222_v23 = vpop.eup %3221  ;;  %v2583_v9 = vand.u32 2147483648, %v4739_v38  ;;  %vm2577_vm6 = vweird.f32 %v4739_v38 }
 0x1a2   : > { %v2680_v29 = vmul.f32 %v3214_v41, %v2679_v42  ;;  %v2407_v27 = vadd.f32 1.0, %v3222_v23  ;;  %v2038_v32 = vmul.f32 1.442695, %v2021_v63  ;;  %v2054_v49 = vmul.f32 1.442695, %v2029_v48 }
 0x1a3   : > { %v2466_v31 = vmul.f32 %v4696_v22, %v2446_v53  ;;  %v2584_v18 = vor.u32 1.1754944e-38, %v2583_v9  ;;  %v1945_v33 = vpop.f32.mrf.mxu0 }
 0x1a4   : > { %v2681_v60 = vadd.f32 %v3214_v41, %v2680_v29  ;;  %3225 = vrcp.f32 %v2407_v27 }
 0x1a5   : > { %v2486_v35 = vadd.f32 %v4701_v13, %v2466_v31  ;;  %3227 = vpow2.f32 %v2038_v32 }
 0x1a6   : > { %v2685_v7 = vsel %vm2684_vm3, %v3214_v41, %v2681_v60  ;;  %v2284_v41 = vpop.f32.mrf.mxu1  ;;  %v2304_v60 = vpop.f32.mrf.mxu3 }
 0x1a7   : > { %v2690_v39 = vsel %vm2687_vm4, %v2689_v17, %v2685_v7  ;;  %v3224_v50 = vpop.eup %3223  ;;  %v2502_v11 = vsub.f32 0.0, %v2486_v35  ;;  %v2324_v54 = vmul.f32 %v4674_v47, %v2284_v41  ;;  %v2332_v17 = vmul.f32 %v4674_v47, %v2304_v60 }
 0x1a8   : > { %v2805_v57 = vmul.f32 %v2690_v39, %v2108_v15  ;;  %v2573_v36 = vmul.f32 %v3224_v50, %v4739_v38  ;;  %vm2578_vm5 = vweird.f32 %v3224_v50  ;;  %v1965_v15 = vpop.f32.mrf.mxu2 }
 0x1a9   : > { %v2527_v2 = vmul.f32 1.442695, %v2502_v11  ;;  %vm2579_vm7 = vmor %vm2577_vm6, %vm2578_vm5  ;;  %v4771_v26 = vadd.f32 %v4679_v4, %v2324_v54  ;;  %v4781_v35 = vadd.f32 %v4679_v4, %v2332_v17  ;;  %v1994_v61 = vmul.f32 %v4711_v44, %v1965_v15 }
 0x1aa   : > { %2821 = vst.msk [vmem:[%s3569_s22 + $0x40] sm:$0xff] %vm754_vm2, %v2805_v57  ;;  %v2574_v24 = vsub.f32 1.0, %v2573_v36  ;;  %v3226_v21 = vpop.eup %3225  ;;  %v1986_v36 = vmul.f32 %v4711_v44, %v1945_v33 }
 0x1ab   : > { %3229 = vpow2.f32 %v2527_v2  ;;  %v2439_v43 = vmul.f32 %v3226_v21, %v4736_v6  ;;  %v3228_v55 = vpop.eup %3227  ;;  %v2581_v6 = vand.u32 2147483647, %v4739_v38  ;;  %v2360_v58 = vsub.f32 0.0, %v4771_v26 }
 0x1ac   : > { %v2575_v46 = vmul.f32 %v3224_v50, %v2574_v24  ;;  %3231 = vpow2.f32 %v2054_v49  ;;  %v2069_v40 = vadd.f32 1.0, %v3228_v55  ;;  %v4792_v49 = vadd.f32 %v4716_v52, %v1986_v36 }
 0x1ad   : > { %v2459_v1 = vmul.f32 %v4696_v22, %v2439_v43  ;;  %3233 = vpow2.f32 %v2393_v59  ;;  %vm2582_vm8 = vcmp.eq.f32.partialorder %v2581_v6, 8.507059e+37  ;;  %v2379_v5 = vmul.f32 1.442695, %v2360_v58 }
 0x1ae   : > { %v2576_v45 = vadd.f32 %v3224_v50, %v2575_v46  ;;  %3235 = vrcp.f32 %v2069_v40  ;;  %v2287_v23 = vpop.f32.mrf.mxu1  ;;  %v2368_v21 = vsub.f32 0.0, %v4781_v35  ;;  %v4797_v59 = vadd.f32 %v4716_v52, %v1994_v61 }
 0x1af   : > { %v2479_v51 = vadd.f32 %v4701_v13, %v2459_v1  ;;  %v1947_v1 = vpop.f32.mrf.mxu0 }
 0x1b0   : > { %v2580_v28 = vsel %vm2579_vm7, %v3224_v50, %v2576_v45  ;;  %v2022_v45 = vsub.f32 0.0, %v4792_v49  ;;  %v2030_v9 = vsub.f32 0.0, %v4797_v59 }
 0x1b1   : > { %v3230_v12 = vpop.eup %3229  ;;  %v2495_v37 = vsub.f32 0.0, %v2479_v51  ;;  %v2585_v29 = vsel %vm2582_vm8, %v2584_v18, %v2580_v28 }
 0x1b2   : > { %v2550_v0 = vadd.f32 1.0, %v3230_v12  ;;  %v3232_v10 = vpop.eup %3231  ;;  %v2040_v41 = vmul.f32 1.442695, %v2022_v45 }
 0x1b3   : > { %v2513_v30 = vmul.f32 1.442695, %v2495_v37  ;;  %v3234_v20 = vpop.eup %3233  ;;  %v2077_v42 = vadd.f32 1.0, %v3232_v10  ;;  %v2395_v10 = vmul.f32 1.442695, %v2368_v21  ;;  %v1967_v37 = vpop.f32.mrf.mxu2 }
 0x1b4   : > { %3237 = vrcp.f32 %v2550_v0  ;;  %v2415_v56 = vadd.f32 1.0, %v3234_v20  ;;  %v3236_v14 = vpop.eup %3235  ;;  %v2701_v39 = vand.u32 2147483647, %v2550_v0  ;;  %v2703_v57 = vand.u32 2147483648, %v2550_v0 }
 0x1b5   : > { %3239 = vpow2.f32 %v2513_v30  ;;  %v2101_v38 = vmul.f32 %v3236_v14, %v2005_v25  ;;  %v2325_v25 = vmul.f32 %v4674_v47, %v2287_v23  ;;  %vm2697_vm10 = vweird.f32 %v2550_v0 }
 0x1b6   : > { %3241 = vrcp.f32 %v2415_v56  ;;  %vm2702_vm11 = vcmp.eq.f32.partialorder %v2701_v39, 8.507059e+37  ;;  %v2704_v2 = vor.u32 1.1754944e-38, %v2703_v57  ;;  %v1987_v30 = vmul.f32 %v4711_v44, %v1947_v1  ;;  %v2289_v28 = vpop.f32.mrf.mxu1 }
 0x1b7   : > { %3243 = vrcp.f32 %v2077_v42  ;;  %v2798_v53 = vmul.f32 %v2585_v29, %v2101_v38  ;;  %v4784_v50 = vadd.f32 %v4679_v4, %v2325_v25  ;;  %v2056_v20 = vmul.f32 1.442695, %v2030_v9 }
 0x1b8   : > { %3245 = vpow2.f32 %v2379_v5  ;;  %v2307_v19 = vpop.f32.mrf.mxu3  ;;  %v4811_v56 = vadd.f32 %v4716_v52, %v1987_v30  ;;  %v1995_v14 = vmul.f32 %v4711_v44, %v1967_v37  ;;  %v2326_v58 = vmul.f32 %v4674_v47, %v2289_v28 }
 0x1b9   : > { %2814 = vst.msk [vmem:[%s3569_s22 + $0x8] sm:$0xff] %vm754_vm2, %v2798_v53  ;;  %v2361_v55 = vsub.f32 0.0, %v4784_v50  ;;  %v2333_v38 = vmul.f32 %v4674_v47, %v2307_v19 }
 0x1ba   : > { %v3238_v62 = vpop.eup %3237  ;;  %v2023_v33 = vsub.f32 0.0, %v4811_v56  ;;  %v4826_v23 = vadd.f32 %v4679_v4, %v2326_v58 }
 0x1bb   : > { %v2693_v8 = vmul.f32 %v3238_v62, %v2550_v0  ;;  %v3240_v7 = vpop.eup %3239  ;;  %vm2698_vm9 = vweird.f32 %v3238_v62  ;;  %v2381_v18 = vmul.f32 1.442695, %v2361_v55 }
 0x1bc   : > { %v4778_v27 = vadd.f32 1.0, %v3240_v7  ;;  %v3242_v63 = vpop.eup %3241  ;;  %vm2699_vm12 = vmor %vm2697_vm10, %vm2698_vm9  ;;  %v2042_v15 = vmul.f32 1.442695, %v2023_v33 }
 0x1bd   : > { %v2694_v31 = vsub.f32 1.0, %v2693_v8  ;;  %v3244_v11 = vpop.eup %3243  ;;  %v2447_v32 = vmul.f32 %v3242_v63, %v4760_v3  ;;  %v4822_v8 = vadd.f32 %v4679_v4, %v2333_v38 }
 0x1be   : > { %3247 = vrcp.f32 %v4778_v27  ;;  %v3246_v43 = vpop.eup %3245  ;;  %v2109_v3 = vmul.f32 %v3244_v11, %v4751_v34  ;;  %vm2592_vm13 = vweird.f32 %v4778_v27  ;;  %v2598_v57 = vand.u32 2147483648, %v4778_v27 }
 0x1bf   : > { %v2695_v48 = vmul.f32 %v3238_v62, %v2694_v31  ;;  %v2467_v24 = vmul.f32 %v4696_v22, %v2447_v32  ;;  %v2408_v51 = vadd.f32 1.0, %v3246_v43 }
 0x1c0   : > { %v2309_v60 = vpop.f32.mrf.mxu3 }
 0x1c1   : > { %v2696_v16 = vadd.f32 %v3238_v62, %v2695_v48  ;;  %v2487_v12 = vadd.f32 %v4701_v13, %v2467_v24  ;;  %3249 = vrcp.f32 %v2408_v51  ;;  %v2334_v7 = vmul.f32 %v4674_v47, %v2309_v60 }
 0x1c2   : > { %3251 = vpow2.f32 %v2395_v10  ;;  %v2369_v48 = vsub.f32 0.0, %v4822_v8  ;;  %v2362_v24 = vsub.f32 0.0, %v4826_v23 }
 0x1c3   : > { %v2700_v46 = vsel %vm2699_vm12, %v3238_v62, %v2696_v16  ;;  %v2503_v6 = vsub.f32 0.0, %v2487_v12  ;;  %3253 = vpow2.f32 %v2040_v41  ;;  %v4818_v62 = vadd.f32 %v4716_v52, %v1995_v14  ;;  %v1970_v55 = vpop.f32.mrf.mxu2 }
 0x1c4   : > { %v2705_v40 = vsel %vm2702_vm11, %v2704_v2, %v2700_v46  ;;  %v4803_v34 = vpop.eup %3247  ;;  %3255 = vpow2.f32 %v2056_v20  ;;  %v4838_v21 = vadd.f32 %v4679_v4, %v2334_v7  ;;  %v2397_v51 = vmul.f32 1.442695, %v2369_v48 }
 0x1c5   : > { %v2806_v0 = vmul.f32 %v2705_v40, %v2109_v3  ;;  %v2588_v54 = vmul.f32 %v4803_v34, %v4778_v27  ;;  %v2529_v42 = vmul.f32 1.442695, %v2503_v6  ;;  %v2031_v17 = vsub.f32 0.0, %v4818_v62 }
 0x1c6   : > { %vm2593_vm14 = vweird.f32 %v4803_v34  ;;  %v2596_v40 = vand.u32 2147483647, %v4778_v27  ;;  %v1996_v45 = vmul.f32 %v4711_v44, %v1970_v55  ;;  %v2370_v27 = vsub.f32 0.0, %v4838_v21 }
 0x1c7   : > { %2822 = vst.msk [vmem:[%s3569_s22 + $0x48] sm:$0xff] %vm754_vm2, %v2806_v0  ;;  %v2589_v29 = vsub.f32 1.0, %v2588_v54  ;;  %3257 = vpow2.f32 %v2529_v42  ;;  %v3250_v5 = vpop.eup %3249  ;;  %vm4848_vm15 = vmor %vm2592_vm13, %vm2593_vm14  ;;  %v2599_v54 = vor.u32 1.1754944e-38, %v2598_v57  ;;  %v2383_v20 = vmul.f32 1.442695, %v2362_v24 }
 0x1c8   : > { %3259 = vpow2.f32 %v2381_v18  ;;  %v3252_v31 = vpop.eup %3251  ;;  %v2440_v39 = vmul.f32 %v3250_v5, %v4771_v26  ;;  %v2058_v26 = vmul.f32 1.442695, %v2031_v17  ;;  %v4862_v6 = vadd.f32 %v4716_v52, %v1996_v45 }
 0x1c9   : > { %v2590_v53 = vmul.f32 %v4803_v34, %v2589_v29  ;;  %v3254_v25 = vpop.eup %3253  ;;  %v2416_v63 = vadd.f32 1.0, %v3252_v31  ;;  %3261 = vpow2.f32 %v2042_v15  ;;  %vm2597_vm0 = vcmp.eq.f32.partialorder %v2596_v40, 8.507059e+37 }
 0x1ca   : > { %v3256_v11 = vpop.eup %3255  ;;  %v2460_v32 = vmul.f32 %v4696_v22, %v2440_v39  ;;  %v2070_v36 = vadd.f32 1.0, %v3254_v25  ;;  %v1950_v61 = vpop.f32.mrf.mxu0  ;;  %v2032_v42 = vsub.f32 0.0, %v4862_v6 }
 0x1cb   : > { %v2591_v16 = vadd.f32 %v4803_v34, %v2590_v53  ;;  %3263 = vrcp.f32 %v2416_v63  ;;  %v1988_v46 = vmul.f32 %v4711_v44, %v1950_v61  ;;  %v2078_v10 = vadd.f32 1.0, %v3256_v11 }
 0x1cc   : > { %v2480_v3 = vadd.f32 %v4701_v13, %v2460_v32  ;;  %3265 = vrcp.f32 %v2070_v36  ;;  %v2399_v53 = vmul.f32 1.442695, %v2370_v27  ;;  %v2060_v25 = vmul.f32 1.442695, %v2032_v42 }
 0x1cd   : > { %v3258_v2 = vpop.eup %3257  ;;  %v2595_v9 = vsel %vm4848_vm15, %v4803_v34, %v2591_v16  ;;  %v4859_v37 = vadd.f32 %v4716_v52, %v1988_v46 }
 0x1ce   : > { %v3260_v19 = vpop.eup %3259  ;;  %v4840_v43 = vadd.f32 1.0, %v3258_v2  ;;  %v2496_v0 = vsub.f32 0.0, %v2480_v3  ;;  %v2600_v29 = vsel %vm2597_vm0, %v2599_v54, %v2595_v9 }
 0x1cf   : > { %v2409_v12 = vadd.f32 1.0, %v3260_v19  ;;  %v3262_v30 = vpop.eup %3261  ;;  %v2024_v34 = vsub.f32 0.0, %v4859_v37 }
 0x1d0   : > { %3267 = vrcp.f32 %v4840_v43  ;;  %v2515_v28 = vmul.f32 1.442695, %v2496_v0  ;;  %vm2712_vm1 = vweird.f32 %v4840_v43  ;;  %v2071_v17 = vadd.f32 1.0, %v3262_v30 }
 0x1d1   : > { %3269 = vrcp.f32 %v2409_v12  ;;  %v3264_v18 = vpop.eup %3263  ;;  %v2044_v60 = vmul.f32 1.442695, %v2024_v34  ;;  %v2718_v16 = vand.u32 2147483648, %v4840_v43 }
 0x1d2   : > { %3271 = vpow2.f32 %v2058_v26  ;;  %v3266_v14 = vpop.eup %3265  ;;  %v2448_v38 = vmul.f32 %v3264_v18, %v4781_v35  ;;  %v1952_v7 = vpop.f32.mrf.mxu0 }
 0x1d3   : > { %3273 = vpow2.f32 %v2397_v51  ;;  %v2102_v33 = vmul.f32 %v3266_v14, %v4792_v49  ;;  %v2716_v49 = vand.u32 2147483647, %v4840_v43  ;;  %v1989_v61 = vmul.f32 %v4711_v44, %v1952_v7  ;;  %v1972_v18 = vpop.f32.mrf.mxu2 }
 0x1d4   : > { %3275 = vpow2.f32 %v2515_v28  ;;  %v2468_v15 = vmul.f32 %v4696_v22, %v2448_v38 }
 0x1d5   : > { %3277 = vrcp.f32 %v2078_v10  ;;  %v2799_v39 = vmul.f32 %v2600_v29, %v2102_v33  ;;  %v4890_v9 = vadd.f32 %v4716_v52, %v1989_v61  ;;  %v2719_v10 = vor.u32 1.1754944e-38, %v2718_v16 }
 0x1d6   : > { %v3268_v5 = vpop.eup %3267  ;;  %3279 = vpow2.f32 %v2383_v20  ;;  %v2488_v63 = vadd.f32 %v4701_v13, %v2468_v15  ;;  %vm2717_vm5 = vcmp.eq.f32.partialorder %v2716_v49, 8.507059e+37 }
 0x1d7   : > { %v2292_v41 = vpop.f32.mrf.mxu1  ;;  %v3270_v31 = vpop.eup %3269  ;;  %v2708_v35 = vmul.f32 %v3268_v5, %v4840_v43  ;;  %3281 = vpow2.f32 %v2044_v60  ;;  %2815 = vst.msk [vmem:[%s3569_s22 + $0x10] sm:$0xff] %vm754_vm2, %v2799_v39  ;;  %vm2713_vm3 = vweird.f32 %v3268_v5  ;;  %v2025_v33 = vsub.f32 0.0, %v4890_v9 }
 0x1d8   : > { %v2327_v58 = vmul.f32 %v4674_v47, %v2292_v41  ;;  %v3272_v57 = vpop.eup %3271  ;;  %v2441_v48 = vmul.f32 %v3270_v31, %v4784_v50  ;;  %3283 = vpow2.f32 %v2399_v53  ;;  %v2504_v26 = vsub.f32 0.0, %v2488_v63  ;;  %vm2714_vm4 = vmor %vm2712_vm1, %vm2713_vm3 }
 0x1d9   : > { %v3274_v32 = vpop.eup %3273  ;;  %v2709_v36 = vsub.f32 1.0, %v2708_v35  ;;  %3285 = vrcp.f32 %v2071_v17  ;;  %v2079_v0 = vadd.f32 1.0, %v3272_v57  ;;  %v1997_v53 = vmul.f32 %v4711_v44, %v1972_v18 }
 0x1da   : > { %v4877_v11 = vadd.f32 %v4679_v4, %v2327_v58  ;;  %v3276_v2 = vpop.eup %3275  ;;  %v2461_v24 = vmul.f32 %v4696_v22, %v2441_v48  ;;  %v2417_v19 = vadd.f32 1.0, %v3274_v32  ;;  %3287 = vpow2.f32 %v2060_v25 }
 0x1db   : > { %v3278_v3 = vpop.eup %3277  ;;  %v4884_v50 = vadd.f32 1.0, %v3276_v2  ;;  %v2710_v46 = vmul.f32 %v3268_v5, %v2709_v36  ;;  %v2531_v1 = vmul.f32 1.442695, %v2504_v26  ;;  %v2046_v7 = vmul.f32 1.442695, %v2025_v33 }
 0x1dc   : > { %v3280_v55 = vpop.eup %3279  ;;  %v2481_v40 = vadd.f32 %v4701_v13, %v2461_v24  ;;  %3289 = vrcp.f32 %v2417_v19  ;;  %v2363_v12 = vsub.f32 0.0, %v4877_v11  ;;  %v2110_v28 = vmul.f32 %v3278_v3, %v4797_v59 }
 0x1dd   : > { %v3282_v51 = vpop.eup %3281  ;;  %3291 = vrcp.f32 %v4884_v50  ;;  %v2711_v45 = vadd.f32 %v3268_v5, %v2710_v46  ;;  %v2410_v41 = vadd.f32 1.0, %v3280_v55  ;;  %v2611_v59 = vand.u32 2147483647, %v4884_v50 }
 0x1de   : > { %3293 = vpow2.f32 %v2531_v1  ;;  %v2497_v27 = vsub.f32 0.0, %v2481_v40  ;;  %v3284_v30 = vpop.eup %3283  ;;  %v2072_v20 = vadd.f32 1.0, %v3282_v51  ;;  %v2385_v29 = vmul.f32 1.442695, %v2363_v12 }
 0x1df   : > { %v2715_v54 = vsel %vm2714_vm4, %v3268_v5, %v2711_v45  ;;  %v3286_v34 = vpop.eup %3285  ;;  %3295 = vrcp.f32 %v2410_v41  ;;  %v2418_v58 = vadd.f32 1.0, %v3284_v30  ;;  %v2613_v15 = vand.u32 2147483648, %v4884_v50  ;;  %v2294_v49 = vpop.f32.mrf.mxu1 }
 0x1e0   : > { %v2720_v42 = vsel %vm2717_vm5, %v2719_v10, %v2715_v54  ;;  %v2517_v14 = vmul.f32 1.442695, %v2497_v27  ;;  %v3288_v38 = vpop.eup %3287  ;;  %3297 = vrcp.f32 %v2079_v0  ;;  %v2103_v39 = vmul.f32 %v3286_v34, %v4811_v56 }
 0x1e1   : > { %v2807_v43 = vmul.f32 %v2720_v42, %v2110_v28  ;;  %v2080_v25 = vadd.f32 1.0, %v3288_v38  ;;  %v4908_v32 = vadd.f32 %v4716_v52, %v1997_v53  ;;  %vm2607_vm6 = vweird.f32 %v4884_v50 }
 0x1e2   : > { %v3290_v60 = vpop.eup %3289  ;;  %3299 = vpow2.f32 %v2517_v14  ;;  %vm4911_vm7 = vcmp.eq.f32.partialorder %v2611_v59, 8.507059e+37  ;;  %v2614_v61 = vor.u32 1.1754944e-38, %v2613_v15  ;;  %v2328_v26 = vmul.f32 %v4674_v47, %v2294_v49 }
 0x1e3   : > { %v3292_v5 = vpop.eup %3291  ;;  %2823 = vst.msk [vmem:[%s3569_s22 + $0x50] sm:$0xff] %vm754_vm2, %v2807_v43  ;;  %v2449_v17 = vmul.f32 %v3290_v60, %v4822_v8  ;;  %3301 = vrcp.f32 %v2072_v20  ;;  %v2033_v12 = vsub.f32 0.0, %v4908_v32 }
 0x1e4   : > { %v3294_v31 = vpop.eup %3293  ;;  %v2603_v35 = vmul.f32 %v3292_v5, %v4884_v50  ;;  %3303 = vrcp.f32 %v2418_v58  ;;  %vm2608_vm8 = vweird.f32 %v3292_v5  ;;  %v4937_v30 = vadd.f32 %v4679_v4, %v2328_v26 }
 0x1e5   : > { %v4904_v63 = vadd.f32 1.0, %v3294_v31  ;;  %v2469_v48 = vmul.f32 %v4696_v22, %v2449_v17  ;;  %3305 = vpow2.f32 %v2385_v29  ;;  %v3296_v8 = vpop.eup %3295  ;;  %vm2609_vm9 = vmor %vm2607_vm6, %vm2608_vm8  ;;  %v2062_v14 = vmul.f32 1.442695, %v2033_v12 }
 0x1e6   : > { %v2604_v36 = vsub.f32 1.0, %v2603_v35  ;;  %3307 = vpow2.f32 %v2046_v7  ;;  %v3298_v16 = vpop.eup %3297  ;;  %v2442_v46 = vmul.f32 %v3296_v8, %v4826_v23  ;;  %v2364_v15 = vsub.f32 0.0, %v4937_v30 }
 0x1e7   : > { %3309 = vrcp.f32 %v4904_v63  ;;  %v2489_v3 = vadd.f32 %v4701_v13, %v2469_v48  ;;  %v2731_v40 = vand.u32 2147483647, %v4904_v63  ;;  %v2111_v23 = vmul.f32 %v3298_v16, %v4818_v62 }
 0x1e8   : > { %v2312_v57 = vpop.f32.mrf.mxu3  ;;  %v3300_v24 = vpop.eup %3299  ;;  %v2605_v19 = vmul.f32 %v3292_v5, %v2604_v36  ;;  %3311 = vrcp.f32 %v2080_v25  ;;  %v2462_v10 = vmul.f32 %v4696_v22, %v2442_v46  ;;  %vm2727_vm10 = vweird.f32 %v4904_v63 }
 0x1e9   : > { %v2335_v2 = vmul.f32 %v4674_v47, %v2312_v57  ;;  %v4920_v55 = vpop.eup %3301  ;;  %v4922_v1 = vadd.f32 1.0, %v3300_v24  ;;  %v2733_v47 = vand.u32 2147483648, %v4904_v63  ;;  %v2505_v0 = vsub.f32 0.0, %v2489_v3 }
 0x1ea   : > { %v3304_v51 = vpop.eup %3303  ;;  %v2606_v45 = vadd.f32 %v3292_v5, %v2605_v19  ;;  %v2482_v18 = vadd.f32 %v4701_v13, %v2462_v10  ;;  %vm4945_vm11 = vcmp.eq.f32.partialorder %v2731_v40, 8.507059e+37  ;;  %v2387_v48 = vmul.f32 1.442695, %v2364_v15 }
 0x1eb   : > { %v3306_v27 = vpop.eup %3305  ;;  %3313 = vrcp.f32 %v4922_v1  ;;  %v4934_v41 = vadd.f32 %v4679_v4, %v2335_v2  ;;  %v2533_v20 = vmul.f32 1.442695, %v2505_v0  ;;  %v2450_v34 = vmul.f32 %v3304_v51, %v4838_v21 }
 0x1ec   : > { %v3308_v28 = vpop.eup %3307  ;;  %v2610_v54 = vsel %vm2609_vm9, %v3292_v5, %v2606_v45  ;;  %v2411_v62 = vadd.f32 1.0, %v3306_v27  ;;  %v2734_v43 = vor.u32 1.1754944e-38, %v2733_v47  ;;  %v2498_v21 = vsub.f32 0.0, %v2482_v18  ;;  %v4993_v18 = vld [vmem:[%s5373_s16] ss:$0 sm:$0xff] }
 0x1ed   : > { %v3310_v42 = vpop.eup %3309  ;;  %v2615_v50 = vsel %vm4911_vm7, %v2614_v61, %v2610_v54  ;;  %3315 = vpow2.f32 %v2533_v20  ;;  %v2470_v33 = vmul.f32 %v4696_v22, %v2450_v34  ;;  %v2073_v60 = vadd.f32 1.0, %v3308_v28 }
 0x1ee   : > { %v2800_v29 = vmul.f32 %v2615_v50, %v2103_v39  ;;  %v2723_v4 = vmul.f32 %v3310_v42, %v4904_v63  ;;  %v4949_v58 = vpop.eup %3311  ;;  %3317 = vrcp.f32 %v2411_v62  ;;  %v2626_v53 = vand.u32 2147483647, %v4922_v1  ;;  %v3384_v62 = vld [vmem:[%s5370_s23] ss:$0 sm:$0xff] }
 0x1ef   : > { %v2371_v5 = vsub.f32 0.0, %v4934_v41  ;;  %vm2728_vm12 = vweird.f32 %v3310_v42  ;;  %v2519_v7 = vmul.f32 1.442695, %v2498_v21  ;;  %v2490_v31 = vadd.f32 %v4701_v13, %v2470_v33 }
 0x1f0   : > { %2816 = vst.msk [vmem:[%s3569_s22 + $0x18] sm:$0xff] %vm754_vm2, %v2800_v29  ;;  %v2724_v59 = vsub.f32 1.0, %v2723_v4  ;;  %3319 = vpow2.f32 %v2062_v14  ;;  %v2628_v57 = vand.u32 2147483648, %v4922_v1  ;;  %vm2729_vm13 = vmor %vm2727_vm10, %vm2728_vm12  ;;  %vm2622_vm15 = vweird.f32 %v4922_v1  ;;  %v2314_v28 = vpop.f32.mrf.mxu3 }
 0x1f1   : > { %v3314_v17 = vpop.eup %3313  ;;  %3321 = vrcp.f32 %v2073_v60  ;;  %v2401_v25 = vmul.f32 1.442695, %v2371_v5  ;;  %v2506_v49 = vsub.f32 0.0, %v2490_v31  ;;  %v2104_v10 = vmul.f32 %v4920_v55, %v4859_v37 }
 0x1f2   : > { %v2725_v39 = vmul.f32 %v3310_v42, %v2724_v59  ;;  %v2618_v35 = vmul.f32 %v3314_v17, %v4922_v1  ;;  %3323 = vpow2.f32 %v2519_v7  ;;  %vm2623_vm14 = vweird.f32 %v3314_v17  ;;  %v3385_v7 = vld [vmem:[%s5371_s30] ss:$0 sm:$0xff] }
 0x1f3   : > { %v3316_v36 = vpop.eup %3315  ;;  %3325 = vpow2.f32 %v2401_v25  ;;  %v2535_v26 = vmul.f32 1.442695, %v2506_v49  ;;  %vm2624_vm0 = vmor %vm2622_vm15, %vm2623_vm14  ;;  %vm2627_vm1 = vcmp.eq.f32.partialorder %v2626_v53, 8.507059e+37  ;;  %v2336_v14 = vmul.f32 %v3384_v62, %v2314_v28 }
 0x1f4   : > { %v1975_v8 = vpop.f32.mrf.mxu2  ;;  %v2726_v56 = vadd.f32 %v3310_v42, %v2725_v39  ;;  %v2619_v16 = vsub.f32 1.0, %v2618_v35  ;;  %v3318_v2 = vpop.eup %3317  ;;  %v4964_v13 = vadd.f32 1.0, %v3316_v36  ;;  %3327 = vpow2.f32 %v2387_v48 }
 0x1f5   : > { %v1998_v61 = vmul.f32 %v4711_v44, %v1975_v8  ;;  %v2443_v46 = vmul.f32 %v3318_v2, %v4877_v11  ;;  %v5017_v31 = vadd.f32 %v3385_v7, %v2336_v14 }
 0x1f6   : > { %v2730_v19 = vsel %vm2729_vm13, %v3310_v42, %v2726_v56  ;;  %v2620_v3 = vmul.f32 %v3314_v17, %v2619_v16  ;;  %v3320_v12 = vpop.eup %3319  ;;  %3329 = vrcp.f32 %v4964_v13  ;;  %vm2742_vm3 = vweird.f32 %v4964_v13 }
 0x1f7   : > { %v2735_v51 = vsel %vm4945_vm11, %v2734_v43, %v2730_v19  ;;  %v3322_v63 = vpop.eup %3321  ;;  %3331 = vpow2.f32 %v2535_v26  ;;  %v2463_v11 = vmul.f32 %v4696_v22, %v2443_v46  ;;  %v4977_v27 = vadd.f32 %v4716_v52, %v1998_v61  ;;  %v5036_v46 = vld [vmem:[%s5374_s4] ss:$0 sm:$0xff] }
 0x1f8   : > { %v2808_v45 = vmul.f32 %v2735_v51, %v2111_v23  ;;  %v2621_v47 = vadd.f32 %v3314_v17, %v2620_v3  ;;  %v3324_v0 = vpop.eup %3323  ;;  %v4988_v22 = vmul.f32 %v4949_v58, %v4862_v6  ;;  %v2748_v21 = vand.u32 2147483648, %v4964_v13 }
 0x1f9   : > { %v3326_v54 = vpop.eup %3325  ;;  %v4981_v23 = vadd.f32 1.0, %v3324_v0  ;;  %v2483_v34 = vadd.f32 %v4993_v18, %v2463_v11  ;;  %v2034_v38 = vsub.f32 0.0, %v4977_v27  ;;  %v2081_v53 = vadd.f32 1.0, %v3320_v12  ;;  %v5042_v12 = vld [vmem:[%s5372_s27] ss:$0 sm:$0xff] }
 0x1fa   : > { %2824 = vst.msk [vmem:[%s3569_s22 + $0x58] sm:$0xff] %vm754_vm2, %v2808_v45  ;;  %v2625_v1 = vsel %vm2624_vm0, %v3314_v17, %v2621_v47  ;;  %v3328_v37 = vpop.eup %3327  ;;  %v2419_v42 = vadd.f32 1.0, %v3326_v54  ;;  %v2105_v39 = vmul.f32 %v3322_v63, %v4890_v9  ;;  %v2372_v48 = vsub.f32 0.0, %v5017_v31  ;;  %v5051_v0 = vld [vmem:[%s5375_s12] ss:$0 sm:$0xff] }
 0x1fb   : > { %v1955_v24 = vpop.f32.mrf.mxu0  ;;  %3333 = vrcp.f32 %v4981_v23  ;;  %v2499_v29 = vsub.f32 0.0, %v2483_v34  ;;  %v2412_v4 = vadd.f32 1.0, %v3328_v37  ;;  %v2641_v35 = vand.u32 2147483647, %v4981_v23 }
 0x1fc   : > { %v1990_v40 = vmul.f32 %v4711_v44, %v1955_v24  ;;  %v2629_v44 = vor.u32 1.1754944e-38, %v2628_v57  ;;  %v3330_v6 = vpop.eup %3329  ;;  %3335 = vrcp.f32 %v2419_v42  ;;  %v2643_v25 = vand.u32 2147483648, %v4981_v23 }
 0x1fd   : > { %v3332_v43 = vpop.eup %3331  ;;  %v2738_v58 = vmul.f32 %v3330_v6, %v4964_v13  ;;  %v2521_v59 = vmul.f32 1.442695, %v2499_v29  ;;  %3337 = vrcp.f32 %v2412_v4  ;;  %vm2743_vm5 = vweird.f32 %v3330_v6 }
 0x1fe   : > { %v4984_v20 = vadd.f32 %v4716_v52, %v1990_v40  ;;  %v2630_v55 = vsel %vm2627_vm1, %v2629_v44, %v2625_v1  ;;  %v2746_v52 = vand.u32 2147483647, %v4964_v13  ;;  %v5008_v60 = vadd.f32 1.0, %v3332_v43  ;;  %vm2744_vm7 = vmor %vm2742_vm3, %vm2743_vm5 }
 0x1ff   : > { %v2801_v50 = vmul.f32 %v2630_v55, %v2104_v10  ;;  %v2739_v5 = vsub.f32 1.0, %v2738_v58  ;;  %v2749_v56 = vor.u32 1.1754944e-38, %v2748_v21  ;;  %vm2637_vm6 = vweird.f32 %v4981_v23 }
 0x200   : > { %v2026_v33 = vsub.f32 0.0, %v4984_v20  ;;  %vm5010_vm4 = vcmp.eq.f32.partialorder %v2746_v52, 8.507059e+37  ;;  %3339 = vrcp.f32 %v5008_v60  ;;  %v2403_v2 = vmul.f32 1.442695, %v2372_v48 }
 0x201   : > { %2817 = vst.msk [vmem:[%s3569_s22 + $0x20] sm:$0xff] %vm754_vm2, %v2801_v50  ;;  %v3334_v57 = vpop.eup %3333  ;;  %v2740_v49 = vmul.f32 %v3330_v6, %v2739_v5  ;;  %3341 = vpow2.f32 %v2521_v59  ;;  %vm5029_vm8 = vcmp.eq.f32.partialorder %v2641_v35, 8.507059e+37  ;;  %v2644_v3 = vor.u32 1.1754944e-38, %v2643_v25 }
 0x202   : > { %v2048_v17 = vmul.f32 1.442695, %v2026_v33  ;;  %v3336_v36 = vpop.eup %3335  ;;  %v2633_v16 = vmul.f32 %v3334_v57, %v4981_v23  ;;  %3343 = vrcp.f32 %v2081_v53  ;;  %vm2638_vm9 = vweird.f32 %v3334_v57 }
 0x203   : > { %v1957_v8 = vpop.f32.mrf.mxu0  ;;  %v2741_v61 = vadd.f32 %v3330_v6, %v2740_v49  ;;  %v2451_v9 = vmul.f32 %v3336_v36, %v4934_v41  ;;  %v3338_v26 = vpop.eup %3337  ;;  %v2064_v54 = vmul.f32 1.442695, %v2034_v38  ;;  %v2761_v34 = vand.u32 2147483647, %v5008_v60  ;;  %vm2639_vm10 = vmor %vm2637_vm6, %vm2638_vm9 }
 0x204   : > { %3345 = vpow2.f32 %v2048_v17  ;;  %v2634_v24 = vsub.f32 1.0, %v2633_v16  ;;  %v1991_v40 = vmul.f32 %v5036_v46, %v1957_v8  ;;  %v2444_v51 = vmul.f32 %v3338_v26, %v4937_v30 }
 0x205   : > { %v2745_v41 = vsel %vm2744_vm7, %v3330_v6, %v2741_v61  ;;  %v2471_v13 = vmul.f32 %v5042_v12, %v2451_v9  ;;  %3347 = vpow2.f32 %v2403_v2  ;;  %v2763_v52 = vand.u32 2147483648, %v5008_v60 }
 0x206   : > { %v3340_v63 = vpop.eup %3339  ;;  %v2750_v45 = vsel %vm5010_vm4, %v2749_v56, %v2745_v41  ;;  %v2635_v47 = vmul.f32 %v3334_v57, %v2634_v24  ;;  %v5054_v10 = vadd.f32 %v5051_v0, %v1991_v40  ;;  %v2464_v42 = vmul.f32 %v5042_v12, %v2444_v51 }
 0x207   : > { %v3342_v44 = vpop.eup %3341  ;;  %v2809_v11 = vmul.f32 %v2750_v45, %v4988_v22  ;;  %v2753_v30 = vmul.f32 %v3340_v63, %v5008_v60  ;;  %v2491_v28 = vadd.f32 %v4993_v18, %v2471_v13  ;;  %vm2758_vm11 = vweird.f32 %v3340_v63 }
 0x208   : > { %v3344_v1 = vpop.eup %3343  ;;  %v5059_v37 = vadd.f32 1.0, %v3342_v44  ;;  %v2636_v55 = vadd.f32 %v3334_v57, %v2635_v47  ;;  %v2484_v6 = vadd.f32 %v4993_v18, %v2464_v42  ;;  %v2027_v29 = vsub.f32 0.0, %v5054_v10 }
 0x209   : > { %2825 = vst.msk [vmem:[%s3569_s22 + $0x60] sm:$0xff] %vm754_vm2, %v2809_v11  ;;  %v2754_v22 = vsub.f32 1.0, %v2753_v30  ;;  %v2507_v62 = vsub.f32 0.0, %v2491_v28  ;;  %v2113_v59 = vmul.f32 %v3344_v1, %v4908_v32  ;;  %vm2757_vm12 = vweird.f32 %v5008_v60  ;;  %v1977_v32 = vpop.f32.mrf.mxu2 }
 0x20a   : > { %v3346_v50 = vpop.eup %3345  ;;  %3349 = vrcp.f32 %v5059_v37  ;;  %v2640_v14 = vsel %vm2639_vm10, %v3334_v57, %v2636_v55  ;;  %v2500_v33 = vsub.f32 0.0, %v2484_v6  ;;  %vm2759_vm13 = vmor %vm2757_vm12, %vm2758_vm11  ;;  %v2764_v5 = vor.u32 1.1754944e-38, %v2763_v52 }
 0x20b   : > { %v3348_v4 = vpop.eup %3347  ;;  %v2645_v38 = vsel %vm5029_vm8, %v2644_v3, %v2640_v14  ;;  %v2755_v43 = vmul.f32 %v3340_v63, %v2754_v22  ;;  %v2537_v23 = vmul.f32 1.442695, %v2507_v62  ;;  %v2074_v58 = vadd.f32 1.0, %v3346_v50 }
 0x20c   : > { %v2802_v21 = vmul.f32 %v2645_v38, %v2105_v39  ;;  %v2523_v15 = vmul.f32 1.442695, %v2500_v33  ;;  %v2420_v17 = vadd.f32 1.0, %v3348_v4  ;;  %vm2762_vm14 = vcmp.eq.f32.partialorder %v2761_v34, 8.507059e+37 }
 0x20d   : > { %v2756_v53 = vadd.f32 %v3340_v63, %v2755_v43  ;;  %3351 = vpow2.f32 %v2537_v23  ;;  %v2050_v39 = vmul.f32 1.442695, %v2027_v29  ;;  %v1999_v8 = vmul.f32 %v5036_v46, %v1977_v32 }
 0x20e   : > { %2818 = vst.msk [vmem:[%s3569_s22 + $0x28] sm:$0xff] %vm754_vm2, %v2802_v21  ;;  %3353 = vpow2.f32 %v2064_v54  ;;  %v2658_v16 = vand.u32 2147483648, %v5059_v37  ;;  %v2656_v2 = vand.u32 2147483647, %v5059_v37  ;;  %vm2652_vm0 = vweird.f32 %v5059_v37 }
 0x20f   : > { %v2760_v7 = vsel %vm2759_vm13, %v3340_v63, %v2756_v53  ;;  %3355 = vrcp.f32 %v2074_v58  ;;  %v5087_v40 = vadd.f32 %v5051_v0, %v1999_v8 }
 0x210   : > { %v3350_v35 = vpop.eup %3349  ;;  %v2765_v25 = vsel %vm2762_vm14, %v2764_v5, %v2760_v7  ;;  %3357 = vpow2.f32 %v2523_v15  ;;  %v2659_v41 = vor.u32 1.1754944e-38, %v2658_v16  ;;  %vm2657_vm3 = vcmp.eq.f32.partialorder %v2656_v2, 8.507059e+37 }
 0x211   : > { %v2810_v57 = vmul.f32 %v2765_v25, %v2113_v59  ;;  %v2648_v60 = vmul.f32 %v3350_v35, %v5059_v37  ;;  %3359 = vrcp.f32 %v2420_v17  ;;  %vm2653_vm15 = vweird.f32 %v3350_v35 }
 0x212   : > { %3361 = vpow2.f32 %v2050_v39  ;;  %vm2654_vm1 = vmor %vm2652_vm0, %vm2653_vm15  ;;  %v2035_v0 = vsub.f32 0.0, %v5087_v40 }
 0x213   : > { %v3352_v49 = vpop.eup %3351  ;;  %2826 = vst.msk [vmem:[%s3569_s22 + $0x68] sm:$0xff] %vm754_vm2, %v2810_v57  ;;  %v2649_v48 = vsub.f32 1.0, %v2648_v60 }
 0x214   : > { %v3354_v36 = vpop.eup %3353  ;;  %v2555_v56 = vadd.f32 1.0, %v3352_v49 }
 0x215   : > { %v3356_v61 = vpop.eup %3355  ;;  %v2650_v9 = vmul.f32 %v3350_v35, %v2649_v48  ;;  %v2082_v13 = vadd.f32 1.0, %v3354_v36 }
 0x216   : > { %v3358_v26 = vpop.eup %3357  ;;  %3363 = vrcp.f32 %v2555_v56  ;;  %v2106_v63 = vmul.f32 %v3356_v61, %v4984_v20  ;;  %v2066_v20 = vmul.f32 1.442695, %v2035_v0  ;;  %v2778_v34 = vand.u32 2147483648, %v2555_v56 }
 0x217   : > { %v3360_v24 = vpop.eup %3359  ;;  %v2548_v19 = vadd.f32 1.0, %v3358_v26  ;;  %v2651_v3 = vadd.f32 %v3350_v35, %v2650_v9  ;;  %v2776_v22 = vand.u32 2147483647, %v2555_v56  ;;  %vm2772_vm5 = vweird.f32 %v2555_v56 }
 0x218   : > { %v3362_v46 = vpop.eup %3361  ;;  %v2452_v51 = vmul.f32 %v3360_v24, %v5017_v31  ;;  %v2779_v6 = vor.u32 1.1754944e-38, %v2778_v34 }
 0x219   : > { %3365 = vrcp.f32 %v2548_v19  ;;  %v2655_v45 = vsel %vm2654_vm1, %v3350_v35, %v2651_v3  ;;  %v2075_v30 = vadd.f32 1.0, %v3362_v46  ;;  %v2671_v4 = vand.u32 2147483647, %v2548_v19 }
 0x21a   : > { %v2660_v47 = vsel %vm2657_vm3, %v2659_v41, %v2655_v45  ;;  %v2472_v44 = vmul.f32 %v5042_v12, %v2452_v51  ;;  %3367 = vrcp.f32 %v2082_v13  ;;  %vm2777_vm8 = vcmp.eq.f32.partialorder %v2776_v22, 8.507059e+37 }
 0x21b   : > { %v2803_v11 = vmul.f32 %v2660_v47, %v2106_v63  ;;  %3369 = vrcp.f32 %v2075_v30  ;;  %vm2667_vm9 = vweird.f32 %v2548_v19  ;;  %vm2672_vm11 = vcmp.eq.f32.partialorder %v2671_v4, 8.507059e+37 }
 0x21c   : > { %v3364_v28 = vpop.eup %3363  ;;  %v2492_v54 = vadd.f32 %v4993_v18, %v2472_v44  ;;  %v2673_v18 = vand.u32 2147483648, %v2548_v19 }
 0x21d   : > { %2819 = vst.msk [vmem:[%s3569_s22 + $0x30] sm:$0xff] %vm754_vm2, %v2803_v11  ;;  %v2768_v1 = vmul.f32 %v3364_v28, %v2555_v56  ;;  %vm2773_vm4 = vweird.f32 %v3364_v28 }
 0x21e   : > { %v2508_v31 = vsub.f32 0.0, %v2492_v54  ;;  %vm2774_vm6 = vmor %vm2772_vm5, %vm2773_vm4  ;;  %v2674_v59 = vor.u32 1.1754944e-38, %v2673_v18 }
 0x21f   : > { %v3366_v37 = vpop.eup %3365  ;;  %v2769_v55 = vsub.f32 1.0, %v2768_v1 }
 0x220   : > { %v2539_v42 = vmul.f32 1.442695, %v2508_v31  ;;  %v2663_v50 = vmul.f32 %v3366_v37, %v2548_v19  ;;  %v3368_v52 = vpop.eup %3367  ;;  %vm2668_vm7 = vweird.f32 %v3366_v37 }
 0x221   : > { %v2770_v12 = vmul.f32 %v3364_v28, %v2769_v55  ;;  %v3370_v38 = vpop.eup %3369  ;;  %v2114_v43 = vmul.f32 %v3368_v52, %v4977_v27  ;;  %vm2669_vm10 = vmor %vm2667_vm9, %vm2668_vm7 }
 0x222   : > { %3371 = vpow2.f32 %v2539_v42  ;;  %v2664_v62 = vsub.f32 1.0, %v2663_v50  ;;  %v2107_v5 = vmul.f32 %v3370_v38, %v5054_v10 }
 0x223   : > { %v2771_v14 = vadd.f32 %v3364_v28, %v2770_v12  ;;  %3373 = vpow2.f32 %v2066_v20 }
 0x224   : > { %v2665_v29 = vmul.f32 %v3366_v37, %v2664_v62 }
 0x225   : > { %v2775_v23 = vsel %vm2774_vm6, %v3364_v28, %v2771_v14 }
 0x226   : > { %v2780_v58 = vsel %vm2777_vm8, %v2779_v6, %v2775_v23  ;;  %v2666_v21 = vadd.f32 %v3366_v37, %v2665_v29 }
 0x227   : > { %v2811_v33 = vmul.f32 %v2780_v58, %v2114_v43 }
 0x228   : > { %v3372_v53 = vpop.eup %3371  ;;  %v2670_v15 = vsel %vm2669_vm10, %v3366_v37, %v2666_v21 }
 0x229   : > { %v3374_v17 = vpop.eup %3373  ;;  %2827 = vst.msk [vmem:[%s3569_s22 + $0x70] sm:$0xff] %vm754_vm2, %v2811_v33  ;;  %v2556_v7 = vadd.f32 1.0, %v3372_v53  ;;  %v2675_v39 = vsel %vm2672_vm11, %v2674_v59, %v2670_v15 }
 0x22a   : > { %v2804_v27 = vmul.f32 %v2675_v39, %v2107_v5  ;;  %v2083_v35 = vadd.f32 1.0, %v3374_v17 }
 0x22b   : > { %3375 = vrcp.f32 %v2556_v7  ;;  %v2793_v60 = vand.u32 2147483648, %v2556_v7  ;;  %v2791_v10 = vand.u32 2147483647, %v2556_v7  ;;  %vm2787_vm13 = vweird.f32 %v2556_v7 }
 0x22c   : > { %2820 = vst.msk [vmem:[%s3569_s22 + $0x38] sm:$0xff] %vm754_vm2, %v2804_v27  ;;  %3377 = vrcp.f32 %v2083_v35 }
 0x22d   : > { %v2794_v36 = vor.u32 1.1754944e-38, %v2793_v60  ;;  %vm2792_vm15 = vcmp.eq.f32.partialorder %v2791_v10, 8.507059e+37 }
 0x231   : > { %v3376_v25 = vpop.eup %3375 }
 0x232   : > { %v2783_v32 = vmul.f32 %v3376_v25, %v2556_v7  ;;  %vm2788_vm12 = vweird.f32 %v3376_v25  ;;  %v3378_v48 = vpop.eup %3377 }
 0x233   : > { %vm2789_vm14 = vmor %vm2787_vm13, %vm2788_vm12  ;;  %v2115_v56 = vmul.f32 %v3378_v48, %v5087_v40 }
 0x234   : > { %v2784_v57 = vsub.f32 1.0, %v2783_v32 }
 0x236   : > { %v2785_v49 = vmul.f32 %v3376_v25, %v2784_v57 }
 0x238   : > { %v2786_v8 = vadd.f32 %v3376_v25, %v2785_v49 }
 0x23a   : > { %v2790_v16 = vsel %vm2789_vm14, %v3376_v25, %v2786_v8 }
 0x23b   : > { %v2795_v61 = vsel %vm2792_vm15, %v2794_v36, %v2790_v16 }
 0x23c   : > { %v2812_v9 = vmul.f32 %v2795_v61, %v2115_v56 }
 0x23e   : > { %2828 = vst.msk [vmem:[%s3569_s22 + $0x78] sm:$0xff] %vm754_vm2, %v2812_v9 }
 0x23f PF: > { %s5386_s7 = sld [smem:[#allocation6_spill]] }
 0x240   : > { %s5387_s18 = sld [smem:[#allocation4_spill]] }
 0x241   : > { %s5388_s19 = sld [smem:[#allocation5_spill]] }
 0x242   : > { %s5389_s20 = sld [smem:[#allocation7_spill]] }
 0x243   : > { %s5390_s21 = sld [smem:[#allocation8_spill]] }
 0x245   : > { %s25_s22 = sadd.s32 1, %s5386_s7  }
 0x246   : > { %p22_p12 = scmp.ge.s32.totalorder %s25_s22, 8  }
 0x248   :  { %24 = sbr.rel (!%p22_p12) target bundleno = 8 (0x8), region = 130 }

</bundles_post_ra>
